<compile_context>
chip_gen: v7x
topology: tpu7x:2x2x1
jax: 0.10.0
libtpu: 0.0.40
codegen_flags: <defaults>
</compile_context>

<pallas_src>
import functools
import math

import jax
import jax.numpy as jnp
from jax import lax
from jax.experimental import pallas as pl
from jax.experimental.pallas import tpu as pltpu


# ---------------------------------------------------------------------------
# small helpers
# ---------------------------------------------------------------------------
def _round_up(x, m):
    return ((x + m - 1) // m) * m


def _row_tiling(M, cap=512):
    """Pick a row tile (multiple of 16) that keeps padding small."""
    n = max(1, -(-M // cap))
    tm = _round_up(-(-M // n), 16)
    return tm, tm * n, n


def _divisor_chunk(L, cap):
    """Largest divisor of L that is <= cap and a multiple of 8 (fallback: L)."""
    if L <= cap:
        return L
    for t in range(cap, 7, -1):
        if L % t == 0 and t % 8 == 0:
            return t
    return L


def _pad_rows(x, Mp):
    M = x.shape[0]
    return x if Mp == M else jnp.pad(x, ((0, Mp - M), (0, 0)))


_PAR1 = pltpu.CompilerParams(dimension_semantics=("parallel",))
_PAR3 = pltpu.CompilerParams(
    dimension_semantics=("parallel", "parallel", "parallel"))


# ---------------------------------------------------------------------------
# Pallas kernels: row-tiled matmul / LayerNorm family
# ---------------------------------------------------------------------------
def _matmul_kernel(a_ref, w_ref, bias_ref, o_ref, *, activation):
    a = a_ref[...].astype(jnp.bfloat16)
    acc = jnp.dot(a, w_ref[...], preferred_element_type=jnp.float32)
    acc = acc + bias_ref[...]
    if activation == "sigmoid":
        acc = jax.nn.sigmoid(acc)
    elif activation == "silu":
        acc = acc * jax.nn.sigmoid(acc)
    o_ref[...] = acc.astype(o_ref.dtype)


def pallas_linear(a, w, b=None, activation=None, out_dtype=jnp.float32):
    """(M, K) @ (K, N) [+ (N,)] -> (M, N); bf16 MXU operands, f32 accumulate."""
    M, K = a.shape
    N = w.shape[1]
    bias = (jnp.zeros((1, N), jnp.float32) if b is None
            else b.reshape(1, N).astype(jnp.float32))
    TM, Mp, n = _row_tiling(M)
    a_p = _pad_rows(a, Mp)                     # keep input dtype; cast in-kernel
    out = pl.pallas_call(
        functools.partial(_matmul_kernel, activation=activation),
        grid=(n,),
        in_specs=[pl.BlockSpec((TM, K), lambda i: (i, 0)),
                  pl.BlockSpec((K, N), lambda i: (0, 0)),
                  pl.BlockSpec((1, N), lambda i: (0, 0))],
        out_specs=pl.BlockSpec((TM, N), lambda i: (i, 0)),
        out_shape=jax.ShapeDtypeStruct((Mp, N), out_dtype),
        compiler_params=_PAR1,
    )(a_p, w.astype(jnp.bfloat16), bias)
    return out[:M] if Mp != M else out


def _ln_matmul_kernel(x_ref, g_ref, b_ref, w_ref, o_ref, *, eps):
    x = x_ref[...].astype(jnp.float32)
    mu = jnp.mean(x, axis=-1, keepdims=True)
    xc = x - mu
    var = jnp.mean(xc * xc, axis=-1, keepdims=True)
    xn = xc * lax.rsqrt(var + eps) * g_ref[...] + b_ref[...]
    o_ref[...] = jnp.dot(xn.astype(jnp.bfloat16), w_ref[...],
                         preferred_element_type=jnp.float32).astype(o_ref.dtype)


def pallas_ln_linear(x, gamma, beta, w, eps=1e-6, out_dtype=jnp.float32):
    """Fused LayerNorm(x) @ W (no bias)."""
    M, C = x.shape
    N = w.shape[1]
    TM, Mp, n = _row_tiling(M)
    xp = _pad_rows(x, Mp)
    out = pl.pallas_call(
        functools.partial(_ln_matmul_kernel, eps=eps),
        grid=(n,),
        in_specs=[pl.BlockSpec((TM, C), lambda i: (i, 0)),
                  pl.BlockSpec((1, C), lambda i: (0, 0)),
                  pl.BlockSpec((1, C), lambda i: (0, 0)),
                  pl.BlockSpec((C, N), lambda i: (0, 0))],
        out_specs=pl.BlockSpec((TM, N), lambda i: (i, 0)),
        out_shape=jax.ShapeDtypeStruct((Mp, N), out_dtype),
        compiler_params=_PAR1,
    )(xp, gamma.reshape(1, C).astype(jnp.float32),
      beta.reshape(1, C).astype(jnp.float32), w.astype(jnp.bfloat16))
    return out[:M] if Mp != M else out


def _ln2_matmul_kernel(x_ref, h_ref, g_ref, b_ref, wt_ref, wb_ref, bias_ref,
                       o_ref, *, eps):
    def _ln(v):
        mu = jnp.mean(v, axis=-1, keepdims=True)
        vc = v - mu
        var = jnp.mean(vc * vc, axis=-1, keepdims=True)
        return vc * lax.rsqrt(var + eps) * g_ref[...] + b_ref[...]

    xn = _ln(x_ref[...].astype(jnp.float32)).astype(jnp.bfloat16)
    hn = _ln(h_ref[...].astype(jnp.float32)).astype(jnp.bfloat16)
    acc = jnp.dot(xn, wt_ref[...], preferred_element_type=jnp.float32)
    acc = acc + jnp.dot(hn, wb_ref[...], preferred_element_type=jnp.float32)
    o_ref[...] = (acc + bias_ref[...]).astype(o_ref.dtype)


def pallas_ln2_linear(x, hx, gamma, beta, w_top, w_bot, bias, eps=1e-6,
                      out_dtype=jnp.float32):
    """Fused:  LN(x) @ Wt + LN(hx) @ Wb + b   (== Linear(cat(LN(x), LN(hx))))."""
    M, C = x.shape
    N = w_top.shape[1]
    TM, Mp, n = _row_tiling(M)
    xp = _pad_rows(x, Mp)
    hp = _pad_rows(hx, Mp)
    out = pl.pallas_call(
        functools.partial(_ln2_matmul_kernel, eps=eps),
        grid=(n,),
        in_specs=[pl.BlockSpec((TM, C), lambda i: (i, 0)),
                  pl.BlockSpec((TM, C), lambda i: (i, 0)),
                  pl.BlockSpec((1, C), lambda i: (0, 0)),
                  pl.BlockSpec((1, C), lambda i: (0, 0)),
                  pl.BlockSpec((C, N), lambda i: (0, 0)),
                  pl.BlockSpec((C, N), lambda i: (0, 0)),
                  pl.BlockSpec((1, N), lambda i: (0, 0))],
        out_specs=pl.BlockSpec((TM, N), lambda i: (i, 0)),
        out_shape=jax.ShapeDtypeStruct((Mp, N), out_dtype),
        compiler_params=_PAR1,
    )(xp, hp, gamma.reshape(1, C).astype(jnp.float32),
      beta.reshape(1, C).astype(jnp.float32),
      w_top.astype(jnp.bfloat16), w_bot.astype(jnp.bfloat16),
      bias.reshape(1, N).astype(jnp.float32))
    return out[:M] if Mp != M else out


def _layernorm_kernel(x_ref, g_ref, b_ref, o_ref, *, eps):
    x = x_ref[...].astype(jnp.float32)
    mu = jnp.mean(x, axis=-1, keepdims=True)
    xc = x - mu
    var = jnp.mean(xc * xc, axis=-1, keepdims=True)
    o_ref[...] = xc * lax.rsqrt(var + eps) * g_ref[...] + b_ref[...]


def pallas_layernorm(x, gamma, beta, eps=1e-5):
    shape = x.shape
    C = shape[-1]
    M = x.size // C
    TM, Mp, n = _row_tiling(M)
    xf = _pad_rows(x.reshape(M, C), Mp)
    out = pl.pallas_call(
        functools.partial(_layernorm_kernel, eps=eps),
        grid=(n,),
        in_specs=[pl.BlockSpec((TM, C), lambda i: (i, 0)),
                  pl.BlockSpec((1, C), lambda i: (0, 0)),
                  pl.BlockSpec((1, C), lambda i: (0, 0))],
        out_specs=pl.BlockSpec((TM, C), lambda i: (i, 0)),
        out_shape=jax.ShapeDtypeStruct((Mp, C), jnp.float32),
        compiler_params=_PAR1,
    )(xf, gamma.reshape(1, C).astype(jnp.float32),
      beta.reshape(1, C).astype(jnp.float32))
    return out[:M].reshape(shape)


# ---------------------------------------------------------------------------
# SS2D tail (LN + gated SiLU + out_proj + residual), optional fused LSTM gate
# ---------------------------------------------------------------------------
def _tail_common(sc_ref, y_ref, z_ref, g_ref, b_ref, w_ref, eps):
    y = y_ref[...].astype(jnp.float32)
    mu = jnp.mean(y, axis=-1, keepdims=True)
    yc = y - mu
    var = jnp.mean(yc * yc, axis=-1, keepdims=True)
    yn = yc * lax.rsqrt(var + eps) * g_ref[...] + b_ref[...]
    z = z_ref[...].astype(jnp.float32)
    h = (yn * (z * jax.nn.sigmoid(z))).astype(jnp.bfloat16)
    return sc_ref[...].astype(jnp.float32) + jnp.dot(
        h, w_ref[...], preferred_element_type=jnp.float32)


def _ss2d_tail_kernel(sc_ref, y_ref, z_ref, g_ref, b_ref, w_ref, o_ref, *, eps):
    o_ref[...] = _tail_common(sc_ref, y_ref, z_ref, g_ref, b_ref, w_ref, eps)


def _ss2d_tail_lstm_kernel(sc_ref, y_ref, z_ref, cx_ref, g_ref, b_ref, w_ref,
                           h_out, c_out, *, eps):
    o = _tail_common(sc_ref, y_ref, z_ref, g_ref, b_ref, w_ref, eps)
    ft = jax.nn.sigmoid(o)
    ct = ft * (cx_ref[...].astype(jnp.float32) + jnp.tanh(o))
    c_out[...] = ct
    h_out[...] = ft * jnp.tanh(ct)


def pallas_ss2d_tail(shortcut, y, z, gamma, beta, w, eps=1e-5):
    M, Dn = y.shape
    C = w.shape[1]
    TM, Mp, n = _row_tiling(M)
    out = pl.pallas_call(
        functools.partial(_ss2d_tail_kernel, eps=eps),
        grid=(n,),
        in_specs=[pl.BlockSpec((TM, C), lambda i: (i, 0)),
                  pl.BlockSpec((TM, Dn), lambda i: (i, 0)),
                  pl.BlockSpec((TM, Dn), lambda i: (i, 0)),
                  pl.BlockSpec((1, Dn), lambda i: (0, 0)),
                  pl.BlockSpec((1, Dn), lambda i: (0, 0)),
                  pl.BlockSpec((Dn, C), lambda i: (0, 0))],
        out_specs=pl.BlockSpec((TM, C), lambda i: (i, 0)),
        out_shape=jax.ShapeDtypeStruct((Mp, C), jnp.float32),
        compiler_params=_PAR1,
    )(_pad_rows(shortcut, Mp), _pad_rows(y, Mp), _pad_rows(z, Mp),
      gamma.reshape(1, Dn).astype(jnp.float32),
      beta.reshape(1, Dn).astype(jnp.float32), w.astype(jnp.bfloat16))
    return out[:M] if Mp != M else out


def pallas_ss2d_tail_lstm(shortcut, y, z, cx, gamma, beta, w, eps=1e-5):
    """SS2D tail fused with the VMRNN LSTM gate (last VSB block only)."""
    M, Dn = y.shape
    C = w.shape[1]
    TM, Mp, n = _row_tiling(M)
    ht, ct = pl.pallas_call(
        functools.partial(_ss2d_tail_lstm_kernel, eps=eps),
        grid=(n,),
        in_specs=[pl.BlockSpec((TM, C), lambda i: (i, 0)),
                  pl.BlockSpec((TM, Dn), lambda i: (i, 0)),
                  pl.BlockSpec((TM, Dn), lambda i: (i, 0)),
                  pl.BlockSpec((TM, C), lambda i: (i, 0)),
                  pl.BlockSpec((1, Dn), lambda i: (0, 0)),
                  pl.BlockSpec((1, Dn), lambda i: (0, 0)),
                  pl.BlockSpec((Dn, C), lambda i: (0, 0))],
        out_specs=(pl.BlockSpec((TM, C), lambda i: (i, 0)),
                   pl.BlockSpec((TM, C), lambda i: (i, 0))),
        out_shape=(jax.ShapeDtypeStruct((Mp, C), jnp.float32),
                   jax.ShapeDtypeStruct((Mp, C), jnp.float32)),
        compiler_params=_PAR1,
    )(_pad_rows(shortcut, Mp), _pad_rows(y, Mp), _pad_rows(z, Mp),
      _pad_rows(cx, Mp),
      gamma.reshape(1, Dn).astype(jnp.float32),
      beta.reshape(1, Dn).astype(jnp.float32), w.astype(jnp.bfloat16))
    if Mp != M:
        ht, ct = ht[:M], ct[:M]
    return ht, ct


# ---------------------------------------------------------------------------
# Depthwise 3x3 conv + SiLU (channels padded to 128 -> lane-aligned taps)
# ---------------------------------------------------------------------------
def _dwconv_silu_kernel(x_ref, w_ref, b_ref, o_ref, *, H, W, C):
    xt = x_ref[0].astype(jnp.float32)               # (H+2, (W+2)*C)
    wt = w_ref[...]                                  # (9, W*C)
    acc = jnp.zeros((H, W * C), jnp.float32) + b_ref[...]
    for ky in range(3):
        rows = xt[ky:ky + H, :]
        for kx in range(3):                          # kx*C is a multiple of 128
            acc = acc + rows[:, kx * C:(kx + W) * C] * wt[ky * 3 + kx:ky * 3 + kx + 1, :]
    acc = acc * jax.nn.sigmoid(acc)                  # fused SiLU
    o_ref[...] = acc[None].astype(o_ref.dtype)


def depthwise_conv_silu(x, w, b, out_dtype=jnp.bfloat16):
    """x: (B, H, W, C) NHWC, w: (3, 3, C) depthwise taps, b: (C,)."""
    B, H, W, C = x.shape
    Cp = _round_up(C, 128)          # lane-align tap slices + lane-dense stores
    wf = w.astype(jnp.float32)
    bf = b.astype(jnp.float32)
    if Cp != C:
        x = jnp.pad(x, ((0, 0), (0, 0), (0, 0), (0, Cp - C)))
        wf = jnp.pad(wf, ((0, 0), (0, 0), (0, Cp - C)))
        bf = jnp.pad(bf, ((0, Cp - C),))
    xp = jnp.pad(x, ((0, 0), (1, 1), (1, 1), (0, 0))).reshape(B, H + 2, (W + 2) * Cp)
    w_taps = jnp.stack([jnp.tile(wf[ky, kx], W)
                        for ky in range(3) for kx in range(3)])      # (9, W*Cp)
    b_t = jnp.tile(bf, W).reshape(1, W * Cp)
    out = pl.pallas_call(
        functools.partial(_dwconv_silu_kernel, H=H, W=W, C=Cp),
        grid=(B,),
        in_specs=[pl.BlockSpec((1, H + 2, (W + 2) * Cp), lambda i: (i, 0, 0)),
                  pl.BlockSpec((9, W * Cp), lambda i: (0, 0)),
                  pl.BlockSpec((1, W * Cp), lambda i: (0, 0))],
        out_specs=pl.BlockSpec((1, H, W * Cp), lambda i: (i, 0, 0)),
        out_shape=jax.ShapeDtypeStruct((B, H, W * Cp), out_dtype),
        compiler_params=_PAR1,
    )(xp, w_taps, b_t)
    out = out.reshape(B, H, W, Cp)
    return out[..., :C] if Cp != C else out


# ---------------------------------------------------------------------------
# K=4 direction projections: one pallas_call, no XLA-side transposes
# ---------------------------------------------------------------------------
def _dirproj_kernel(x_ref, w_ref, o_ref):
    acc = jnp.dot(x_ref[0, 0], w_ref[0], preferred_element_type=jnp.float32)
    o_ref[...] = acc.astype(o_ref.dtype)[None, None]


def pallas_dir_proj(xs, wc):
    """xs: (B, K, L, Dn); wc: (K, Dn, Dn + 2N) composed (x_proj . dt_proj | B | C)
    -> (B, K, L, Dn + 2N) in bf16."""
    B, K, L, Dn = xs.shape
    Nw = wc.shape[2]
    TM = _divisor_chunk(L, 256)
    n = L // TM
    return pl.pallas_call(
        _dirproj_kernel,
        grid=(B, K, n),
        in_specs=[pl.BlockSpec((1, 1, TM, Dn), lambda b, k, m: (b, k, m, 0)),
                  pl.BlockSpec((1, Dn, Nw), lambda b, k, m: (k, 0, 0))],
        out_specs=pl.BlockSpec((1, 1, TM, Nw), lambda b, k, m: (b, k, m, 0)),
        out_shape=jax.ShapeDtypeStruct((B, K, L, Nw), jnp.bfloat16),
        compiler_params=_PAR3,
    )(xs.astype(jnp.bfloat16), wc.astype(jnp.bfloat16))


# ---------------------------------------------------------------------------
# Selective scan: L-chunked grid, persistent (N, Dn) state, fused C-contraction
# ---------------------------------------------------------------------------
def _selective_scan_kernel(u_ref, proj_ref, A_ref, D_ref, db_ref, y_ref,
                           dA_ref, dBu_ref, c_sc, s_ref, *, LC, Dn, N):
    c_idx = pl.program_id(2)

    @pl.when(c_idx == 0)
    def _():
        s_ref[...] = jnp.zeros_like(s_ref)

    u = u_ref[0, 0].astype(jnp.float32)                    # (LC, Dn)
    pj = proj_ref[0, 0].astype(jnp.float32)                # (LC, Dn + 2N)
    dt = jax.nn.softplus(pj[:, :Dn] + db_ref[0])           # (LC, Dn)
    Bm = pj[:, Dn:Dn + N]                                  # (LC, N)
    Cm = pj[:, Dn + N:Dn + 2 * N]                          # (LC, N)
    A = A_ref[0]                                           # (N, Dn)

    # hoist transcendentals / outer products out of the serial recurrence
    dA_ref[...] = jnp.exp(dt[:, None, :] * A[None, :, :])            # (LC,N,Dn)
    dBu_ref[...] = (dt * u)[:, None, :] * Bm[:, :, None]             # (LC,N,Dn)

    d_row = D_ref[0]                                       # (1, Dn)
    s = s_ref[...]                                         # carried state (N, Dn)
    if LC <= 64:                                           # fully unrolled
        for l in range(LC):
            s = dA_ref[l] * s + dBu_ref[l]
            yl = jnp.dot(Cm[l:l + 1], s, preferred_element_type=jnp.float32)
            y_ref[0, 0, pl.ds(l, 1)] = yl + d_row * u[l:l + 1]
        s_ref[...] = s
    else:
        c_sc[...] = Cm

        def body(l, s):
            s = dA_ref[l] * s + dBu_ref[l]
            yl = jnp.dot(c_sc[pl.ds(l, 1)], s,
                         preferred_element_type=jnp.float32)
            ul = u_ref[0, 0, pl.ds(l, 1)].astype(jnp.float32)
            y_ref[0, 0, pl.ds(l, 1)] = yl + d_row * ul
            return s

        s_ref[...] = lax.fori_loop(0, LC, body, s, unroll=4)


def selective_scan(u, proj, A_t, Dskip, dbias, Dn, N):
    """u: (B, K, L, Dn); proj: (B, K, L, Dn + 2N) (dt|B|C, bf16 ok);
    A_t: (K, N, Dn); Dskip, dbias: (K, 1, Dn)  ->  y: (B, K, L, Dn) f32."""
    Bb, K, L, _ = u.shape
    LC = _divisor_chunk(L, 128)
    nL = L // LC
    return pl.pallas_call(
        functools.partial(_selective_scan_kernel, LC=LC, Dn=Dn, N=N),
        grid=(Bb, K, nL),
        in_specs=[
            pl.BlockSpec((1, 1, LC, Dn), lambda b, k, c: (b, k, c, 0)),
            pl.BlockSpec((1, 1, LC, Dn + 2 * N), lambda b, k, c: (b, k, c, 0)),
            pl.BlockSpec((1, N, Dn), lambda b, k, c: (k, 0, 0)),
            pl.BlockSpec((1, 1, Dn), lambda b, k, c: (k, 0, 0)),
            pl.BlockSpec((1, 1, Dn), lambda b, k, c: (k, 0, 0)),
        ],
        out_specs=pl.BlockSpec((1, 1, LC, Dn), lambda b, k, c: (b, k, c, 0)),
        out_shape=jax.ShapeDtypeStruct((Bb, K, L, Dn), jnp.float32),
        scratch_shapes=[pltpu.VMEM((LC, N, Dn), jnp.float32),
                        pltpu.VMEM((LC, N, Dn), jnp.float32),
                        pltpu.VMEM((LC, N), jnp.float32),
                        pltpu.VMEM((N, Dn), jnp.float32)],
        compiler_params=pltpu.CompilerParams(
            dimension_semantics=("parallel", "parallel", "arbitrary"),
            vmem_limit_bytes=48 * 1024 * 1024),
    )(u, proj, A_t.astype(jnp.float32), Dskip.astype(jnp.float32),
      dbias.astype(jnp.float32))


# ---------------------------------------------------------------------------
# Model blocks (orchestration; reshapes / flips stay in XLA)
# ---------------------------------------------------------------------------
def ss2d_core(xz, shortcut, p, B, H, W, cx=None):
    """SS2D after in_proj.  xz: (B*L, 2*Dn), shortcut: (B*L, C).
    Returns (B*L, C) or, when cx is given, the fused (Ht, Ct)."""
    L = H * W
    Dn = xz.shape[1] // 2
    xz = xz.reshape(B, H, W, 2 * Dn)
    xc, z = xz[..., :Dn], xz[..., Dn:]
    xconv = depthwise_conv_silu(xc, p['conv_w'], p['conv_b'])       # bf16 NHWC

    # four scan directions (row-major, col-major and their reverses)
    x_hw = xconv.reshape(B, L, Dn)                                  # l = h*W + w
    x_wh = jnp.transpose(xconv, (0, 2, 1, 3)).reshape(B, L, Dn)     # l = w*H + h
    xs = jnp.stack([x_hw, x_wh, x_hw[:, ::-1, :], x_wh[:, ::-1, :]], axis=1)

    R = p['dt_proj_w'].shape[2]
    N = (p['x_proj_w'].shape[1] - R) // 2
    # compose x_proj[:, :R] @ dt_proj (exact: no bias between the two projections)
    w_dt = jnp.einsum('krd,knr->kdn', p['x_proj_w'][:, :R, :], p['dt_proj_w'])
    w_B = jnp.transpose(p['x_proj_w'][:, R:R + N, :], (0, 2, 1))
    w_C = jnp.transpose(p['x_proj_w'][:, R + N:, :], (0, 2, 1))
    wc = jnp.concatenate([w_dt, w_B, w_C], axis=2)                  # (K,Dn,Dn+2N)

    proj = pallas_dir_proj(xs, wc)                                  # (B,K,L,Dn+2N)

    K = 4
    A = -jnp.exp(p['A_logs'])                                       # (K*Dn, N)
    A_t = jnp.transpose(A.reshape(K, Dn, N), (0, 2, 1))             # (K,N,Dn)
    Dskip = p['Ds'].reshape(K, 1, Dn)
    dbias = p['dt_proj_b'].reshape(K, 1, Dn)

    ys = selective_scan(xs, proj, A_t, Dskip, dbias, Dn, N)         # (B,K,L,Dn)

    y1 = ys[:, 0]
    y2 = ys[:, 2][:, ::-1, :]
    y3 = jnp.transpose(ys[:, 3][:, ::-1, :].reshape(B, W, H, Dn),
                       (0, 2, 1, 3)).reshape(B, L, Dn)
    y4 = jnp.transpose(ys[:, 1].reshape(B, W, H, Dn),
                       (0, 2, 1, 3)).reshape(B, L, Dn)
    y = (y1 + y2 + y3 + y4).reshape(B * L, Dn)
    z2d = z.reshape(B * L, Dn)

    if cx is None:
        return pallas_ss2d_tail(shortcut, y, z2d, p['out_norm_g'],
                                p['out_norm_b'], p['out_proj_w'])
    return pallas_ss2d_tail_lstm(shortcut, y, z2d, cx, p['out_norm_g'],
                                 p['out_norm_b'], p['out_proj_w'])


def vsb_forward(x, hx, p, H, W, cx=None):
    B, L, C = x.shape
    sp = p['ss2d']
    xf = x.reshape(B * L, C)
    if hx is not None:
        # Linear(cat(ln_1(x), ln_1(hx))) fused, then SS2D in_proj; both bf16 HBM.
        xn = pallas_ln2_linear(xf, hx.reshape(B * L, C),
                               p['ln1_g'], p['ln1_b'],
                               p['lin_w'][:C], p['lin_w'][C:], p['lin_b'],
                               eps=1e-6, out_dtype=jnp.bfloat16)
        xz = pallas_linear(xn, sp['in_proj_w'], out_dtype=jnp.bfloat16)
    else:
        # ln_1 fused directly into the SS2D in_proj matmul
        xz = pallas_ln_linear(xf, p['ln1_g'], p['ln1_b'], sp['in_proj_w'],
                              eps=1e-6, out_dtype=jnp.bfloat16)
    res = ss2d_core(xz, xf, sp, B, H, W,
                    cx=None if cx is None else cx.reshape(B * L, C))
    if cx is None:
        return res.reshape(B, L, C)
    ht, ct = res
    return ht.reshape(B, L, C), ct.reshape(B, L, C)


def vmrnn_cell_forward(xt, hidden, vsb_params, H, W):
    B, L, C = xt.shape
    if hidden is None:
        hx = jnp.zeros((B, L, C), jnp.float32)
        cx = jnp.zeros((B, L, C), jnp.float32)
    else:
        hx, cx = hidden
    x = xt
    nb = len(vsb_params)
    for i, p in enumerate(vsb_params):
        h_in = hx if i == 0 else None
        if i == nb - 1:
            # LSTM gate fused into the last block's SS2D tail
            Ht, Ct = vsb_forward(x, h_in, p, H, W, cx=cx)
            return Ht, (Ht, Ct)
        x = vsb_forward(x, h_in, p, H, W)


def patch_expanding(x, p, H, W):
    B, L, C = x.shape
    xe = pallas_linear(x.reshape(B * L, C), p['expand_w'],
                       out_dtype=jnp.bfloat16)                      # (BL, 2C)
    c = (2 * C) // 4
    xe = xe.reshape(B, H, W, 2, 2, c)
    xe = jnp.transpose(xe, (0, 1, 3, 2, 4, 5)).reshape(B, 4 * H * W, c)
    return pallas_layernorm(xe, p['norm_g'], p['norm_b'], eps=1e-5)


def patch_inflated(x, p, H, W):
    """ConvTranspose2d(k=3, s=2, p=1, op=1) + sigmoid via the exact 4-phase
    (sub-pixel) decomposition: one (BHW, 4C) x (4C, 4*Cout) fused matmul."""
    B, L, C = x.shape
    w = p['convT_w']                        # (C_in, C_out, 3, 3) torch layout
    Cout = w.shape[1]
    xv = x.reshape(B, H, W, C).astype(jnp.bfloat16)
    xpad = jnp.pad(xv, ((0, 0), (0, 1), (0, 1), (0, 0)))
    x00 = xpad[:, :H, :W]
    x01 = xpad[:, :H, 1:W + 1]
    x10 = xpad[:, 1:H + 1, :W]
    x11 = xpad[:, 1:H + 1, 1:W + 1]
    nb = jnp.concatenate([x00, x01, x10, x11], axis=-1).reshape(B * H * W, 4 * C)

    Z = jnp.zeros((C, Cout), w.dtype)
    wk = lambda ky, kx: w[:, :, ky, kx]                     # (C, Cout)
    col00 = jnp.concatenate([wk(1, 1), Z, Z, Z], axis=0)
    col01 = jnp.concatenate([wk(1, 2), wk(1, 0), Z, Z], axis=0)
    col10 = jnp.concatenate([wk(2, 1), Z, wk(0, 1), Z], axis=0)
    col11 = jnp.concatenate([wk(2, 2), wk(2, 0), wk(0, 2), wk(0, 0)], axis=0)
    wph = jnp.concatenate([col00, col01, col10, col11], axis=1)   # (4C, 4*Cout)
    bph = jnp.tile(p['convT_b'], 4)                               # (4*Cout,)

    ph = pallas_linear(nb, wph, bph, activation="sigmoid")        # (BHW, 4*Cout)
    ph = ph.reshape(B, H, W, 2, 2, Cout)
    out = jnp.transpose(ph, (0, 1, 3, 2, 4, 5)).reshape(B, 2 * H, 2 * W, Cout)
    return jnp.transpose(out, (0, 3, 1, 2))                       # NCHW like PyTorch


def upsample_forward(cfg, params, x, states_up=None):
    """UpSample.forward: returns (hidden_states_up, sigmoid(ConvT(x)))."""
    H0, W0 = cfg['feature_resolution']
    nl = len(cfg['depths_upsample'])
    hidden_states_up = []
    for i in range(nl):
        H, W = H0 // 2 ** (nl - i), W0 // 2 ** (nl - i)
        st = states_up[i] if states_up is not None else None
        x, hs = vmrnn_cell_forward(x, st, params['up'][i], H, W)
        x = patch_expanding(x, params['expand'][i], H, W)
        hidden_states_up.append(hs)
    out = patch_inflated(x, params['inflate'], H0, W0)            # sigmoid fused
    return hidden_states_up, out


# ---------------------------------------------------------------------------
# Deterministic synthetic parameters (shapes from the module __init__)
# ---------------------------------------------------------------------------
def _normal(key, shape, scale=0.02):
    return scale * jax.random.normal(key, shape, jnp.float32)


def init_ss2d(key, d_model, d_state):
    d_inner = 2 * d_model
    dt_rank = max(1, math.ceil(d_model / 16))
    K = 4
    ks = jax.random.split(key, 8)
    return dict(
        in_proj_w=_normal(ks[0], (d_model, 2 * d_inner)),
        conv_w=_normal(ks[1], (3, 3, d_inner), 0.1),
        conv_b=_normal(ks[2], (d_inner,), 0.1),
        x_proj_w=_normal(ks[3], (K, dt_rank + 2 * d_state, d_inner)),
        dt_proj_w=_normal(ks[4], (K, d_inner, dt_rank), 0.1),
        dt_proj_b=_normal(ks[5], (K, d_inner), 0.1),
        A_logs=jnp.log(jnp.tile(jnp.arange(1, d_state + 1, dtype=jnp.float32),
                                (K * d_inner, 1))),
        Ds=jnp.ones((K * d_inner,), jnp.float32),
        out_norm_g=jnp.ones((d_inner,), jnp.float32),
        out_norm_b=jnp.zeros((d_inner,), jnp.float32),
        out_proj_w=_normal(ks[6], (d_inner, d_model)),
    )


def init_vsb(key, dim, d_state):
    k1, k2, k3 = jax.random.split(key, 3)
    return dict(
        ln1_g=jnp.ones((dim,), jnp.float32),
        ln1_b=jnp.zeros((dim,), jnp.float32),
        lin_w=_normal(k1, (2 * dim, dim)),
        lin_b=_normal(k2, (dim,)),
        ss2d=init_ss2d(k3, dim, d_state),
    )


def init_upsample(key, cfg):
    E = cfg['embed_dim']
    d_state = cfg['d_state']
    nl = len(cfg['depths_upsample'])
    total_keys = sum(cfg['depths_upsample']) + nl + 2
    keys = iter(jax.random.split(key, total_keys))
    params = dict(up=[], expand=[])
    for i in range(nl):
        dim = E * 2 ** (nl - i)
        depth = cfg['depths_upsample'][nl - 1 - i]
        params['up'].append(
            [init_vsb(next(keys), dim, d_state) for _ in range(depth)])
        params['expand'].append(dict(
            expand_w=_normal(next(keys), (dim, 2 * dim)),
            norm_g=jnp.ones((dim // 2,), jnp.float32),
            norm_b=jnp.zeros((dim // 2,), jnp.float32)))
    # PatchInflated: out_chans=None -> in_chans = embed_dim
    params['inflate'] = dict(
        convT_w=_normal(next(keys), (E, E, 3, 3)),   # torch ConvTranspose2d layout
        convT_b=_normal(next(keys), (E,)))
    return params


# ---------------------------------------------------------------------------
if __name__ == "__main__":
    cfg = dict(embed_dim=16, feature_resolution=(8, 8),
               depths_upsample=[1], d_state=16)
    key = jax.random.PRNGKey(0)
    kp, kx = jax.random.split(key)
    params = init_upsample(kp, cfg)

    B = 2
    H0, W0 = cfg['feature_resolution']
    nl = len(cfg['depths_upsample'])
    H_in, W_in = H0 // 2 ** nl, W0 // 2 ** nl
    C_in = cfg['embed_dim'] * 2 ** nl
    x = jax.random.normal(kx, (B, H_in * W_in, C_in), jnp.float32)

    fwd = jax.jit(functools.partial(upsample_forward, cfg))
    hidden_up, out = fwd(params, x)
    out = jax.block_until_ready(out)

    assert out.shape == (B, cfg['embed_dim'], 2 * H0, 2 * W0)
    assert bool(jnp.all(jnp.isfinite(out)))
    print("KERNEL_OK")
</pallas_src>

<mosaic_0001>
module attributes {stable_mosaic.version = 11 : i64} {
  func.func @_matmul_kernel(%arg0: i32, %arg1: memref<32x32xbf16, #tpu.memory_space<vmem>>, %arg2: memref<32x128xbf16, #tpu.memory_space<vmem>>, %arg3: memref<1x128xf32, #tpu.memory_space<vmem>>, %arg4: memref<32x128xbf16, #tpu.memory_space<vmem>>) attributes {dimension_semantics = [#tpu.dimension_semantics<parallel>], iteration_bounds = array<i64: 1>, scalar_prefetch = 0 : i64, scratch_operands = 0 : i64, tpu.core_type = #tpu.core_type<tc>, window_params = [{transform_indices = @transform_0, window_bounds = array<i64: 32, 32>}, {pipeline_mode = #tpu.pipeline_mode<synchronous>, transform_indices = @transform_1, window_bounds = array<i64: 32, 128>}, {pipeline_mode = #tpu.pipeline_mode<synchronous>, transform_indices = @transform_2, window_bounds = array<i64: 1, 128>}, {transform_indices = @transform_3, window_bounds = array<i64: 32, 128>}]} {
    %c0 = arith.constant 0 : index
    %c0_0 = arith.constant 0 : index
    %0 = vector.load %arg1[%c0, %c0_0] : memref<32x32xbf16, #tpu.memory_space<vmem>>, vector<32x32xbf16>
    %c0_1 = arith.constant 0 : index
    %c0_2 = arith.constant 0 : index
    %1 = vector.load %arg2[%c0_1, %c0_2] : memref<32x128xbf16, #tpu.memory_space<vmem>>, vector<32x128xbf16>
    %cst = arith.constant dense<0.000000e+00> : vector<32x128xf32>
    %2 = tpu.matmul %0, %1, %cst {dimension_numbers = #tpu.dot_dimension_numbers<[1], [0], [0], [1], [0, 0, 1, 1], [], []>} : vector<32x32xbf16>, vector<32x128xbf16>, vector<32x128xf32> -> vector<32x128xf32>
    %c0_3 = arith.constant 0 : index
    %c0_4 = arith.constant 0 : index
    %3 = vector.load %arg3[%c0_3, %c0_4] : memref<1x128xf32, #tpu.memory_space<vmem>>, vector<1x128xf32>
    %4 = vector.broadcast %3 : vector<1x128xf32> to vector<32x128xf32>
    %5 = arith.addf %2, %4 : vector<32x128xf32>
    %6 = arith.truncf %5 : vector<32x128xf32> to vector<32x128xbf16>
    %c0_5 = arith.constant 0 : index
    %c0_6 = arith.constant 0 : index
    %7 = vector.load %arg4[%c0_5, %c0_6] : memref<32x128xbf16, #tpu.memory_space<vmem>>, vector<32x128xbf16>
    tpu.vector_store %arg4[%c0_5, %c0_6], %6 {strides = array<i32>} : memref<32x128xbf16, #tpu.memory_space<vmem>>, vector<32x128xbf16>,
    return
  }
  func.func @transform_0(%arg0: i32) -> (i32, i32) {
    %c0_i32 = arith.constant 0 : i32
    %c0_i32_0 = arith.constant 0 : i32
    return %arg0, %c0_i32 : i32, i32
  }
  func.func @transform_1(%arg0: i32) -> (i32, i32) {
    %c0_i32 = arith.constant 0 : i32
    %c0_i32_0 = arith.constant 0 : i32
    %c0_i32_1 = arith.constant 0 : i32
    return %c0_i32, %c0_i32_0 : i32, i32
  }
  func.func @transform_2(%arg0: i32) -> (i32, i32) {
    %c0_i32 = arith.constant 0 : i32
    %c0_i32_0 = arith.constant 0 : i32
    %c0_i32_1 = arith.constant 0 : i32
    return %c0_i32, %c0_i32_0 : i32, i32
  }
  func.func @transform_3(%arg0: i32) -> (i32, i32) {
    %c0_i32 = arith.constant 0 : i32
    %c0_i32_0 = arith.constant 0 : i32
    return %arg0, %c0_i32 : i32, i32
  }
}

module attributes {stable_mosaic.version = 11 : i64} {
  func.func @_ln2_matmul_kernel(%arg0: i32, %arg1: memref<32x32xf32, #tpu.memory_space<vmem>>, %arg2: memref<32x32xf32, #tpu.memory_space<vmem>>, %arg3: memref<1x32xf32, #tpu.memory_space<vmem>>, %arg4: memref<1x32xf32, #tpu.memory_space<vmem>>, %arg5: memref<32x32xbf16, #tpu.memory_space<vmem>>, %arg6: memref<32x32xbf16, #tpu.memory_space<vmem>>, %arg7: memref<1x32xf32, #tpu.memory_space<vmem>>, %arg8: memref<32x32xbf16, #tpu.memory_space<vmem>>) attributes {dimension_semantics = [#tpu.dimension_semantics<parallel>], iteration_bounds = array<i64: 1>, scalar_prefetch = 0 : i64, scratch_operands = 0 : i64, tpu.core_type = #tpu.core_type<tc>, window_params = [{transform_indices = @transform_0, window_bounds = array<i64: 32, 32>}, {transform_indices = @transform_1, window_bounds = array<i64: 32, 32>}, {pipeline_mode = #tpu.pipeline_mode<synchronous>, transform_indices = @transform_2, window_bounds = array<i64: 1, 32>}, {pipeline_mode = #tpu.pipeline_mode<synchronous>, transform_indices = @transform_3, window_bounds = array<i64: 1, 32>}, {pipeline_mode = #tpu.pipeline_mode<synchronous>, transform_indices = @transform_4, window_bounds = array<i64: 32, 32>}, {pipeline_mode = #tpu.pipeline_mode<synchronous>, transform_indices = @transform_5, window_bounds = array<i64: 32, 32>}, {pipeline_mode = #tpu.pipeline_mode<synchronous>, transform_indices = @transform_6, window_bounds = array<i64: 1, 32>}, {transform_indices = @transform_7, window_bounds = array<i64: 32, 32>}]} {
    %c0 = arith.constant 0 : index
    %c0_0 = arith.constant 0 : index
    %0 = vector.load %arg1[%c0, %c0_0] : memref<32x32xf32, #tpu.memory_space<vmem>>, vector<32x32xf32>
    %cst = arith.constant dense<0.000000e+00> : vector<32xf32>
    %1 = vector.multi_reduction <add>, %0, %cst [1] : vector<32x32xf32> to vector<32xf32>
    %2 = vector.shape_cast %1 : vector<32xf32> to vector<32x1xf32>
    %cst_1 = arith.constant 3.200000e+01 : f32
    %3 = vector.broadcast %cst_1 : f32 to vector<32x1xf32>
    %4 = arith.divf %2, %3 : vector<32x1xf32>
    %5 = vector.broadcast %4 : vector<32x1xf32> to vector<32x32xf32>
    %6 = arith.subf %0, %5 : vector<32x32xf32>
    %7 = arith.mulf %6, %6 : vector<32x32xf32>
    %cst_2 = arith.constant dense<0.000000e+00> : vector<32xf32>
    %8 = vector.multi_reduction <add>, %7, %cst_2 [1] : vector<32x32xf32> to vector<32xf32>
    %9 = vector.shape_cast %8 : vector<32xf32> to vector<32x1xf32>
    %cst_3 = arith.constant 3.200000e+01 : f32
    %10 = vector.broadcast %cst_3 : f32 to vector<32x1xf32>
    %11 = arith.divf %9, %10 : vector<32x1xf32>
    %cst_4 = arith.constant 9.99999997E-7 : f32
    %12 = vector.broadcast %cst_4 : f32 to vector<32x1xf32>
    %13 = arith.addf %11, %12 : vector<32x1xf32>
    %14 = math.rsqrt %13 : vector<32x1xf32>
    %15 = vector.broadcast %14 : vector<32x1xf32> to vector<32x32xf32>
    %16 = arith.mulf %6, %15 : vector<32x32xf32>
    %c0_5 = arith.constant 0 : index
    %c0_6 = arith.constant 0 : index
    %17 = vector.load %arg3[%c0_5, %c0_6] : memref<1x32xf32, #tpu.memory_space<vmem>>, vector<1x32xf32>
    %18 = vector.broadcast %17 : vector<1x32xf32> to vector<32x32xf32>
    %19 = arith.mulf %16, %18 : vector<32x32xf32>
    %c0_7 = arith.constant 0 : index
    %c0_8 = arith.constant 0 : index
    %20 = vector.load %arg4[%c0_7, %c0_8] : memref<1x32xf32, #tpu.memory_space<vmem>>, vector<1x32xf32>
    %21 = vector.broadcast %20 : vector<1x32xf32> to vector<32x32xf32>
    %22 = arith.addf %19, %21 : vector<32x32xf32>
    %23 = arith.truncf %22 : vector<32x32xf32> to vector<32x32xbf16>
    %c0_9 = arith.constant 0 : index
    %c0_10 = arith.constant 0 : index
    %24 = vector.load %arg2[%c0_9, %c0_10] : memref<32x32xf32, #tpu.memory_space<vmem>>, vector<32x32xf32>
    %cst_11 = arith.constant dense<0.000000e+00> : vector<32xf32>
    %25 = vector.multi_reduction <add>, %24, %cst_11 [1] : vector<32x32xf32> to vector<32xf32>
    %26 = vector.shape_cast %25 : vector<32xf32> to vector<32x1xf32>
    %cst_12 = arith.constant 3.200000e+01 : f32
    %27 = vector.broadcast %cst_12 : f32 to vector<32x1xf32>
    %28 = arith.divf %26, %27 : vector<32x1xf32>
    %29 = vector.broadcast %28 : vector<32x1xf32> to vector<32x32xf32>
    %30 = arith.subf %24, %29 : vector<32x32xf32>
    %31 = arith.mulf %30, %30 : vector<32x32xf32>
    %cst_13 = arith.constant dense<0.000000e+00> : vector<32xf32>
    %32 = vector.multi_reduction <add>, %31, %cst_13 [1] : vector<32x32xf32> to vector<32xf32>
    %33 = vector.shape_cast %32 : vector<32xf32> to vector<32x1xf32>
    %cst_14 = arith.constant 3.200000e+01 : f32
    %34 = vector.broadcast %cst_14 : f32 to vector<32x1xf32>
    %35 = arith.divf %33, %34 : vector<32x1xf32>
    %cst_15 = arith.constant 9.99999997E-7 : f32
    %36 = vector.broadcast %cst_15 : f32 to vector<32x1xf32>
    %37 = arith.addf %35, %36 : vector<32x1xf32>
    %38 = math.rsqrt %37 : vector<32x1xf32>
    %39 = vector.broadcast %38 : vector<32x1xf32> to vector<32x32xf32>
    %40 = arith.mulf %30, %39 : vector<32x32xf32>
    %c0_16 = arith.constant 0 : index
    %c0_17 = arith.constant 0 : index
    %41 = vector.load %arg3[%c0_16, %c0_17] : memref<1x32xf32, #tpu.memory_space<vmem>>, vector<1x32xf32>
    %42 = vector.broadcast %41 : vector<1x32xf32> to vector<32x32xf32>
    %43 = arith.mulf %40, %42 : vector<32x32xf32>
    %c0_18 = arith.constant 0 : index
    %c0_19 = arith.constant 0 : index
    %44 = vector.load %arg4[%c0_18, %c0_19] : memref<1x32xf32, #tpu.memory_space<vmem>>, vector<1x32xf32>
    %45 = vector.broadcast %44 : vector<1x32xf32> to vector<32x32xf32>
    %46 = arith.addf %43, %45 : vector<32x32xf32>
    %47 = arith.truncf %46 : vector<32x32xf32> to vector<32x32xbf16>
    %c0_20 = arith.constant 0 : index
    %c0_21 = arith.constant 0 : index
    %48 = vector.load %arg5[%c0_20, %c0_21] : memref<32x32xbf16, #tpu.memory_space<vmem>>, vector<32x32xbf16>
    %cst_22 = arith.constant dense<0.000000e+00> : vector<32x32xf32>
    %49 = tpu.matmul %23, %48, %cst_22 {dimension_numbers = #tpu.dot_dimension_numbers<[1], [0], [0], [1], [0, 0, 1, 1], [], []>} : vector<32x32xbf16>, vector<32x32xbf16>, vector<32x32xf32> -> vector<32x32xf32>
    %c0_23 = arith.constant 0 : index
    %c0_24 = arith.constant 0 : index
    %50 = vector.load %arg6[%c0_23, %c0_24] : memref<32x32xbf16, #tpu.memory_space<vmem>>, vector<32x32xbf16>
    %cst_25 = arith.constant dense<0.000000e+00> : vector<32x32xf32>
    %51 = tpu.matmul %47, %50, %cst_25 {dimension_numbers = #tpu.dot_dimension_numbers<[1], [0], [0], [1], [0, 0, 1, 1], [], []>} : vector<32x32xbf16>, vector<32x32xbf16>, vector<32x32xf32> -> vector<32x32xf32>
    %52 = arith.addf %49, %51 : vector<32x32xf32>
    %c0_26 = arith.constant 0 : index
    %c0_27 = arith.constant 0 : index
    %53 = vector.load %arg7[%c0_26, %c0_27] : memref<1x32xf32, #tpu.memory_space<vmem>>, vector<1x32xf32>
    %54 = vector.broadcast %53 : vector<1x32xf32> to vector<32x32xf32>
    %55 = arith.addf %52, %54 : vector<32x32xf32>
    %56 = arith.truncf %55 : vector<32x32xf32> to vector<32x32xbf16>
    %c0_28 = arith.constant 0 : index
    %c0_29 = arith.constant 0 : index
    %57 = vector.load %arg8[%c0_28, %c0_29] : memref<32x32xbf16, #tpu.memory_space<vmem>>, vector<32x32xbf16>
    tpu.vector_store %arg8[%c0_28, %c0_29], %56 {strides = array<i32>} : memref<32x32xbf16, #tpu.memory_space<vmem>>, vector<32x32xbf16>,
    return
  }
  func.func @transform_0(%arg0: i32) -> (i32, i32) {
    %c0_i32 = arith.constant 0 : i32
    %c0_i32_0 = arith.constant 0 : i32
    return %arg0, %c0_i32 : i32, i32
  }
  func.func @transform_1(%arg0: i32) -> (i32, i32) {
    %c0_i32 = arith.constant 0 : i32
    %c0_i32_0 = arith.constant 0 : i32
    return %arg0, %c0_i32 : i32, i32
  }
  func.func @transform_2(%arg0: i32) -> (i32, i32) {
    %c0_i32 = arith.constant 0 : i32
    %c0_i32_0 = arith.constant 0 : i32
    %c0_i32_1 = arith.constant 0 : i32
    return %c0_i32, %c0_i32_0 : i32, i32
  }
  func.func @transform_3(%arg0: i32) -> (i32, i32) {
    %c0_i32 = arith.constant 0 : i32
    %c0_i32_0 = arith.constant 0 : i32
    %c0_i32_1 = arith.constant 0 : i32
    return %c0_i32, %c0_i32_0 : i32, i32
  }
  func.func @transform_4(%arg0: i32) -> (i32, i32) {
    %c0_i32 = arith.constant 0 : i32
    %c0_i32_0 = arith.constant 0 : i32
    %c0_i32_1 = arith.constant 0 : i32
    return %c0_i32, %c0_i32_0 : i32, i32
  }
  func.func @transform_5(%arg0: i32) -> (i32, i32) {
    %c0_i32 = arith.constant 0 : i32
    %c0_i32_0 = arith.constant 0 : i32
    %c0_i32_1 = arith.constant 0 : i32
    return %c0_i32, %c0_i32_0 : i32, i32
  }
  func.func @transform_6(%arg0: i32) -> (i32, i32) {
    %c0_i32 = arith.constant 0 : i32
    %c0_i32_0 = arith.constant 0 : i32
    %c0_i32_1 = arith.constant 0 : i32
    return %c0_i32, %c0_i32_0 : i32, i32
  }
  func.func @transform_7(%arg0: i32) -> (i32, i32) {
    %c0_i32 = arith.constant 0 : i32
    %c0_i32_0 = arith.constant 0 : i32
    return %arg0, %c0_i32 : i32, i32
  }
}

module attributes {stable_mosaic.version = 11 : i64} {
  func.func @_dwconv_silu_kernel(%arg0: i32, %arg1: memref<1x6x768xbf16, #tpu.memory_space<vmem>>, %arg2: memref<9x512xf32, #tpu.memory_space<vmem>>, %arg3: memref<1x512xf32, #tpu.memory_space<vmem>>, %arg4: memref<1x4x512xbf16, #tpu.memory_space<vmem>>) attributes {dimension_semantics = [#tpu.dimension_semantics<parallel>], iteration_bounds = array<i64: 2>, scalar_prefetch = 0 : i64, scratch_operands = 0 : i64, tpu.core_type = #tpu.core_type<tc>, window_params = [{transform_indices = @transform_0, window_bounds = array<i64: 1, 6, 768>}, {pipeline_mode = #tpu.pipeline_mode<synchronous>, transform_indices = @transform_1, window_bounds = array<i64: 9, 512>}, {pipeline_mode = #tpu.pipeline_mode<synchronous>, transform_indices = @transform_2, window_bounds = array<i64: 1, 512>}, {transform_indices = @transform_3, window_bounds = array<i64: 1, 4, 512>}]} {
    %c0 = arith.constant 0 : index
    %c0_0 = arith.constant 0 : index
    %c0_1 = arith.constant 0 : index
    %0 = vector.load %arg1[%c0, %c0_0, %c0_1] : memref<1x6x768xbf16, #tpu.memory_space<vmem>>, vector<1x6x768xbf16>
    %1 = vector.shape_cast %0 : vector<1x6x768xbf16> to vector<6x768xbf16>
    %2 = arith.extf %1 : vector<6x768xbf16> to vector<6x768xf32>
    %c0_2 = arith.constant 0 : index
    %c0_3 = arith.constant 0 : index
    %3 = vector.load %arg2[%c0_2, %c0_3] : memref<9x512xf32, #tpu.memory_space<vmem>>, vector<9x512xf32>
    %cst = arith.constant 0.000000e+00 : f32
    %4 = vector.broadcast %cst : f32 to vector<4x512xf32>
    %c0_4 = arith.constant 0 : index
    %c0_5 = arith.constant 0 : index
    %5 = vector.load %arg3[%c0_4, %c0_5] : memref<1x512xf32, #tpu.memory_space<vmem>>, vector<1x512xf32>
    %6 = vector.broadcast %5 : vector<1x512xf32> to vector<4x512xf32>
    %7 = arith.addf %4, %6 : vector<4x512xf32>
    %8 = vector.extract_strided_slice %2 {offsets = [0, 0], sizes = [4, 768], strides = [1, 1]} : vector<6x768xf32> to vector<4x768xf32>
    %9 = vector.extract_strided_slice %8 {offsets = [0, 0], sizes = [4, 512], strides = [1, 1]} : vector<4x768xf32> to vector<4x512xf32>
    %10 = vector.extract_strided_slice %3 {offsets = [0, 0], sizes = [1, 512], strides = [1, 1]} : vector<9x512xf32> to vector<1x512xf32>
    %11 = vector.broadcast %10 : vector<1x512xf32> to vector<4x512xf32>
    %12 = arith.mulf %9, %11 : vector<4x512xf32>
    %13 = arith.addf %7, %12 : vector<4x512xf32>
    %14 = vector.extract_strided_slice %8 {offsets = [0, 128], sizes = [4, 512], strides = [1, 1]} : vector<4x768xf32> to vector<4x512xf32>
    %15 = vector.extract_strided_slice %3 {offsets = [1, 0], sizes = [1, 512], strides = [1, 1]} : vector<9x512xf32> to vector<1x512xf32>
    %16 = vector.broadcast %15 : vector<1x512xf32> to vector<4x512xf32>
    %17 = arith.mulf %14, %16 : vector<4x512xf32>
    %18 = arith.addf %13, %17 : vector<4x512xf32>
    %19 = vector.extract_strided_slice %8 {offsets = [0, 256], sizes = [4, 512], strides = [1, 1]} : vector<4x768xf32> to vector<4x512xf32>
    %20 = vector.extract_strided_slice %3 {offsets = [2, 0], sizes = [1, 512], strides = [1, 1]} : vector<9x512xf32> to vector<1x512xf32>
    %21 = vector.broadcast %20 : vector<1x512xf32> to vector<4x512xf32>
    %22 = arith.mulf %19, %21 : vector<4x512xf32>
    %23 = arith.addf %18, %22 : vector<4x512xf32>
    %24 = vector.extract_strided_slice %2 {offsets = [1, 0], sizes = [4, 768], strides = [1, 1]} : vector<6x768xf32> to vector<4x768xf32>
    %25 = vector.extract_strided_slice %24 {offsets = [0, 0], sizes = [4, 512], strides = [1, 1]} : vector<4x768xf32> to vector<4x512xf32>
    %26 = vector.extract_strided_slice %3 {offsets = [3, 0], sizes = [1, 512], strides = [1, 1]} : vector<9x512xf32> to vector<1x512xf32>
    %27 = vector.broadcast %26 : vector<1x512xf32> to vector<4x512xf32>
    %28 = arith.mulf %25, %27 : vector<4x512xf32>
    %29 = arith.addf %23, %28 : vector<4x512xf32>
    %30 = vector.extract_strided_slice %24 {offsets = [0, 128], sizes = [4, 512], strides = [1, 1]} : vector<4x768xf32> to vector<4x512xf32>
    %31 = vector.extract_strided_slice %3 {offsets = [4, 0], sizes = [1, 512], strides = [1, 1]} : vector<9x512xf32> to vector<1x512xf32>
    %32 = vector.broadcast %31 : vector<1x512xf32> to vector<4x512xf32>
    %33 = arith.mulf %30, %32 : vector<4x512xf32>
    %34 = arith.addf %29, %33 : vector<4x512xf32>
    %35 = vector.extract_strided_slice %24 {offsets = [0, 256], sizes = [4, 512], strides = [1, 1]} : vector<4x768xf32> to vector<4x512xf32>
    %36 = vector.extract_strided_slice %3 {offsets = [5, 0], sizes = [1, 512], strides = [1, 1]} : vector<9x512xf32> to vector<1x512xf32>
    %37 = vector.broadcast %36 : vector<1x512xf32> to vector<4x512xf32>
    %38 = arith.mulf %35, %37 : vector<4x512xf32>
    %39 = arith.addf %34, %38 : vector<4x512xf32>
    %40 = vector.extract_strided_slice %2 {offsets = [2, 0], sizes = [4, 768], strides = [1, 1]} : vector<6x768xf32> to vector<4x768xf32>
    %41 = vector.extract_strided_slice %40 {offsets = [0, 0], sizes = [4, 512], strides = [1, 1]} : vector<4x768xf32> to vector<4x512xf32>
    %42 = vector.extract_strided_slice %3 {offsets = [6, 0], sizes = [1, 512], strides = [1, 1]} : vector<9x512xf32> to vector<1x512xf32>
    %43 = vector.broadcast %42 : vector<1x512xf32> to vector<4x512xf32>
    %44 = arith.mulf %41, %43 : vector<4x512xf32>
    %45 = arith.addf %39, %44 : vector<4x512xf32>
    %46 = vector.extract_strided_slice %40 {offsets = [0, 128], sizes = [4, 512], strides = [1, 1]} : vector<4x768xf32> to vector<4x512xf32>
    %47 = vector.extract_strided_slice %3 {offsets = [7, 0], sizes = [1, 512], strides = [1, 1]} : vector<9x512xf32> to vector<1x512xf32>
    %48 = vector.broadcast %47 : vector<1x512xf32> to vector<4x512xf32>
    %49 = arith.mulf %46, %48 : vector<4x512xf32>
    %50 = arith.addf %45, %49 : vector<4x512xf32>
    %51 = vector.extract_strided_slice %40 {offsets = [0, 256], sizes = [4, 512], strides = [1, 1]} : vector<4x768xf32> to vector<4x512xf32>
    %52 = vector.extract_strided_slice %3 {offsets = [8, 0], sizes = [1, 512], strides = [1, 1]} : vector<9x512xf32> to vector<1x512xf32>
    %53 = vector.broadcast %52 : vector<1x512xf32> to vector<4x512xf32>
    %54 = arith.mulf %51, %53 : vector<4x512xf32>
    %55 = arith.addf %50, %54 : vector<4x512xf32>
    %56 = arith.negf %55 : vector<4x512xf32>
    %57 = math.exp %56 : vector<4x512xf32>
    %cst_6 = arith.constant 1.000000e+00 : f32
    %58 = vector.broadcast %cst_6 : f32 to vector<4x512xf32>
    %59 = arith.addf %58, %57 : vector<4x512xf32>
    %60 = arith.divf %58, %59 : vector<4x512xf32>
    %61 = arith.mulf %55, %60 : vector<4x512xf32>
    %62 = vector.shape_cast %61 : vector<4x512xf32> to vector<1x4x512xf32>
    %63 = arith.truncf %62 : vector<1x4x512xf32> to vector<1x4x512xbf16>
    %c0_7 = arith.constant 0 : index
    %c0_8 = arith.constant 0 : index
    %c0_9 = arith.constant 0 : index
    %64 = vector.load %arg4[%c0_7, %c0_8, %c0_9] : memref<1x4x512xbf16, #tpu.memory_space<vmem>>, vector<1x4x512xbf16>
    tpu.vector_store %arg4[%c0_7, %c0_8, %c0_9], %63 {strides = array<i32>} : memref<1x4x512xbf16, #tpu.memory_space<vmem>>, vector<1x4x512xbf16>,
    return
  }
  func.func @transform_0(%arg0: i32) -> (i32, i32, i32) {
    %c0_i32 = arith.constant 0 : i32
    %c0_i32_0 = arith.constant 0 : i32
    %c0_i32_1 = arith.constant 0 : i32
    return %arg0, %c0_i32, %c0_i32_0 : i32, i32, i32
  }
  func.func @transform_1(%arg0: i32) -> (i32, i32) {
    %c0_i32 = arith.constant 0 : i32
    %c0_i32_0 = arith.constant 0 : i32
    %c0_i32_1 = arith.constant 0 : i32
    return %c0_i32, %c0_i32_0 : i32, i32
  }
  func.func @transform_2(%arg0: i32) -> (i32, i32) {
    %c0_i32 = arith.constant 0 : i32
    %c0_i32_0 = arith.constant 0 : i32
    %c0_i32_1 = arith.constant 0 : i32
    return %c0_i32, %c0_i32_0 : i32, i32
  }
  func.func @transform_3(%arg0: i32) -> (i32, i32, i32) {
    %c0_i32 = arith.constant 0 : i32
    %c0_i32_0 = arith.constant 0 : i32
    %c0_i32_1 = arith.constant 0 : i32
    return %arg0, %c0_i32, %c0_i32_0 : i32, i32, i32
  }
}

module attributes {stable_mosaic.version = 11 : i64} {
  func.func @_dirproj_kernel(%arg0: i32, %arg1: i32, %arg2: i32, %arg3: memref<1x1x16x64xbf16, #tpu.memory_space<vmem>>, %arg4: memref<1x64x96xbf16, #tpu.memory_space<vmem>>, %arg5: memref<1x1x16x96xbf16, #tpu.memory_space<vmem>>) attributes {dimension_semantics = [#tpu.dimension_semantics<parallel>, #tpu.dimension_semantics<parallel>, #tpu.dimension_semantics<parallel>], iteration_bounds = array<i64: 2, 4, 1>, scalar_prefetch = 0 : i64, scratch_operands = 0 : i64, tpu.core_type = #tpu.core_type<tc>, window_params = [{transform_indices = @transform_0, window_bounds = array<i64: 1, 1, 16, 64>}, {transform_indices = @transform_1, window_bounds = array<i64: 1, 64, 96>}, {transform_indices = @transform_2, window_bounds = array<i64: 1, 1, 16, 96>}]} {
    %c0 = arith.constant 0 : index
    %c0_0 = arith.constant 0 : index
    %c0_1 = arith.constant 0 : index
    %c0_2 = arith.constant 0 : index
    %0 = vector.load %arg3[%c0, %c0_0, %c0_1, %c0_2] : memref<1x1x16x64xbf16, #tpu.memory_space<vmem>>, vector<1x1x16x64xbf16>
    %1 = vector.shape_cast %0 : vector<1x1x16x64xbf16> to vector<16x64xbf16>
    %c0_3 = arith.constant 0 : index
    %c0_4 = arith.constant 0 : index
    %c0_5 = arith.constant 0 : index
    %2 = vector.load %arg4[%c0_3, %c0_4, %c0_5] : memref<1x64x96xbf16, #tpu.memory_space<vmem>>, vector<1x64x96xbf16>
    %3 = vector.shape_cast %2 : vector<1x64x96xbf16> to vector<64x96xbf16>
    %cst = arith.constant dense<0.000000e+00> : vector<16x96xf32>
    %4 = tpu.matmul %1, %3, %cst {dimension_numbers = #tpu.dot_dimension_numbers<[1], [0], [0], [1], [0, 0, 1, 1], [], []>} : vector<16x64xbf16>, vector<64x96xbf16>, vector<16x96xf32> -> vector<16x96xf32>
    %5 = arith.truncf %4 : vector<16x96xf32> to vector<16x96xbf16>
    %6 = vector.shape_cast %5 : vector<16x96xbf16> to vector<1x1x16x96xbf16>
    %c0_6 = arith.constant 0 : index
    %c0_7 = arith.constant 0 : index
    %c0_8 = arith.constant 0 : index
    %c0_9 = arith.constant 0 : index
    %7 = vector.load %arg5[%c0_6, %c0_7, %c0_8, %c0_9] : memref<1x1x16x96xbf16, #tpu.memory_space<vmem>>, vector<1x1x16x96xbf16>
    tpu.vector_store %arg5[%c0_6, %c0_7, %c0_8, %c0_9], %6 {strides = array<i32>} : memref<1x1x16x96xbf16, #tpu.memory_space<vmem>>, vector<1x1x16x96xbf16>,
    return
  }
  func.func @transform_0(%arg0: i32, %arg1: i32, %arg2: i32) -> (i32, i32, i32, i32) {
    %c0_i32 = arith.constant 0 : i32
    %c0_i32_0 = arith.constant 0 : i32
    return %arg0, %arg1, %arg2, %c0_i32 : i32, i32, i32, i32
  }
  func.func @transform_1(%arg0: i32, %arg1: i32, %arg2: i32) -> (i32, i32, i32) {
    %c0_i32 = arith.constant 0 : i32
    %c0_i32_0 = arith.constant 0 : i32
    %c0_i32_1 = arith.constant 0 : i32
    return %arg1, %c0_i32, %c0_i32_0 : i32, i32, i32
  }
  func.func @transform_2(%arg0: i32, %arg1: i32, %arg2: i32) -> (i32, i32, i32, i32) {
    %c0_i32 = arith.constant 0 : i32
    %c0_i32_0 = arith.constant 0 : i32
    return %arg0, %arg1, %arg2, %c0_i32 : i32, i32, i32, i32
  }
}

module attributes {stable_mosaic.version = 11 : i64} {
  func.func @_selective_scan_kernel(%arg0: i32, %arg1: i32, %arg2: i32, %arg3: memref<1x1x16x64xbf16, #tpu.memory_space<vmem>>, %arg4: memref<1x1x16x96xbf16, #tpu.memory_space<vmem>>, %arg5: memref<1x16x64xf32, #tpu.memory_space<vmem>>, %arg6: memref<1x1x64xf32, #tpu.memory_space<vmem>>, %arg7: memref<1x1x64xf32, #tpu.memory_space<vmem>>, %arg8: memref<1x1x16x64xf32, #tpu.memory_space<vmem>>, %arg9: memref<16x16x64xf32, #tpu.memory_space<vmem>>, %arg10: memref<16x16x64xf32, #tpu.memory_space<vmem>>, %arg11: memref<16x16xf32, #tpu.memory_space<vmem>>, %arg12: memref<16x64xf32, #tpu.memory_space<vmem>>) attributes {dimension_semantics = [#tpu.dimension_semantics<parallel>, #tpu.dimension_semantics<parallel>, #tpu.dimension_semantics<arbitrary>], iteration_bounds = array<i64: 2, 4, 1>, scalar_prefetch = 0 : i64, scratch_operands = 4 : i64, tpu.core_type = #tpu.core_type<tc>, window_params = [{transform_indices = @transform_0, window_bounds = array<i64: 1, 1, 16, 64>}, {transform_indices = @transform_1, window_bounds = array<i64: 1, 1, 16, 96>}, {transform_indices = @transform_2, window_bounds = array<i64: 1, 16, 64>}, {transform_indices = @transform_3, window_bounds = array<i64: 1, 1, 64>}, {transform_indices = @transform_4, window_bounds = array<i64: 1, 1, 64>}, {transform_indices = @transform_5, window_bounds = array<i64: 1, 1, 16, 64>}]} {
    %c0_i32 = arith.constant 0 : i32
    %0 = arith.cmpi eq, %arg2, %c0_i32 : i32
    %1 = arith.extui %0 : i1 to i32
    %c0_i32_0 = arith.constant 0 : i32
    %2 = arith.cmpi ne, %1, %c0_i32_0 : i32
    scf.if %2 {
      %cst_189 = arith.constant 0.000000e+00 : f32
      %274 = vector.broadcast %cst_189 : f32 to vector<16x64xf32>
      %c0_190 = arith.constant 0 : index
      %c0_191 = arith.constant 0 : index
      %275 = vector.load %arg12[%c0_190, %c0_191] : memref<16x64xf32, #tpu.memory_space<vmem>>, vector<16x64xf32>
      tpu.vector_store %arg12[%c0_190, %c0_191], %274 {strides = array<i32>} : memref<16x64xf32, #tpu.memory_space<vmem>>, vector<16x64xf32>,
    } else {
    }
    %c0 = arith.constant 0 : index
    %c0_1 = arith.constant 0 : index
    %c0_2 = arith.constant 0 : index
    %c0_3 = arith.constant 0 : index
    %3 = vector.load %arg3[%c0, %c0_1, %c0_2, %c0_3] : memref<1x1x16x64xbf16, #tpu.memory_space<vmem>>, vector<1x1x16x64xbf16>
    %4 = vector.shape_cast %3 : vector<1x1x16x64xbf16> to vector<16x64xbf16>
    %5 = arith.extf %4 : vector<16x64xbf16> to vector<16x64xf32>
    %c0_4 = arith.constant 0 : index
    %c0_5 = arith.constant 0 : index
    %c0_6 = arith.constant 0 : index
    %c0_7 = arith.constant 0 : index
    %6 = vector.load %arg4[%c0_4, %c0_5, %c0_6, %c0_7] : memref<1x1x16x96xbf16, #tpu.memory_space<vmem>>, vector<1x1x16x96xbf16>
    %7 = vector.shape_cast %6 : vector<1x1x16x96xbf16> to vector<16x96xbf16>
    %8 = arith.extf %7 : vector<16x96xbf16> to vector<16x96xf32>
    %9 = vector.extract_strided_slice %8 {offsets = [0, 0], sizes = [16, 64], strides = [1, 1]} : vector<16x96xf32> to vector<16x64xf32>
    %c0_8 = arith.constant 0 : index
    %c0_9 = arith.constant 0 : index
    %c0_10 = arith.constant 0 : index
    %10 = vector.load %arg7[%c0_8, %c0_9, %c0_10] : memref<1x1x64xf32, #tpu.memory_space<vmem>>, vector<1x1x64xf32>
    %11 = vector.shape_cast %10 : vector<1x1x64xf32> to vector<1x64xf32>
    %12 = vector.broadcast %11 : vector<1x64xf32> to vector<16x64xf32>
    %13 = arith.addf %9, %12 : vector<16x64xf32>
    %cst = arith.constant 0.000000e+00 : f32
    %14 = vector.broadcast %cst : f32 to vector<16x64xf32>
    %15 = arith.maximumf %13, %14 : vector<16x64xf32>
    %16 = vector.broadcast %cst : f32 to vector<16x64xf32>
    %17 = arith.subf %13, %16 : vector<16x64xf32>
    %18 = arith.cmpf one, %17, %17 : vector<16x64xf32>
    %19 = vector.broadcast %cst : f32 to vector<16x64xf32>
    %20 = arith.addf %13, %19 : vector<16x64xf32>
    %21 = math.absf %17 : vector<16x64xf32>
    %cst_11 = arith.constant 0.000000e+00 : f32
    %22 = vector.broadcast %cst_11 : f32 to vector<16x64xf32>
    %23 = arith.subf %22, %21 : vector<16x64xf32>
    %24 = math.exp %23 : vector<16x64xf32>
    %25 = math.log1p %24 : vector<16x64xf32>
    %26 = arith.addf %15, %25 : vector<16x64xf32>
    %27 = arith.select %18, %20, %26 : vector<16x64xi1>, vector<16x64xf32>
    %28 = vector.extract_strided_slice %8 {offsets = [0, 64], sizes = [16, 16], strides = [1, 1]} : vector<16x96xf32> to vector<16x16xf32>
    %29 = vector.extract_strided_slice %8 {offsets = [0, 80], sizes = [16, 16], strides = [1, 1]} : vector<16x96xf32> to vector<16x16xf32>
    %c0_12 = arith.constant 0 : index
    %c0_13 = arith.constant 0 : index
    %c0_14 = arith.constant 0 : index
    %30 = vector.load %arg5[%c0_12, %c0_13, %c0_14] : memref<1x16x64xf32, #tpu.memory_space<vmem>>, vector<1x16x64xf32>
    %31 = vector.shape_cast %30 : vector<1x16x64xf32> to vector<16x64xf32>
    %32 = vector.shape_cast %27 : vector<16x64xf32> to vector<16x1x64xf32>
    %33 = vector.shape_cast %31 : vector<16x64xf32> to vector<1x16x64xf32>
    %34 = vector.broadcast %32 : vector<16x1x64xf32> to vector<16x16x64xf32>
    %35 = vector.broadcast %33 : vector<1x16x64xf32> to vector<16x16x64xf32>
    %36 = arith.mulf %34, %35 : vector<16x16x64xf32>
    %37 = math.exp %36 : vector<16x16x64xf32>
    %c0_15 = arith.constant 0 : index
    %c0_16 = arith.constant 0 : index
    %c0_17 = arith.constant 0 : index
    %38 = vector.load %arg9[%c0_15, %c0_16, %c0_17] : memref<16x16x64xf32, #tpu.memory_space<vmem>>, vector<16x16x64xf32>
    tpu.vector_store %arg9[%c0_15, %c0_16, %c0_17], %37 {strides = array<i32>} : memref<16x16x64xf32, #tpu.memory_space<vmem>>, vector<16x16x64xf32>,
    %39 = arith.mulf %27, %5 : vector<16x64xf32>
    %40 = vector.shape_cast %39 : vector<16x64xf32> to vector<16x1x64xf32>
    %41 = vector.shape_cast %28 : vector<16x16xf32> to vector<16x16x1xf32>
    %42 = vector.broadcast %40 : vector<16x1x64xf32> to vector<16x16x64xf32>
    %43 = vector.broadcast %41 : vector<16x16x1xf32> to vector<16x16x64xf32>
    %44 = arith.mulf %42, %43 : vector<16x16x64xf32>
    %c0_18 = arith.constant 0 : index
    %c0_19 = arith.constant 0 : index
    %c0_20 = arith.constant 0 : index
    %45 = vector.load %arg10[%c0_18, %c0_19, %c0_20] : memref<16x16x64xf32, #tpu.memory_space<vmem>>, vector<16x16x64xf32>
    tpu.vector_store %arg10[%c0_18, %c0_19, %c0_20], %44 {strides = array<i32>} : memref<16x16x64xf32, #tpu.memory_space<vmem>>, vector<16x16x64xf32>,
    %c0_21 = arith.constant 0 : index
    %c0_22 = arith.constant 0 : index
    %c0_23 = arith.constant 0 : index
    %46 = vector.load %arg6[%c0_21, %c0_22, %c0_23] : memref<1x1x64xf32, #tpu.memory_space<vmem>>, vector<1x1x64xf32>
    %47 = vector.shape_cast %46 : vector<1x1x64xf32> to vector<1x64xf32>
    %c0_24 = arith.constant 0 : index
    %c0_25 = arith.constant 0 : index
    %48 = vector.load %arg12[%c0_24, %c0_25] : memref<16x64xf32, #tpu.memory_space<vmem>>, vector<16x64xf32>
    %c0_26 = arith.constant 0 : index
    %c0_27 = arith.constant 0 : index
    %c0_28 = arith.constant 0 : index
    %49 = vector.load %arg9[%c0_26, %c0_27, %c0_28] : memref<16x16x64xf32, #tpu.memory_space<vmem>>, vector<1x16x64xf32>
    %50 = vector.shape_cast %49 : vector<1x16x64xf32> to vector<16x64xf32>
    %51 = arith.mulf %50, %48 : vector<16x64xf32>
    %c0_29 = arith.constant 0 : index
    %c0_30 = arith.constant 0 : index
    %c0_31 = arith.constant 0 : index
    %52 = vector.load %arg10[%c0_29, %c0_30, %c0_31] : memref<16x16x64xf32, #tpu.memory_space<vmem>>, vector<1x16x64xf32>
    %53 = vector.shape_cast %52 : vector<1x16x64xf32> to vector<16x64xf32>
    %54 = arith.addf %51, %53 : vector<16x64xf32>
    %55 = vector.extract_strided_slice %29 {offsets = [0, 0], sizes = [1, 16], strides = [1, 1]} : vector<16x16xf32> to vector<1x16xf32>
    %cst_32 = arith.constant dense<0.000000e+00> : vector<1x64xf32>
    %56 = tpu.matmul %55, %54, %cst_32 {dimension_numbers = #tpu.dot_dimension_numbers<[1], [0], [0], [1], [0, 0, 1, 1], [], []>} : vector<1x16xf32>, vector<16x64xf32>, vector<1x64xf32> -> vector<1x64xf32>
    %57 = vector.extract_strided_slice %5 {offsets = [0, 0], sizes = [1, 64], strides = [1, 1]} : vector<16x64xf32> to vector<1x64xf32>
    %58 = arith.mulf %47, %57 : vector<1x64xf32>
    %59 = arith.addf %56, %58 : vector<1x64xf32>
    %c0_33 = arith.constant 0 : index
    %c0_34 = arith.constant 0 : index
    %c0_35 = arith.constant 0 : index
    %c0_36 = arith.constant 0 : index
    %60 = vector.load %arg8[%c0_33, %c0_34, %c0_35, %c0_36] : memref<1x1x16x64xf32, #tpu.memory_space<vmem>>, vector<1x1x1x64xf32>
    %61 = vector.shape_cast %60 : vector<1x1x1x64xf32> to vector<1x64xf32>
    %62 = vector.shape_cast %59 : vector<1x64xf32> to vector<1x1x1x64xf32>
    tpu.vector_store %arg8[%c0_33, %c0_34, %c0_35, %c0_36], %62 {strides = array<i32>} : memref<1x1x16x64xf32, #tpu.memory_space<vmem>>, vector<1x1x1x64xf32>,
    %c1 = arith.constant 1 : index
    %c0_37 = arith.constant 0 : index
    %c0_38 = arith.constant 0 : index
    %63 = vector.load %arg9[%c1, %c0_37, %c0_38] : memref<16x16x64xf32, #tpu.memory_space<vmem>>, vector<1x16x64xf32>
    %64 = vector.shape_cast %63 : vector<1x16x64xf32> to vector<16x64xf32>
    %65 = arith.mulf %64, %54 : vector<16x64xf32>
    %c1_39 = arith.constant 1 : index
    %c0_40 = arith.constant 0 : index
    %c0_41 = arith.constant 0 : index
    %66 = vector.load %arg10[%c1_39, %c0_40, %c0_41] : memref<16x16x64xf32, #tpu.memory_space<vmem>>, vector<1x16x64xf32>
    %67 = vector.shape_cast %66 : vector<1x16x64xf32> to vector<16x64xf32>
    %68 = arith.addf %65, %67 : vector<16x64xf32>
    %69 = vector.extract_strided_slice %29 {offsets = [1, 0], sizes = [1, 16], strides = [1, 1]} : vector<16x16xf32> to vector<1x16xf32>
    %cst_42 = arith.constant dense<0.000000e+00> : vector<1x64xf32>
    %70 = tpu.matmul %69, %68, %cst_42 {dimension_numbers = #tpu.dot_dimension_numbers<[1], [0], [0], [1], [0, 0, 1, 1], [], []>} : vector<1x16xf32>, vector<16x64xf32>, vector<1x64xf32> -> vector<1x64xf32>
    %71 = vector.extract_strided_slice %5 {offsets = [1, 0], sizes = [1, 64], strides = [1, 1]} : vector<16x64xf32> to vector<1x64xf32>
    %72 = arith.mulf %47, %71 : vector<1x64xf32>
    %73 = arith.addf %70, %72 : vector<1x64xf32>
    %c0_43 = arith.constant 0 : index
    %c0_44 = arith.constant 0 : index
    %c1_45 = arith.constant 1 : index
    %c0_46 = arith.constant 0 : index
    %74 = vector.load %arg8[%c0_43, %c0_44, %c1_45, %c0_46] : memref<1x1x16x64xf32, #tpu.memory_space<vmem>>, vector<1x1x1x64xf32>
    %75 = vector.shape_cast %74 : vector<1x1x1x64xf32> to vector<1x64xf32>
    %76 = vector.shape_cast %73 : vector<1x64xf32> to vector<1x1x1x64xf32>
    tpu.vector_store %arg8[%c0_43, %c0_44, %c1_45, %c0_46], %76 {strides = array<i32>} : memref<1x1x16x64xf32, #tpu.memory_space<vmem>>, vector<1x1x1x64xf32>,
    %c2 = arith.constant 2 : index
    %c0_47 = arith.constant 0 : index
    %c0_48 = arith.constant 0 : index
    %77 = vector.load %arg9[%c2, %c0_47, %c0_48] : memref<16x16x64xf32, #tpu.memory_space<vmem>>, vector<1x16x64xf32>
    %78 = vector.shape_cast %77 : vector<1x16x64xf32> to vector<16x64xf32>
    %79 = arith.mulf %78, %68 : vector<16x64xf32>
    %c2_49 = arith.constant 2 : index
    %c0_50 = arith.constant 0 : index
    %c0_51 = arith.constant 0 : index
    %80 = vector.load %arg10[%c2_49, %c0_50, %c0_51] : memref<16x16x64xf32, #tpu.memory_space<vmem>>, vector<1x16x64xf32>
    %81 = vector.shape_cast %80 : vector<1x16x64xf32> to vector<16x64xf32>
    %82 = arith.addf %79, %81 : vector<16x64xf32>
    %83 = vector.extract_strided_slice %29 {offsets = [2, 0], sizes = [1, 16], strides = [1, 1]} : vector<16x16xf32> to vector<1x16xf32>
    %cst_52 = arith.constant dense<0.000000e+00> : vector<1x64xf32>
    %84 = tpu.matmul %83, %82, %cst_52 {dimension_numbers = #tpu.dot_dimension_numbers<[1], [0], [0], [1], [0, 0, 1, 1], [], []>} : vector<1x16xf32>, vector<16x64xf32>, vector<1x64xf32> -> vector<1x64xf32>
    %85 = vector.extract_strided_slice %5 {offsets = [2, 0], sizes = [1, 64], strides = [1, 1]} : vector<16x64xf32> to vector<1x64xf32>
    %86 = arith.mulf %47, %85 : vector<1x64xf32>
    %87 = arith.addf %84, %86 : vector<1x64xf32>
    %c0_53 = arith.constant 0 : index
    %c0_54 = arith.constant 0 : index
    %c2_55 = arith.constant 2 : index
    %c0_56 = arith.constant 0 : index
    %88 = vector.load %arg8[%c0_53, %c0_54, %c2_55, %c0_56] : memref<1x1x16x64xf32, #tpu.memory_space<vmem>>, vector<1x1x1x64xf32>
    %89 = vector.shape_cast %88 : vector<1x1x1x64xf32> to vector<1x64xf32>
    %90 = vector.shape_cast %87 : vector<1x64xf32> to vector<1x1x1x64xf32>
    tpu.vector_store %arg8[%c0_53, %c0_54, %c2_55, %c0_56], %90 {strides = array<i32>} : memref<1x1x16x64xf32, #tpu.memory_space<vmem>>, vector<1x1x1x64xf32>,
    %c3 = arith.constant 3 : index
    %c0_57 = arith.constant 0 : index
    %c0_58 = arith.constant 0 : index
    %91 = vector.load %arg9[%c3, %c0_57, %c0_58] : memref<16x16x64xf32, #tpu.memory_space<vmem>>, vector<1x16x64xf32>
    %92 = vector.shape_cast %91 : vector<1x16x64xf32> to vector<16x64xf32>
    %93 = arith.mulf %92, %82 : vector<16x64xf32>
    %c3_59 = arith.constant 3 : index
    %c0_60 = arith.constant 0 : index
    %c0_61 = arith.constant 0 : index
    %94 = vector.load %arg10[%c3_59, %c0_60, %c0_61] : memref<16x16x64xf32, #tpu.memory_space<vmem>>, vector<1x16x64xf32>
    %95 = vector.shape_cast %94 : vector<1x16x64xf32> to vector<16x64xf32>
    %96 = arith.addf %93, %95 : vector<16x64xf32>
    %97 = vector.extract_strided_slice %29 {offsets = [3, 0], sizes = [1, 16], strides = [1, 1]} : vector<16x16xf32> to vector<1x16xf32>
    %cst_62 = arith.constant dense<0.000000e+00> : vector<1x64xf32>
    %98 = tpu.matmul %97, %96, %cst_62 {dimension_numbers = #tpu.dot_dimension_numbers<[1], [0], [0], [1], [0, 0, 1, 1], [], []>} : vector<1x16xf32>, vector<16x64xf32>, vector<1x64xf32> -> vector<1x64xf32>
    %99 = vector.extract_strided_slice %5 {offsets = [3, 0], sizes = [1, 64], strides = [1, 1]} : vector<16x64xf32> to vector<1x64xf32>
    %100 = arith.mulf %47, %99 : vector<1x64xf32>
    %101 = arith.addf %98, %100 : vector<1x64xf32>
    %c0_63 = arith.constant 0 : index
    %c0_64 = arith.constant 0 : index
    %c3_65 = arith.constant 3 : index
    %c0_66 = arith.constant 0 : index
    %102 = vector.load %arg8[%c0_63, %c0_64, %c3_65, %c0_66] : memref<1x1x16x64xf32, #tpu.memory_space<vmem>>, vector<1x1x1x64xf32>
    %103 = vector.shape_cast %102 : vector<1x1x1x64xf32> to vector<1x64xf32>
    %104 = vector.shape_cast %101 : vector<1x64xf32> to vector<1x1x1x64xf32>
    tpu.vector_store %arg8[%c0_63, %c0_64, %c3_65, %c0_66], %104 {strides = array<i32>} : memref<1x1x16x64xf32, #tpu.memory_space<vmem>>, vector<1x1x1x64xf32>,
    %c4 = arith.constant 4 : index
    %c0_67 = arith.constant 0 : index
    %c0_68 = arith.constant 0 : index
    %105 = vector.load %arg9[%c4, %c0_67, %c0_68] : memref<16x16x64xf32, #tpu.memory_space<vmem>>, vector<1x16x64xf32>
    %106 = vector.shape_cast %105 : vector<1x16x64xf32> to vector<16x64xf32>
    %107 = arith.mulf %106, %96 : vector<16x64xf32>
    %c4_69 = arith.constant 4 : index
    %c0_70 = arith.constant 0 : index
    %c0_71 = arith.constant 0 : index
    %108 = vector.load %arg10[%c4_69, %c0_70, %c0_71] : memref<16x16x64xf32, #tpu.memory_space<vmem>>, vector<1x16x64xf32>
    %109 = vector.shape_cast %108 : vector<1x16x64xf32> to vector<16x64xf32>
    %110 = arith.addf %107, %109 : vector<16x64xf32>
    %111 = vector.extract_strided_slice %29 {offsets = [4, 0], sizes = [1, 16], strides = [1, 1]} : vector<16x16xf32> to vector<1x16xf32>
    %cst_72 = arith.constant dense<0.000000e+00> : vector<1x64xf32>
    %112 = tpu.matmul %111, %110, %cst_72 {dimension_numbers = #tpu.dot_dimension_numbers<[1], [0], [0], [1], [0, 0, 1, 1], [], []>} : vector<1x16xf32>, vector<16x64xf32>, vector<1x64xf32> -> vector<1x64xf32>
    %113 = vector.extract_strided_slice %5 {offsets = [4, 0], sizes = [1, 64], strides = [1, 1]} : vector<16x64xf32> to vector<1x64xf32>
    %114 = arith.mulf %47, %113 : vector<1x64xf32>
    %115 = arith.addf %112, %114 : vector<1x64xf32>
    %c0_73 = arith.constant 0 : index
    %c0_74 = arith.constant 0 : index
    %c4_75 = arith.constant 4 : index
    %c0_76 = arith.constant 0 : index
    %116 = vector.load %arg8[%c0_73, %c0_74, %c4_75, %c0_76] : memref<1x1x16x64xf32, #tpu.memory_space<vmem>>, vector<1x1x1x64xf32>
    %117 = vector.shape_cast %116 : vector<1x1x1x64xf32> to vector<1x64xf32>
    %118 = vector.shape_cast %115 : vector<1x64xf32> to vector<1x1x1x64xf32>
    tpu.vector_store %arg8[%c0_73, %c0_74, %c4_75, %c0_76], %118 {strides = array<i32>} : memref<1x1x16x64xf32, #tpu.memory_space<vmem>>, vector<1x1x1x64xf32>,
    %c5 = arith.constant 5 : index
    %c0_77 = arith.constant 0 : index
    %c0_78 = arith.constant 0 : index
    %119 = vector.load %arg9[%c5, %c0_77, %c0_78] : memref<16x16x64xf32, #tpu.memory_space<vmem>>, vector<1x16x64xf32>
    %120 = vector.shape_cast %119 : vector<1x16x64xf32> to vector<16x64xf32>
    %121 = arith.mulf %120, %110 : vector<16x64xf32>
    %c5_79 = arith.constant 5 : index
    %c0_80 = arith.constant 0 : index
    %c0_81 = arith.constant 0 : index
    %122 = vector.load %arg10[%c5_79, %c0_80, %c0_81] : memref<16x16x64xf32, #tpu.memory_space<vmem>>, vector<1x16x64xf32>
    %123 = vector.shape_cast %122 : vector<1x16x64xf32> to vector<16x64xf32>
    %124 = arith.addf %121, %123 : vector<16x64xf32>
    %125 = vector.extract_strided_slice %29 {offsets = [5, 0], sizes = [1, 16], strides = [1, 1]} : vector<16x16xf32> to vector<1x16xf32>
    %cst_82 = arith.constant dense<0.000000e+00> : vector<1x64xf32>
    %126 = tpu.matmul %125, %124, %cst_82 {dimension_numbers = #tpu.dot_dimension_numbers<[1], [0], [0], [1], [0, 0, 1, 1], [], []>} : vector<1x16xf32>, vector<16x64xf32>, vector<1x64xf32> -> vector<1x64xf32>
    %127 = vector.extract_strided_slice %5 {offsets = [5, 0], sizes = [1, 64], strides = [1, 1]} : vector<16x64xf32> to vector<1x64xf32>
    %128 = arith.mulf %47, %127 : vector<1x64xf32>
    %129 = arith.addf %126, %128 : vector<1x64xf32>
    %c0_83 = arith.constant 0 : index
    %c0_84 = arith.constant 0 : index
    %c5_85 = arith.constant 5 : index
    %c0_86 = arith.constant 0 : index
    %130 = vector.load %arg8[%c0_83, %c0_84, %c5_85, %c0_86] : memref<1x1x16x64xf32, #tpu.memory_space<vmem>>, vector<1x1x1x64xf32>
    %131 = vector.shape_cast %130 : vector<1x1x1x64xf32> to vector<1x64xf32>
    %132 = vector.shape_cast %129 : vector<1x64xf32> to vector<1x1x1x64xf32>
    tpu.vector_store %arg8[%c0_83, %c0_84, %c5_85, %c0_86], %132 {strides = array<i32>} : memref<1x1x16x64xf32, #tpu.memory_space<vmem>>, vector<1x1x1x64xf32>,
    %c6 = arith.constant 6 : index
    %c0_87 = arith.constant 0 : index
    %c0_88 = arith.constant 0 : index
    %133 = vector.load %arg9[%c6, %c0_87, %c0_88] : memref<16x16x64xf32, #tpu.memory_space<vmem>>, vector<1x16x64xf32>
    %134 = vector.shape_cast %133 : vector<1x16x64xf32> to vector<16x64xf32>
    %135 = arith.mulf %134, %124 : vector<16x64xf32>
    %c6_89 = arith.constant 6 : index
    %c0_90 = arith.constant 0 : index
    %c0_91 = arith.constant 0 : index
    %136 = vector.load %arg10[%c6_89, %c0_90, %c0_91] : memref<16x16x64xf32, #tpu.memory_space<vmem>>, vector<1x16x64xf32>
    %137 = vector.shape_cast %136 : vector<1x16x64xf32> to vector<16x64xf32>
    %138 = arith.addf %135, %137 : vector<16x64xf32>
    %139 = vector.extract_strided_slice %29 {offsets = [6, 0], sizes = [1, 16], strides = [1, 1]} : vector<16x16xf32> to vector<1x16xf32>
    %cst_92 = arith.constant dense<0.000000e+00> : vector<1x64xf32>
    %140 = tpu.matmul %139, %138, %cst_92 {dimension_numbers = #tpu.dot_dimension_numbers<[1], [0], [0], [1], [0, 0, 1, 1], [], []>} : vector<1x16xf32>, vector<16x64xf32>, vector<1x64xf32> -> vector<1x64xf32>
    %141 = vector.extract_strided_slice %5 {offsets = [6, 0], sizes = [1, 64], strides = [1, 1]} : vector<16x64xf32> to vector<1x64xf32>
    %142 = arith.mulf %47, %141 : vector<1x64xf32>
    %143 = arith.addf %140, %142 : vector<1x64xf32>
    %c0_93 = arith.constant 0 : index
    %c0_94 = arith.constant 0 : index
    %c6_95 = arith.constant 6 : index
    %c0_96 = arith.constant 0 : index
    %144 = vector.load %arg8[%c0_93, %c0_94, %c6_95, %c0_96] : memref<1x1x16x64xf32, #tpu.memory_space<vmem>>, vector<1x1x1x64xf32>
    %145 = vector.shape_cast %144 : vector<1x1x1x64xf32> to vector<1x64xf32>
    %146 = vector.shape_cast %143 : vector<1x64xf32> to vector<1x1x1x64xf32>
    tpu.vector_store %arg8[%c0_93, %c0_94, %c6_95, %c0_96], %146 {strides = array<i32>} : memref<1x1x16x64xf32, #tpu.memory_space<vmem>>, vector<1x1x1x64xf32>,
    %c7 = arith.constant 7 : index
    %c0_97 = arith.constant 0 : index
    %c0_98 = arith.constant 0 : index
    %147 = vector.load %arg9[%c7, %c0_97, %c0_98] : memref<16x16x64xf32, #tpu.memory_space<vmem>>, vector<1x16x64xf32>
    %148 = vector.shape_cast %147 : vector<1x16x64xf32> to vector<16x64xf32>
    %149 = arith.mulf %148, %138 : vector<16x64xf32>
    %c7_99 = arith.constant 7 : index
    %c0_100 = arith.constant 0 : index
    %c0_101 = arith.constant 0 : index
    %150 = vector.load %arg10[%c7_99, %c0_100, %c0_101] : memref<16x16x64xf32, #tpu.memory_space<vmem>>, vector<1x16x64xf32>
    %151 = vector.shape_cast %150 : vector<1x16x64xf32> to vector<16x64xf32>
    %152 = arith.addf %149, %151 : vector<16x64xf32>
    %153 = vector.extract_strided_slice %29 {offsets = [7, 0], sizes = [1, 16], strides = [1, 1]} : vector<16x16xf32> to vector<1x16xf32>
    %cst_102 = arith.constant dense<0.000000e+00> : vector<1x64xf32>
    %154 = tpu.matmul %153, %152, %cst_102 {dimension_numbers = #tpu.dot_dimension_numbers<[1], [0], [0], [1], [0, 0, 1, 1], [], []>} : vector<1x16xf32>, vector<16x64xf32>, vector<1x64xf32> -> vector<1x64xf32>
    %155 = vector.extract_strided_slice %5 {offsets = [7, 0], sizes = [1, 64], strides = [1, 1]} : vector<16x64xf32> to vector<1x64xf32>
    %156 = arith.mulf %47, %155 : vector<1x64xf32>
    %157 = arith.addf %154, %156 : vector<1x64xf32>
    %c0_103 = arith.constant 0 : index
    %c0_104 = arith.constant 0 : index
    %c7_105 = arith.constant 7 : index
    %c0_106 = arith.constant 0 : index
    %158 = vector.load %arg8[%c0_103, %c0_104, %c7_105, %c0_106] : memref<1x1x16x64xf32, #tpu.memory_space<vmem>>, vector<1x1x1x64xf32>
    %159 = vector.shape_cast %158 : vector<1x1x1x64xf32> to vector<1x64xf32>
    %160 = vector.shape_cast %157 : vector<1x64xf32> to vector<1x1x1x64xf32>
    tpu.vector_store %arg8[%c0_103, %c0_104, %c7_105, %c0_106], %160 {strides = array<i32>} : memref<1x1x16x64xf32, #tpu.memory_space<vmem>>, vector<1x1x1x64xf32>,
    %c8 = arith.constant 8 : index
    %c0_107 = arith.constant 0 : index
    %c0_108 = arith.constant 0 : index
    %161 = vector.load %arg9[%c8, %c0_107, %c0_108] : memref<16x16x64xf32, #tpu.memory_space<vmem>>, vector<1x16x64xf32>
    %162 = vector.shape_cast %161 : vector<1x16x64xf32> to vector<16x64xf32>
    %163 = arith.mulf %162, %152 : vector<16x64xf32>
    %c8_109 = arith.constant 8 : index
    %c0_110 = arith.constant 0 : index
    %c0_111 = arith.constant 0 : index
    %164 = vector.load %arg10[%c8_109, %c0_110, %c0_111] : memref<16x16x64xf32, #tpu.memory_space<vmem>>, vector<1x16x64xf32>
    %165 = vector.shape_cast %164 : vector<1x16x64xf32> to vector<16x64xf32>
    %166 = arith.addf %163, %165 : vector<16x64xf32>
    %167 = vector.extract_strided_slice %29 {offsets = [8, 0], sizes = [1, 16], strides = [1, 1]} : vector<16x16xf32> to vector<1x16xf32>
    %cst_112 = arith.constant dense<0.000000e+00> : vector<1x64xf32>
    %168 = tpu.matmul %167, %166, %cst_112 {dimension_numbers = #tpu.dot_dimension_numbers<[1], [0], [0], [1], [0, 0, 1, 1], [], []>} : vector<1x16xf32>, vector<16x64xf32>, vector<1x64xf32> -> vector<1x64xf32>
    %169 = vector.extract_strided_slice %5 {offsets = [8, 0], sizes = [1, 64], strides = [1, 1]} : vector<16x64xf32> to vector<1x64xf32>
    %170 = arith.mulf %47, %169 : vector<1x64xf32>
    %171 = arith.addf %168, %170 : vector<1x64xf32>
    %c0_113 = arith.constant 0 : index
    %c0_114 = arith.constant 0 : index
    %c8_115 = arith.constant 8 : index
    %c0_116 = arith.constant 0 : index
    %172 = vector.load %arg8[%c0_113, %c0_114, %c8_115, %c0_116] : memref<1x1x16x64xf32, #tpu.memory_space<vmem>>, vector<1x1x1x64xf32>
    %173 = vector.shape_cast %172 : vector<1x1x1x64xf32> to vector<1x64xf32>
    %174 = vector.shape_cast %171 : vector<1x64xf32> to vector<1x1x1x64xf32>
    tpu.vector_store %arg8[%c0_113, %c0_114, %c8_115, %c0_116], %174 {strides = array<i32>} : memref<1x1x16x64xf32, #tpu.memory_space<vmem>>, vector<1x1x1x64xf32>,
    %c9 = arith.constant 9 : index
    %c0_117 = arith.constant 0 : index
    %c0_118 = arith.constant 0 : index
    %175 = vector.load %arg9[%c9, %c0_117, %c0_118] : memref<16x16x64xf32, #tpu.memory_space<vmem>>, vector<1x16x64xf32>
    %176 = vector.shape_cast %175 : vector<1x16x64xf32> to vector<16x64xf32>
    %177 = arith.mulf %176, %166 : vector<16x64xf32>
    %c9_119 = arith.constant 9 : index
    %c0_120 = arith.constant 0 : index
    %c0_121 = arith.constant 0 : index
    %178 = vector.load %arg10[%c9_119, %c0_120, %c0_121] : memref<16x16x64xf32, #tpu.memory_space<vmem>>, vector<1x16x64xf32>
    %179 = vector.shape_cast %178 : vector<1x16x64xf32> to vector<16x64xf32>
    %180 = arith.addf %177, %179 : vector<16x64xf32>
    %181 = vector.extract_strided_slice %29 {offsets = [9, 0], sizes = [1, 16], strides = [1, 1]} : vector<16x16xf32> to vector<1x16xf32>
    %cst_122 = arith.constant dense<0.000000e+00> : vector<1x64xf32>
    %182 = tpu.matmul %181, %180, %cst_122 {dimension_numbers = #tpu.dot_dimension_numbers<[1], [0], [0], [1], [0, 0, 1, 1], [], []>} : vector<1x16xf32>, vector<16x64xf32>, vector<1x64xf32> -> vector<1x64xf32>
    %183 = vector.extract_strided_slice %5 {offsets = [9, 0], sizes = [1, 64], strides = [1, 1]} : vector<16x64xf32> to vector<1x64xf32>
    %184 = arith.mulf %47, %183 : vector<1x64xf32>
    %185 = arith.addf %182, %184 : vector<1x64xf32>
    %c0_123 = arith.constant 0 : index
    %c0_124 = arith.constant 0 : index
    %c9_125 = arith.constant 9 : index
    %c0_126 = arith.constant 0 : index
    %186 = vector.load %arg8[%c0_123, %c0_124, %c9_125, %c0_126] : memref<1x1x16x64xf32, #tpu.memory_space<vmem>>, vector<1x1x1x64xf32>
    %187 = vector.shape_cast %186 : vector<1x1x1x64xf32> to vector<1x64xf32>
    %188 = vector.shape_cast %185 : vector<1x64xf32> to vector<1x1x1x64xf32>
    tpu.vector_store %arg8[%c0_123, %c0_124, %c9_125, %c0_126], %188 {strides = array<i32>} : memref<1x1x16x64xf32, #tpu.memory_space<vmem>>, vector<1x1x1x64xf32>,
    %c10 = arith.constant 10 : index
    %c0_127 = arith.constant 0 : index
    %c0_128 = arith.constant 0 : index
    %189 = vector.load %arg9[%c10, %c0_127, %c0_128] : memref<16x16x64xf32, #tpu.memory_space<vmem>>, vector<1x16x64xf32>
    %190 = vector.shape_cast %189 : vector<1x16x64xf32> to vector<16x64xf32>
    %191 = arith.mulf %190, %180 : vector<16x64xf32>
    %c10_129 = arith.constant 10 : index
    %c0_130 = arith.constant 0 : index
    %c0_131 = arith.constant 0 : index
    %192 = vector.load %arg10[%c10_129, %c0_130, %c0_131] : memref<16x16x64xf32, #tpu.memory_space<vmem>>, vector<1x16x64xf32>
    %193 = vector.shape_cast %192 : vector<1x16x64xf32> to vector<16x64xf32>
    %194 = arith.addf %191, %193 : vector<16x64xf32>
    %195 = vector.extract_strided_slice %29 {offsets = [10, 0], sizes = [1, 16], strides = [1, 1]} : vector<16x16xf32> to vector<1x16xf32>
    %cst_132 = arith.constant dense<0.000000e+00> : vector<1x64xf32>
    %196 = tpu.matmul %195, %194, %cst_132 {dimension_numbers = #tpu.dot_dimension_numbers<[1], [0], [0], [1], [0, 0, 1, 1], [], []>} : vector<1x16xf32>, vector<16x64xf32>, vector<1x64xf32> -> vector<1x64xf32>
    %197 = vector.extract_strided_slice %5 {offsets = [10, 0], sizes = [1, 64], strides = [1, 1]} : vector<16x64xf32> to vector<1x64xf32>
    %198 = arith.mulf %47, %197 : vector<1x64xf32>
    %199 = arith.addf %196, %198 : vector<1x64xf32>
    %c0_133 = arith.constant 0 : index
    %c0_134 = arith.constant 0 : index
    %c10_135 = arith.constant 10 : index
    %c0_136 = arith.constant 0 : index
    %200 = vector.load %arg8[%c0_133, %c0_134, %c10_135, %c0_136] : memref<1x1x16x64xf32, #tpu.memory_space<vmem>>, vector<1x1x1x64xf32>
    %201 = vector.shape_cast %200 : vector<1x1x1x64xf32> to vector<1x64xf32>
    %202 = vector.shape_cast %199 : vector<1x64xf32> to vector<1x1x1x64xf32>
    tpu.vector_store %arg8[%c0_133, %c0_134, %c10_135, %c0_136], %202 {strides = array<i32>} : memref<1x1x16x64xf32, #tpu.memory_space<vmem>>, vector<1x1x1x64xf32>,
    %c11 = arith.constant 11 : index
    %c0_137 = arith.constant 0 : index
    %c0_138 = arith.constant 0 : index
    %203 = vector.load %arg9[%c11, %c0_137, %c0_138] : memref<16x16x64xf32, #tpu.memory_space<vmem>>, vector<1x16x64xf32>
    %204 = vector.shape_cast %203 : vector<1x16x64xf32> to vector<16x64xf32>
    %205 = arith.mulf %204, %194 : vector<16x64xf32>
    %c11_139 = arith.constant 11 : index
    %c0_140 = arith.constant 0 : index
    %c0_141 = arith.constant 0 : index
    %206 = vector.load %arg10[%c11_139, %c0_140, %c0_141] : memref<16x16x64xf32, #tpu.memory_space<vmem>>, vector<1x16x64xf32>
    %207 = vector.shape_cast %206 : vector<1x16x64xf32> to vector<16x64xf32>
    %208 = arith.addf %205, %207 : vector<16x64xf32>
    %209 = vector.extract_strided_slice %29 {offsets = [11, 0], sizes = [1, 16], strides = [1, 1]} : vector<16x16xf32> to vector<1x16xf32>
    %cst_142 = arith.constant dense<0.000000e+00> : vector<1x64xf32>
    %210 = tpu.matmul %209, %208, %cst_142 {dimension_numbers = #tpu.dot_dimension_numbers<[1], [0], [0], [1], [0, 0, 1, 1], [], []>} : vector<1x16xf32>, vector<16x64xf32>, vector<1x64xf32> -> vector<1x64xf32>
    %211 = vector.extract_strided_slice %5 {offsets = [11, 0], sizes = [1, 64], strides = [1, 1]} : vector<16x64xf32> to vector<1x64xf32>
    %212 = arith.mulf %47, %211 : vector<1x64xf32>
    %213 = arith.addf %210, %212 : vector<1x64xf32>
    %c0_143 = arith.constant 0 : index
    %c0_144 = arith.constant 0 : index
    %c11_145 = arith.constant 11 : index
    %c0_146 = arith.constant 0 : index
    %214 = vector.load %arg8[%c0_143, %c0_144, %c11_145, %c0_146] : memref<1x1x16x64xf32, #tpu.memory_space<vmem>>, vector<1x1x1x64xf32>
    %215 = vector.shape_cast %214 : vector<1x1x1x64xf32> to vector<1x64xf32>
    %216 = vector.shape_cast %213 : vector<1x64xf32> to vector<1x1x1x64xf32>
    tpu.vector_store %arg8[%c0_143, %c0_144, %c11_145, %c0_146], %216 {strides = array<i32>} : memref<1x1x16x64xf32, #tpu.memory_space<vmem>>, vector<1x1x1x64xf32>,
    %c12 = arith.constant 12 : index
    %c0_147 = arith.constant 0 : index
    %c0_148 = arith.constant 0 : index
    %217 = vector.load %arg9[%c12, %c0_147, %c0_148] : memref<16x16x64xf32, #tpu.memory_space<vmem>>, vector<1x16x64xf32>
    %218 = vector.shape_cast %217 : vector<1x16x64xf32> to vector<16x64xf32>
    %219 = arith.mulf %218, %208 : vector<16x64xf32>
    %c12_149 = arith.constant 12 : index
    %c0_150 = arith.constant 0 : index
    %c0_151 = arith.constant 0 : index
    %220 = vector.load %arg10[%c12_149, %c0_150, %c0_151] : memref<16x16x64xf32, #tpu.memory_space<vmem>>, vector<1x16x64xf32>
    %221 = vector.shape_cast %220 : vector<1x16x64xf32> to vector<16x64xf32>
    %222 = arith.addf %219, %221 : vector<16x64xf32>
    %223 = vector.extract_strided_slice %29 {offsets = [12, 0], sizes = [1, 16], strides = [1, 1]} : vector<16x16xf32> to vector<1x16xf32>
    %cst_152 = arith.constant dense<0.000000e+00> : vector<1x64xf32>
    %224 = tpu.matmul %223, %222, %cst_152 {dimension_numbers = #tpu.dot_dimension_numbers<[1], [0], [0], [1], [0, 0, 1, 1], [], []>} : vector<1x16xf32>, vector<16x64xf32>, vector<1x64xf32> -> vector<1x64xf32>
    %225 = vector.extract_strided_slice %5 {offsets = [12, 0], sizes = [1, 64], strides = [1, 1]} : vector<16x64xf32> to vector<1x64xf32>
    %226 = arith.mulf %47, %225 : vector<1x64xf32>
    %227 = arith.addf %224, %226 : vector<1x64xf32>
    %c0_153 = arith.constant 0 : index
    %c0_154 = arith.constant 0 : index
    %c12_155 = arith.constant 12 : index
    %c0_156 = arith.constant 0 : index
    %228 = vector.load %arg8[%c0_153, %c0_154, %c12_155, %c0_156] : memref<1x1x16x64xf32, #tpu.memory_space<vmem>>, vector<1x1x1x64xf32>
    %229 = vector.shape_cast %228 : vector<1x1x1x64xf32> to vector<1x64xf32>
    %230 = vector.shape_cast %227 : vector<1x64xf32> to vector<1x1x1x64xf32>
    tpu.vector_store %arg8[%c0_153, %c0_154, %c12_155, %c0_156], %230 {strides = array<i32>} : memref<1x1x16x64xf32, #tpu.memory_space<vmem>>, vector<1x1x1x64xf32>,
    %c13 = arith.constant 13 : index
    %c0_157 = arith.constant 0 : index
    %c0_158 = arith.constant 0 : index
    %231 = vector.load %arg9[%c13, %c0_157, %c0_158] : memref<16x16x64xf32, #tpu.memory_space<vmem>>, vector<1x16x64xf32>
    %232 = vector.shape_cast %231 : vector<1x16x64xf32> to vector<16x64xf32>
    %233 = arith.mulf %232, %222 : vector<16x64xf32>
    %c13_159 = arith.constant 13 : index
    %c0_160 = arith.constant 0 : index
    %c0_161 = arith.constant 0 : index
    %234 = vector.load %arg10[%c13_159, %c0_160, %c0_161] : memref<16x16x64xf32, #tpu.memory_space<vmem>>, vector<1x16x64xf32>
    %235 = vector.shape_cast %234 : vector<1x16x64xf32> to vector<16x64xf32>
    %236 = arith.addf %233, %235 : vector<16x64xf32>
    %237 = vector.extract_strided_slice %29 {offsets = [13, 0], sizes = [1, 16], strides = [1, 1]} : vector<16x16xf32> to vector<1x16xf32>
    %cst_162 = arith.constant dense<0.000000e+00> : vector<1x64xf32>
    %238 = tpu.matmul %237, %236, %cst_162 {dimension_numbers = #tpu.dot_dimension_numbers<[1], [0], [0], [1], [0, 0, 1, 1], [], []>} : vector<1x16xf32>, vector<16x64xf32>, vector<1x64xf32> -> vector<1x64xf32>
    %239 = vector.extract_strided_slice %5 {offsets = [13, 0], sizes = [1, 64], strides = [1, 1]} : vector<16x64xf32> to vector<1x64xf32>
    %240 = arith.mulf %47, %239 : vector<1x64xf32>
    %241 = arith.addf %238, %240 : vector<1x64xf32>
    %c0_163 = arith.constant 0 : index
    %c0_164 = arith.constant 0 : index
    %c13_165 = arith.constant 13 : index
    %c0_166 = arith.constant 0 : index
    %242 = vector.load %arg8[%c0_163, %c0_164, %c13_165, %c0_166] : memref<1x1x16x64xf32, #tpu.memory_space<vmem>>, vector<1x1x1x64xf32>
    %243 = vector.shape_cast %242 : vector<1x1x1x64xf32> to vector<1x64xf32>
    %244 = vector.shape_cast %241 : vector<1x64xf32> to vector<1x1x1x64xf32>
    tpu.vector_store %arg8[%c0_163, %c0_164, %c13_165, %c0_166], %244 {strides = array<i32>} : memref<1x1x16x64xf32, #tpu.memory_space<vmem>>, vector<1x1x1x64xf32>,
    %c14 = arith.constant 14 : index
    %c0_167 = arith.constant 0 : index
    %c0_168 = arith.constant 0 : index
    %245 = vector.load %arg9[%c14, %c0_167, %c0_168] : memref<16x16x64xf32, #tpu.memory_space<vmem>>, vector<1x16x64xf32>
    %246 = vector.shape_cast %245 : vector<1x16x64xf32> to vector<16x64xf32>
    %247 = arith.mulf %246, %236 : vector<16x64xf32>
    %c14_169 = arith.constant 14 : index
    %c0_170 = arith.constant 0 : index
    %c0_171 = arith.constant 0 : index
    %248 = vector.load %arg10[%c14_169, %c0_170, %c0_171] : memref<16x16x64xf32, #tpu.memory_space<vmem>>, vector<1x16x64xf32>
    %249 = vector.shape_cast %248 : vector<1x16x64xf32> to vector<16x64xf32>
    %250 = arith.addf %247, %249 : vector<16x64xf32>
    %251 = vector.extract_strided_slice %29 {offsets = [14, 0], sizes = [1, 16], strides = [1, 1]} : vector<16x16xf32> to vector<1x16xf32>
    %cst_172 = arith.constant dense<0.000000e+00> : vector<1x64xf32>
    %252 = tpu.matmul %251, %250, %cst_172 {dimension_numbers = #tpu.dot_dimension_numbers<[1], [0], [0], [1], [0, 0, 1, 1], [], []>} : vector<1x16xf32>, vector<16x64xf32>, vector<1x64xf32> -> vector<1x64xf32>
    %253 = vector.extract_strided_slice %5 {offsets = [14, 0], sizes = [1, 64], strides = [1, 1]} : vector<16x64xf32> to vector<1x64xf32>
    %254 = arith.mulf %47, %253 : vector<1x64xf32>
    %255 = arith.addf %252, %254 : vector<1x64xf32>
    %c0_173 = arith.constant 0 : index
    %c0_174 = arith.constant 0 : index
    %c14_175 = arith.constant 14 : index
    %c0_176 = arith.constant 0 : index
    %256 = vector.load %arg8[%c0_173, %c0_174, %c14_175, %c0_176] : memref<1x1x16x64xf32, #tpu.memory_space<vmem>>, vector<1x1x1x64xf32>
    %257 = vector.shape_cast %256 : vector<1x1x1x64xf32> to vector<1x64xf32>
    %258 = vector.shape_cast %255 : vector<1x64xf32> to vector<1x1x1x64xf32>
    tpu.vector_store %arg8[%c0_173, %c0_174, %c14_175, %c0_176], %258 {strides = array<i32>} : memref<1x1x16x64xf32, #tpu.memory_space<vmem>>, vector<1x1x1x64xf32>,
    %c15 = arith.constant 15 : index
    %c0_177 = arith.constant 0 : index
    %c0_178 = arith.constant 0 : index
    %259 = vector.load %arg9[%c15, %c0_177, %c0_178] : memref<16x16x64xf32, #tpu.memory_space<vmem>>, vector<1x16x64xf32>
    %260 = vector.shape_cast %259 : vector<1x16x64xf32> to vector<16x64xf32>
    %261 = arith.mulf %260, %250 : vector<16x64xf32>
    %c15_179 = arith.constant 15 : index
    %c0_180 = arith.constant 0 : index
    %c0_181 = arith.constant 0 : index
    %262 = vector.load %arg10[%c15_179, %c0_180, %c0_181] : memref<16x16x64xf32, #tpu.memory_space<vmem>>, vector<1x16x64xf32>
    %263 = vector.shape_cast %262 : vector<1x16x64xf32> to vector<16x64xf32>
    %264 = arith.addf %261, %263 : vector<16x64xf32>
    %265 = vector.extract_strided_slice %29 {offsets = [15, 0], sizes = [1, 16], strides = [1, 1]} : vector<16x16xf32> to vector<1x16xf32>
    %cst_182 = arith.constant dense<0.000000e+00> : vector<1x64xf32>
    %266 = tpu.matmul %265, %264, %cst_182 {dimension_numbers = #tpu.dot_dimension_numbers<[1], [0], [0], [1], [0, 0, 1, 1], [], []>} : vector<1x16xf32>, vector<16x64xf32>, vector<1x64xf32> -> vector<1x64xf32>
    %267 = vector.extract_strided_slice %5 {offsets = [15, 0], sizes = [1, 64], strides = [1, 1]} : vector<16x64xf32> to vector<1x64xf32>
    %268 = arith.mulf %47, %267 : vector<1x64xf32>
    %269 = arith.addf %266, %268 : vector<1x64xf32>
    %c0_183 = arith.constant 0 : index
    %c0_184 = arith.constant 0 : index
    %c15_185 = arith.constant 15 : index
    %c0_186 = arith.constant 0 : index
    %270 = vector.load %arg8[%c0_183, %c0_184, %c15_185, %c0_186] : memref<1x1x16x64xf32, #tpu.memory_space<vmem>>, vector<1x1x1x64xf32>
    %271 = vector.shape_cast %270 : vector<1x1x1x64xf32> to vector<1x64xf32>
    %272 = vector.shape_cast %269 : vector<1x64xf32> to vector<1x1x1x64xf32>
    tpu.vector_store %arg8[%c0_183, %c0_184, %c15_185, %c0_186], %272 {strides = array<i32>} : memref<1x1x16x64xf32, #tpu.memory_space<vmem>>, vector<1x1x1x64xf32>,
    %c0_187 = arith.constant 0 : index
    %c0_188 = arith.constant 0 : index
    %273 = vector.load %arg12[%c0_187, %c0_188] : memref<16x64xf32, #tpu.memory_space<vmem>>, vector<16x64xf32>
    tpu.vector_store %arg12[%c0_187, %c0_188], %264 {strides = array<i32>} : memref<16x64xf32, #tpu.memory_space<vmem>>, vector<16x64xf32>,
    return
  }
  func.func @transform_0(%arg0: i32, %arg1: i32, %arg2: i32) -> (i32, i32, i32, i32) {
    %c0_i32 = arith.constant 0 : i32
    %c0_i32_0 = arith.constant 0 : i32
    return %arg0, %arg1, %arg2, %c0_i32 : i32, i32, i32, i32
  }
  func.func @transform_1(%arg0: i32, %arg1: i32, %arg2: i32) -> (i32, i32, i32, i32) {
    %c0_i32 = arith.constant 0 : i32
    %c0_i32_0 = arith.constant 0 : i32
    return %arg0, %arg1, %arg2, %c0_i32 : i32, i32, i32, i32
  }
  func.func @transform_2(%arg0: i32, %arg1: i32, %arg2: i32) -> (i32, i32, i32) {
    %c0_i32 = arith.constant 0 : i32
    %c0_i32_0 = arith.constant 0 : i32
    %c0_i32_1 = arith.constant 0 : i32
    return %arg1, %c0_i32, %c0_i32_0 : i32, i32, i32
  }
  func.func @transform_3(%arg0: i32, %arg1: i32, %arg2: i32) -> (i32, i32, i32) {
    %c0_i32 = arith.constant 0 : i32
    %c0_i32_0 = arith.constant 0 : i32
    %c0_i32_1 = arith.constant 0 : i32
    return %arg1, %c0_i32, %c0_i32_0 : i32, i32, i32
  }
  func.func @transform_4(%arg0: i32, %arg1: i32, %arg2: i32) -> (i32, i32, i32) {
    %c0_i32 = arith.constant 0 : i32
    %c0_i32_0 = arith.constant 0 : i32
    %c0_i32_1 = arith.constant 0 : i32
    return %arg1, %c0_i32, %c0_i32_0 : i32, i32, i32
  }
  func.func @transform_5(%arg0: i32, %arg1: i32, %arg2: i32) -> (i32, i32, i32, i32) {
    %c0_i32 = arith.constant 0 : i32
    %c0_i32_0 = arith.constant 0 : i32
    return %arg0, %arg1, %arg2, %c0_i32 : i32, i32, i32, i32
  }
}

module attributes {stable_mosaic.version = 11 : i64} {
  func.func @_ss2d_tail_lstm_kernel(%arg0: i32, %arg1: memref<32x32xf32, #tpu.memory_space<vmem>>, %arg2: memref<32x64xf32, #tpu.memory_space<vmem>>, %arg3: memref<32x64xbf16, #tpu.memory_space<vmem>>, %arg4: memref<32x32xf32, #tpu.memory_space<vmem>>, %arg5: memref<1x64xf32, #tpu.memory_space<vmem>>, %arg6: memref<1x64xf32, #tpu.memory_space<vmem>>, %arg7: memref<64x32xbf16, #tpu.memory_space<vmem>>, %arg8: memref<32x32xf32, #tpu.memory_space<vmem>>, %arg9: memref<32x32xf32, #tpu.memory_space<vmem>>) attributes {dimension_semantics = [#tpu.dimension_semantics<parallel>], iteration_bounds = array<i64: 1>, scalar_prefetch = 0 : i64, scratch_operands = 0 : i64, tpu.core_type = #tpu.core_type<tc>, window_params = [{transform_indices = @transform_0, window_bounds = array<i64: 32, 32>}, {transform_indices = @transform_1, window_bounds = array<i64: 32, 64>}, {transform_indices = @transform_2, window_bounds = array<i64: 32, 64>}, {transform_indices = @transform_3, window_bounds = array<i64: 32, 32>}, {pipeline_mode = #tpu.pipeline_mode<synchronous>, transform_indices = @transform_4, window_bounds = array<i64: 1, 64>}, {pipeline_mode = #tpu.pipeline_mode<synchronous>, transform_indices = @transform_5, window_bounds = array<i64: 1, 64>}, {pipeline_mode = #tpu.pipeline_mode<synchronous>, transform_indices = @transform_6, window_bounds = array<i64: 64, 32>}, {transform_indices = @transform_7, window_bounds = array<i64: 32, 32>}, {transform_indices = @transform_8, window_bounds = array<i64: 32, 32>}]} {
    %c0 = arith.constant 0 : index
    %c0_0 = arith.constant 0 : index
    %0 = vector.load %arg2[%c0, %c0_0] : memref<32x64xf32, #tpu.memory_space<vmem>>, vector<32x64xf32>
    %cst = arith.constant dense<0.000000e+00> : vector<32xf32>
    %1 = vector.multi_reduction <add>, %0, %cst [1] : vector<32x64xf32> to vector<32xf32>
    %2 = vector.shape_cast %1 : vector<32xf32> to vector<32x1xf32>
    %cst_1 = arith.constant 6.400000e+01 : f32
    %3 = vector.broadcast %cst_1 : f32 to vector<32x1xf32>
    %4 = arith.divf %2, %3 : vector<32x1xf32>
    %5 = vector.broadcast %4 : vector<32x1xf32> to vector<32x64xf32>
    %6 = arith.subf %0, %5 : vector<32x64xf32>
    %7 = arith.mulf %6, %6 : vector<32x64xf32>
    %cst_2 = arith.constant dense<0.000000e+00> : vector<32xf32>
    %8 = vector.multi_reduction <add>, %7, %cst_2 [1] : vector<32x64xf32> to vector<32xf32>
    %9 = vector.shape_cast %8 : vector<32xf32> to vector<32x1xf32>
    %cst_3 = arith.constant 6.400000e+01 : f32
    %10 = vector.broadcast %cst_3 : f32 to vector<32x1xf32>
    %11 = arith.divf %9, %10 : vector<32x1xf32>
    %cst_4 = arith.constant 9.99999974E-6 : f32
    %12 = vector.broadcast %cst_4 : f32 to vector<32x1xf32>
    %13 = arith.addf %11, %12 : vector<32x1xf32>
    %14 = math.rsqrt %13 : vector<32x1xf32>
    %15 = vector.broadcast %14 : vector<32x1xf32> to vector<32x64xf32>
    %16 = arith.mulf %6, %15 : vector<32x64xf32>
    %c0_5 = arith.constant 0 : index
    %c0_6 = arith.constant 0 : index
    %17 = vector.load %arg5[%c0_5, %c0_6] : memref<1x64xf32, #tpu.memory_space<vmem>>, vector<1x64xf32>
    %18 = vector.broadcast %17 : vector<1x64xf32> to vector<32x64xf32>
    %19 = arith.mulf %16, %18 : vector<32x64xf32>
    %c0_7 = arith.constant 0 : index
    %c0_8 = arith.constant 0 : index
    %20 = vector.load %arg6[%c0_7, %c0_8] : memref<1x64xf32, #tpu.memory_space<vmem>>, vector<1x64xf32>
    %21 = vector.broadcast %20 : vector<1x64xf32> to vector<32x64xf32>
    %22 = arith.addf %19, %21 : vector<32x64xf32>
    %c0_9 = arith.constant 0 : index
    %c0_10 = arith.constant 0 : index
    %23 = vector.load %arg3[%c0_9, %c0_10] : memref<32x64xbf16, #tpu.memory_space<vmem>>, vector<32x64xbf16>
    %24 = arith.extf %23 : vector<32x64xbf16> to vector<32x64xf32>
    %25 = arith.negf %24 : vector<32x64xf32>
    %26 = math.exp %25 : vector<32x64xf32>
    %cst_11 = arith.constant 1.000000e+00 : f32
    %27 = vector.broadcast %cst_11 : f32 to vector<32x64xf32>
    %28 = arith.addf %27, %26 : vector<32x64xf32>
    %29 = arith.divf %27, %28 : vector<32x64xf32>
    %30 = arith.mulf %24, %29 : vector<32x64xf32>
    %31 = arith.mulf %22, %30 : vector<32x64xf32>
    %32 = arith.truncf %31 : vector<32x64xf32> to vector<32x64xbf16>
    %c0_12 = arith.constant 0 : index
    %c0_13 = arith.constant 0 : index
    %33 = vector.load %arg1[%c0_12, %c0_13] : memref<32x32xf32, #tpu.memory_space<vmem>>, vector<32x32xf32>
    %c0_14 = arith.constant 0 : index
    %c0_15 = arith.constant 0 : index
    %34 = vector.load %arg7[%c0_14, %c0_15] : memref<64x32xbf16, #tpu.memory_space<vmem>>, vector<64x32xbf16>
    %cst_16 = arith.constant dense<0.000000e+00> : vector<32x32xf32>
    %35 = tpu.matmul %32, %34, %cst_16 {dimension_numbers = #tpu.dot_dimension_numbers<[1], [0], [0], [1], [0, 0, 1, 1], [], []>} : vector<32x64xbf16>, vector<64x32xbf16>, vector<32x32xf32> -> vector<32x32xf32>
    %36 = arith.addf %33, %35 : vector<32x32xf32>
    %37 = arith.negf %36 : vector<32x32xf32>
    %38 = math.exp %37 : vector<32x32xf32>
    %cst_17 = arith.constant 1.000000e+00 : f32
    %39 = vector.broadcast %cst_17 : f32 to vector<32x32xf32>
    %40 = arith.addf %39, %38 : vector<32x32xf32>
    %41 = arith.divf %39, %40 : vector<32x32xf32>
    %c0_18 = arith.constant 0 : index
    %c0_19 = arith.constant 0 : index
    %42 = vector.load %arg4[%c0_18, %c0_19] : memref<32x32xf32, #tpu.memory_space<vmem>>, vector<32x32xf32>
    %43 = math.tanh %36 : vector<32x32xf32>
    %44 = arith.addf %42, %43 : vector<32x32xf32>
    %45 = arith.mulf %41, %44 : vector<32x32xf32>
    %c0_20 = arith.constant 0 : index
    %c0_21 = arith.constant 0 : index
    %46 = vector.load %arg9[%c0_20, %c0_21] : memref<32x32xf32, #tpu.memory_space<vmem>>, vector<32x32xf32>
    tpu.vector_store %arg9[%c0_20, %c0_21], %45 {strides = array<i32>} : memref<32x32xf32, #tpu.memory_space<vmem>>, vector<32x32xf32>,
    %47 = math.tanh %45 : vector<32x32xf32>
    %48 = arith.mulf %41, %47 : vector<32x32xf32>
    %c0_22 = arith.constant 0 : index
    %c0_23 = arith.constant 0 : index
    %49 = vector.load %arg8[%c0_22, %c0_23] : memref<32x32xf32, #tpu.memory_space<vmem>>, vector<32x32xf32>
    tpu.vector_store %arg8[%c0_22, %c0_23], %48 {strides = array<i32>} : memref<32x32xf32, #tpu.memory_space<vmem>>, vector<32x32xf32>,
    return
  }
  func.func @transform_0(%arg0: i32) -> (i32, i32) {
    %c0_i32 = arith.constant 0 : i32
    %c0_i32_0 = arith.constant 0 : i32
    return %arg0, %c0_i32 : i32, i32
  }
  func.func @transform_1(%arg0: i32) -> (i32, i32) {
    %c0_i32 = arith.constant 0 : i32
    %c0_i32_0 = arith.constant 0 : i32
    return %arg0, %c0_i32 : i32, i32
  }
  func.func @transform_2(%arg0: i32) -> (i32, i32) {
    %c0_i32 = arith.constant 0 : i32
    %c0_i32_0 = arith.constant 0 : i32
    return %arg0, %c0_i32 : i32, i32
  }
  func.func @transform_3(%arg0: i32) -> (i32, i32) {
    %c0_i32 = arith.constant 0 : i32
    %c0_i32_0 = arith.constant 0 : i32
    return %arg0, %c0_i32 : i32, i32
  }
  func.func @transform_4(%arg0: i32) -> (i32, i32) {
    %c0_i32 = arith.constant 0 : i32
    %c0_i32_0 = arith.constant 0 : i32
    %c0_i32_1 = arith.constant 0 : i32
    return %c0_i32, %c0_i32_0 : i32, i32
  }
  func.func @transform_5(%arg0: i32) -> (i32, i32) {
    %c0_i32 = arith.constant 0 : i32
    %c0_i32_0 = arith.constant 0 : i32
    %c0_i32_1 = arith.constant 0 : i32
    return %c0_i32, %c0_i32_0 : i32, i32
  }
  func.func @transform_6(%arg0: i32) -> (i32, i32) {
    %c0_i32 = arith.constant 0 : i32
    %c0_i32_0 = arith.constant 0 : i32
    %c0_i32_1 = arith.constant 0 : i32
    return %c0_i32, %c0_i32_0 : i32, i32
  }
  func.func @transform_7(%arg0: i32) -> (i32, i32) {
    %c0_i32 = arith.constant 0 : i32
    %c0_i32_0 = arith.constant 0 : i32
    return %arg0, %c0_i32 : i32, i32
  }
  func.func @transform_8(%arg0: i32) -> (i32, i32) {
    %c0_i32 = arith.constant 0 : i32
    %c0_i32_0 = arith.constant 0 : i32
    return %arg0, %c0_i32 : i32, i32
  }
}

module attributes {stable_mosaic.version = 11 : i64} {
  func.func @_matmul_kernel(%arg0: i32, %arg1: memref<32x32xf32, #tpu.memory_space<vmem>>, %arg2: memref<32x64xbf16, #tpu.memory_space<vmem>>, %arg3: memref<1x64xf32, #tpu.memory_space<vmem>>, %arg4: memref<32x64xbf16, #tpu.memory_space<vmem>>) attributes {dimension_semantics = [#tpu.dimension_semantics<parallel>], iteration_bounds = array<i64: 1>, scalar_prefetch = 0 : i64, scratch_operands = 0 : i64, tpu.core_type = #tpu.core_type<tc>, window_params = [{transform_indices = @transform_0, window_bounds = array<i64: 32, 32>}, {pipeline_mode = #tpu.pipeline_mode<synchronous>, transform_indices = @transform_1, window_bounds = array<i64: 32, 64>}, {pipeline_mode = #tpu.pipeline_mode<synchronous>, transform_indices = @transform_2, window_bounds = array<i64: 1, 64>}, {transform_indices = @transform_3, window_bounds = array<i64: 32, 64>}]} {
    %c0 = arith.constant 0 : index
    %c0_0 = arith.constant 0 : index
    %0 = vector.load %arg1[%c0, %c0_0] : memref<32x32xf32, #tpu.memory_space<vmem>>, vector<32x32xf32>
    %1 = arith.truncf %0 : vector<32x32xf32> to vector<32x32xbf16>
    %c0_1 = arith.constant 0 : index
    %c0_2 = arith.constant 0 : index
    %2 = vector.load %arg2[%c0_1, %c0_2] : memref<32x64xbf16, #tpu.memory_space<vmem>>, vector<32x64xbf16>
    %cst = arith.constant dense<0.000000e+00> : vector<32x64xf32>
    %3 = tpu.matmul %1, %2, %cst {dimension_numbers = #tpu.dot_dimension_numbers<[1], [0], [0], [1], [0, 0, 1, 1], [], []>} : vector<32x32xbf16>, vector<32x64xbf16>, vector<32x64xf32> -> vector<32x64xf32>
    %c0_3 = arith.constant 0 : index
    %c0_4 = arith.constant 0 : index
    %4 = vector.load %arg3[%c0_3, %c0_4] : memref<1x64xf32, #tpu.memory_space<vmem>>, vector<1x64xf32>
    %5 = vector.broadcast %4 : vector<1x64xf32> to vector<32x64xf32>
    %6 = arith.addf %3, %5 : vector<32x64xf32>
    %7 = arith.truncf %6 : vector<32x64xf32> to vector<32x64xbf16>
    %c0_5 = arith.constant 0 : index
    %c0_6 = arith.constant 0 : index
    %8 = vector.load %arg4[%c0_5, %c0_6] : memref<32x64xbf16, #tpu.memory_space<vmem>>, vector<32x64xbf16>
    tpu.vector_store %arg4[%c0_5, %c0_6], %7 {strides = array<i32>} : memref<32x64xbf16, #tpu.memory_space<vmem>>, vector<32x64xbf16>,
    return
  }
  func.func @transform_0(%arg0: i32) -> (i32, i32) {
    %c0_i32 = arith.constant 0 : i32
    %c0_i32_0 = arith.constant 0 : i32
    return %arg0, %c0_i32 : i32, i32
  }
  func.func @transform_1(%arg0: i32) -> (i32, i32) {
    %c0_i32 = arith.constant 0 : i32
    %c0_i32_0 = arith.constant 0 : i32
    %c0_i32_1 = arith.constant 0 : i32
    return %c0_i32, %c0_i32_0 : i32, i32
  }
  func.func @transform_2(%arg0: i32) -> (i32, i32) {
    %c0_i32 = arith.constant 0 : i32
    %c0_i32_0 = arith.constant 0 : i32
    %c0_i32_1 = arith.constant 0 : i32
    return %c0_i32, %c0_i32_0 : i32, i32
  }
  func.func @transform_3(%arg0: i32) -> (i32, i32) {
    %c0_i32 = arith.constant 0 : i32
    %c0_i32_0 = arith.constant 0 : i32
    return %arg0, %c0_i32 : i32, i32
  }
}

module attributes {stable_mosaic.version = 11 : i64} {
  func.func @_layernorm_kernel(%arg0: i32, %arg1: memref<128x16xbf16, #tpu.memory_space<vmem>>, %arg2: memref<1x16xf32, #tpu.memory_space<vmem>>, %arg3: memref<1x16xf32, #tpu.memory_space<vmem>>, %arg4: memref<128x16xf32, #tpu.memory_space<vmem>>) attributes {dimension_semantics = [#tpu.dimension_semantics<parallel>], iteration_bounds = array<i64: 1>, scalar_prefetch = 0 : i64, scratch_operands = 0 : i64, tpu.core_type = #tpu.core_type<tc>, window_params = [{transform_indices = @transform_0, window_bounds = array<i64: 128, 16>}, {pipeline_mode = #tpu.pipeline_mode<synchronous>, transform_indices = @transform_1, window_bounds = array<i64: 1, 16>}, {pipeline_mode = #tpu.pipeline_mode<synchronous>, transform_indices = @transform_2, window_bounds = array<i64: 1, 16>}, {transform_indices = @transform_3, window_bounds = array<i64: 128, 16>}]} {
    %c0 = arith.constant 0 : index
    %c0_0 = arith.constant 0 : index
    %0 = vector.load %arg1[%c0, %c0_0] : memref<128x16xbf16, #tpu.memory_space<vmem>>, vector<128x16xbf16>
    %1 = arith.extf %0 : vector<128x16xbf16> to vector<128x16xf32>
    %cst = arith.constant dense<0.000000e+00> : vector<128xf32>
    %2 = vector.multi_reduction <add>, %1, %cst [1] : vector<128x16xf32> to vector<128xf32>
    %3 = vector.shape_cast %2 : vector<128xf32> to vector<128x1xf32>
    %cst_1 = arith.constant 1.600000e+01 : f32
    %4 = vector.broadcast %cst_1 : f32 to vector<128x1xf32>
    %5 = arith.divf %3, %4 : vector<128x1xf32>
    %6 = vector.broadcast %5 : vector<128x1xf32> to vector<128x16xf32>
    %7 = arith.subf %1, %6 : vector<128x16xf32>
    %8 = arith.mulf %7, %7 : vector<128x16xf32>
    %cst_2 = arith.constant dense<0.000000e+00> : vector<128xf32>
    %9 = vector.multi_reduction <add>, %8, %cst_2 [1] : vector<128x16xf32> to vector<128xf32>
    %10 = vector.shape_cast %9 : vector<128xf32> to vector<128x1xf32>
    %cst_3 = arith.constant 1.600000e+01 : f32
    %11 = vector.broadcast %cst_3 : f32 to vector<128x1xf32>
    %12 = arith.divf %10, %11 : vector<128x1xf32>
    %cst_4 = arith.constant 9.99999974E-6 : f32
    %13 = vector.broadcast %cst_4 : f32 to vector<128x1xf32>
    %14 = arith.addf %12, %13 : vector<128x1xf32>
    %15 = math.rsqrt %14 : vector<128x1xf32>
    %16 = vector.broadcast %15 : vector<128x1xf32> to vector<128x16xf32>
    %17 = arith.mulf %7, %16 : vector<128x16xf32>
    %c0_5 = arith.constant 0 : index
    %c0_6 = arith.constant 0 : index
    %18 = vector.load %arg2[%c0_5, %c0_6] : memref<1x16xf32, #tpu.memory_space<vmem>>, vector<1x16xf32>
    %19 = vector.broadcast %18 : vector<1x16xf32> to vector<128x16xf32>
    %20 = arith.mulf %17, %19 : vector<128x16xf32>
    %c0_7 = arith.constant 0 : index
    %c0_8 = arith.constant 0 : index
    %21 = vector.load %arg3[%c0_7, %c0_8] : memref<1x16xf32, #tpu.memory_space<vmem>>, vector<1x16xf32>
    %22 = vector.broadcast %21 : vector<1x16xf32> to vector<128x16xf32>
    %23 = arith.addf %20, %22 : vector<128x16xf32>
    %c0_9 = arith.constant 0 : index
    %c0_10 = arith.constant 0 : index
    %24 = vector.load %arg4[%c0_9, %c0_10] : memref<128x16xf32, #tpu.memory_space<vmem>>, vector<128x16xf32>
    tpu.vector_store %arg4[%c0_9, %c0_10], %23 {strides = array<i32>} : memref<128x16xf32, #tpu.memory_space<vmem>>, vector<128x16xf32>,
    return
  }
  func.func @transform_0(%arg0: i32) -> (i32, i32) {
    %c0_i32 = arith.constant 0 : i32
    %c0_i32_0 = arith.constant 0 : i32
    return %arg0, %c0_i32 : i32, i32
  }
  func.func @transform_1(%arg0: i32) -> (i32, i32) {
    %c0_i32 = arith.constant 0 : i32
    %c0_i32_0 = arith.constant 0 : i32
    %c0_i32_1 = arith.constant 0 : i32
    return %c0_i32, %c0_i32_0 : i32, i32
  }
  func.func @transform_2(%arg0: i32) -> (i32, i32) {
    %c0_i32 = arith.constant 0 : i32
    %c0_i32_0 = arith.constant 0 : i32
    %c0_i32_1 = arith.constant 0 : i32
    return %c0_i32, %c0_i32_0 : i32, i32
  }
  func.func @transform_3(%arg0: i32) -> (i32, i32) {
    %c0_i32 = arith.constant 0 : i32
    %c0_i32_0 = arith.constant 0 : i32
    return %arg0, %c0_i32 : i32, i32
  }
}

module attributes {stable_mosaic.version = 11 : i64} {
  func.func @_matmul_kernel(%arg0: i32, %arg1: memref<128x64xbf16, #tpu.memory_space<vmem>>, %arg2: memref<64x64xbf16, #tpu.memory_space<vmem>>, %arg3: memref<1x64xf32, #tpu.memory_space<vmem>>, %arg4: memref<128x64xf32, #tpu.memory_space<vmem>>) attributes {dimension_semantics = [#tpu.dimension_semantics<parallel>], iteration_bounds = array<i64: 1>, scalar_prefetch = 0 : i64, scratch_operands = 0 : i64, tpu.core_type = #tpu.core_type<tc>, window_params = [{transform_indices = @transform_0, window_bounds = array<i64: 128, 64>}, {pipeline_mode = #tpu.pipeline_mode<synchronous>, transform_indices = @transform_1, window_bounds = array<i64: 64, 64>}, {pipeline_mode = #tpu.pipeline_mode<synchronous>, transform_indices = @transform_2, window_bounds = array<i64: 1, 64>}, {transform_indices = @transform_3, window_bounds = array<i64: 128, 64>}]} {
    %c0 = arith.constant 0 : index
    %c0_0 = arith.constant 0 : index
    %0 = vector.load %arg1[%c0, %c0_0] : memref<128x64xbf16, #tpu.memory_space<vmem>>, vector<128x64xbf16>
    %c0_1 = arith.constant 0 : index
    %c0_2 = arith.constant 0 : index
    %1 = vector.load %arg2[%c0_1, %c0_2] : memref<64x64xbf16, #tpu.memory_space<vmem>>, vector<64x64xbf16>
    %cst = arith.constant dense<0.000000e+00> : vector<128x64xf32>
    %2 = tpu.matmul %0, %1, %cst {dimension_numbers = #tpu.dot_dimension_numbers<[1], [0], [0], [1], [0, 0, 1, 1], [], []>} : vector<128x64xbf16>, vector<64x64xbf16>, vector<128x64xf32> -> vector<128x64xf32>
    %c0_3 = arith.constant 0 : index
    %c0_4 = arith.constant 0 : index
    %3 = vector.load %arg3[%c0_3, %c0_4] : memref<1x64xf32, #tpu.memory_space<vmem>>, vector<1x64xf32>
    %4 = vector.broadcast %3 : vector<1x64xf32> to vector<128x64xf32>
    %5 = arith.addf %2, %4 : vector<128x64xf32>
    %6 = arith.negf %5 : vector<128x64xf32>
    %7 = math.exp %6 : vector<128x64xf32>
    %cst_5 = arith.constant 1.000000e+00 : f32
    %8 = vector.broadcast %cst_5 : f32 to vector<128x64xf32>
    %9 = arith.addf %8, %7 : vector<128x64xf32>
    %10 = arith.divf %8, %9 : vector<128x64xf32>
    %c0_6 = arith.constant 0 : index
    %c0_7 = arith.constant 0 : index
    %11 = vector.load %arg4[%c0_6, %c0_7] : memref<128x64xf32, #tpu.memory_space<vmem>>, vector<128x64xf32>
    tpu.vector_store %arg4[%c0_6, %c0_7], %10 {strides = array<i32>} : memref<128x64xf32, #tpu.memory_space<vmem>>, vector<128x64xf32>,
    return
  }
  func.func @transform_0(%arg0: i32) -> (i32, i32) {
    %c0_i32 = arith.constant 0 : i32
    %c0_i32_0 = arith.constant 0 : i32
    return %arg0, %c0_i32 : i32, i32
  }
  func.func @transform_1(%arg0: i32) -> (i32, i32) {
    %c0_i32 = arith.constant 0 : i32
    %c0_i32_0 = arith.constant 0 : i32
    %c0_i32_1 = arith.constant 0 : i32
    return %c0_i32, %c0_i32_0 : i32, i32
  }
  func.func @transform_2(%arg0: i32) -> (i32, i32) {
    %c0_i32 = arith.constant 0 : i32
    %c0_i32_0 = arith.constant 0 : i32
    %c0_i32_1 = arith.constant 0 : i32
    return %c0_i32, %c0_i32_0 : i32, i32
  }
  func.func @transform_3(%arg0: i32) -> (i32, i32) {
    %c0_i32 = arith.constant 0 : i32
    %c0_i32_0 = arith.constant 0 : i32
    return %arg0, %c0_i32 : i32, i32
  }
}

</mosaic_0001>

<bundles_post_ra>
// kernel: tile.90
= control target key start
LH: loop header
LB: loop body
LE: loop exit
PB: predicated region body
PF: predicated region fallthrough
CT: control target
= control target key end

     0   :  { %2 = vsyncpa [#allocation1], 0  ;;  %s44_s6 = smov [#allocation0]   ;;  %s70_s0 = inlined_call_operand.hbm [shape: f32[16], index: 0, kind: input, shape index: {}]   ;;  %s71_s1 = inlined_call_operand.vmem [shape: f32[4,16], index: 1, kind: output, shape index: {}]  }
   0x1   :  { %s9_s7 = sshll.u32 %s44_s6, 4  ;;  %s20_s10 = scalar_lea.hbm %s70_s0, 16  ;;  %s10_s7 = int_to_ptr.vmem [resolvable:$true] %s9_s7 }
   0x2   :  { %p21_p0 = scmp.ne.s32.totalorder %s70_s0, %s20_s10  ;;  %p24_p1 = scmp.lt.u32.totalorder %s20_s10, %s70_s0 }
   0x4   :  { %p26_p2 = pnand %p24_p1, %p21_p0 }
   0x6   :  { %29 = shalt.err (!%p26_p2)
}
   0x7   :  { %s30_s15 = scalar_lea.vmem %s10_s7, 16  ;;  %s34_s16 = scalar_lea.vmem %s10_s7, 32 }
   0x8   :  { %p31_p3 = scmp.ne.s32.totalorder %s10_s7, %s30_s15  ;;  %p35_p4 = scmp.lt.s32.totalorder %s10_s7, %s10_s7 }
   0x9   :  { %p36_p5 = scmp.lt.s32.totalorder %s34_s16, %s30_s15 }
   0xb   :  { %p37_p6 = por %p36_p5, %p35_p4 }
   0xd   :  { %p38_p7 = pnand %p37_p6, %p31_p3 }
   0xf   :  { %41 = shalt.err (!%p38_p7)
}
  0x10   :  { %12 = dma.hbm_to_vmem [thread:$0]  %s70_s0, 16, %s10_s7, [#allocation1]  }
  0x11   :  { %42 = dma.done.wait [#allocation1], 16  }
  0x12   :  { %43 = vsyncadd [#allocation1], 4294967280  ;;  %v16_v0 = vld [vmem:[#allocation0] ss:$0 sm:$0xff] }
  0x13   :  { %17 = vst [vmem:[%s71_s1] sm:$0xf] %v16_v0 }
  0x14   :  { %18 = vsyncpa [#allocation1], 1 }

// kernel: tile.85
= control target key start
LH: loop header
LB: loop body
LE: loop exit
PB: predicated region body
PF: predicated region fallthrough
CT: control target
= control target key end

     0   :  { %s22_s0 = inlined_call_operand.vmem [shape: f32[128], index: 0, kind: input, shape index: {}]   ;;  %s23_s1 = inlined_call_operand.vmem [shape: f32[4,128], index: 1, kind: output, shape index: {}]  }
   0x1   :  { %v4_v0 = vld [vmem:[%s22_s0] ss:$0 sm:$0xff] }
   0x2   :  { %5 = vst [vmem:[%s23_s1] sm:$0xf] %v4_v0 }

// kernel: tile.91
= control target key start
LH: loop header
LB: loop body
LE: loop exit
PB: predicated region body
PF: predicated region fallthrough
CT: control target
= control target key end

     0   :  { %vm7_vm0 = vcmask 130048   ;;  %s37_s8 = smov 16   ;;  %s38_s9 = smov 32   ;;  %vm13_vm1 = vcmask 523648   ;;  %vm19_vm2 = vcmask 392448   ;;  %vm25_vm3 = vcmask 261248   ;;  %s55_s0 = inlined_call_operand.vmem [shape: f32[4,16], index: 0, kind: input, shape index: {}]   ;;  %s56_s1 = inlined_call_operand.vmem [shape: f32[1,64], index: 1, kind: output, shape index: {}]  }
   0x1   :  { %v4_v0 = vld [vmem:[%s55_s0] sm:$0xf]  ;;  %s36_s0 = smov 48  }
   0x2   :  { %5 = vst [vmem:[#allocation1] sm:$0xf] %v4_v0 }
   0x9   :  { %v10_v1 = vld [vmem:[#allocation1 + $0x3] sm:$0x1]   ;;  %v22_v2 = vld [vmem:[#allocation1 + $0x1] sm:$0x1]   ;;  %v6_v3 = vld [vmem:[#allocation1] sm:$0x1]  }
   0xa   :  { %11 = vrot.lane.b32.xlu0 %v10_v1, %s36_s0  ;;  %23 = vrot.lane.b32.xlu1 %v22_v2, %s37_s8  ;;  %v16_v4 = vld [vmem:[#allocation1 + $0x2] sm:$0x1]   ;;  %8 = vst.msk [vmem:[#allocation0] sm:$0x1] %vm7_vm0, %v6_v3  }
   0xe   :  { %17 = vrot.lane.b32.xlu0 %v16_v4, %s38_s9 }
  0x7c   :  { %v12_v5 = vpop.permute.xlu0 %11   ;;  %v24_v6 = vpop.permute.xlu1 %23  }
  0x7d   :  { %14 = vst.msk [vmem:[#allocation0] sm:$0x1] %vm13_vm1, %v12_v5  }
  0x80   :  { %v18_v7 = vpop.permute.xlu0 %17  }
  0x81   :  { %20 = vst.msk [vmem:[#allocation0] sm:$0x1] %vm19_vm2, %v18_v7  }
  0x82   :  { %26 = vst.msk [vmem:[#allocation0] sm:$0x1] %vm25_vm3, %v24_v6  }
  0x89   :  { %v30_v8 = vld [vmem:[#allocation0] sm:$0x1] }
  0x8a   :  { %32 = vst [vmem:[%s56_s1] sm:$0x1] %v30_v8 }

// kernel: upsample_forward.10
= control target key start
LH: loop header
LB: loop body
LE: loop exit
PB: predicated region body
PF: predicated region fallthrough
CT: control target
= control target key end

     0   :  { %vm52_vm0 = vcmask 261120   ;;  %s215_s1 = inlined_call_operand.vmem [shape: bf16[32,128], index: 1, kind: input, shape index: {}]   ;;  %s216_s0 = inlined_call_operand.vmem [shape: bf16[32,32], index: 0, kind: input, shape index: {}]   ;;  %s217_s2 = inlined_call_operand.vmem [shape: f32[1,128], index: 2, kind: input, shape index: {}]   ;;  %s218_s3 = inlined_call_operand.vmem [shape: bf16[32,128], index: 3, kind: output, shape index: {}]  }
   0x1   :  { %v170_v0 = vld [vmem:[%s215_s1] sm:$0xff]   ;;  %v171_v1 = vld [vmem:[%s215_s1 + $0x8] sm:$0xff]  }
   0x2   :  { %162 = vmatprep.subr.bf16.mxu0 %v170_v0  ;;  %v172_v2 = vld [vmem:[%s216_s0] sm:$0xff]   ;;  %v173_v3 = vld [vmem:[%s216_s0 + $0x8] sm:$0xff]  }
   0x3   :  { %163 = vmatpush3.bf16.msra.mxu0 %v170_v0  ;;  %166 = vmatprep.mubr.msk.bf16.mxu0 %vm52_vm0, %v172_v2  ;;  %v132_v5 = vld [vmem:[%s217_s2] ss:$0 sm:$0xff] }
   0x4   :  { %164 = vmatprep.subr.bf16.mxu0 %v171_v1 }
   0x7   :  { %165 = vmatpush3.bf16.msra.mxu0 %v171_v1 }
   0xa   :  { %167 = vmatmul.mubr.msk.bf16.vlgmr.msra.gmra.mrb[0].mxu0 %vm52_vm0, %v173_v3 }
  0xdd   :  { %v168_v4 = vpop.f32.mrb[0].mxu0 }
  0xde   :  { %v93_v6 = vpop.f32.mrb[1].mxu0  ;;  %v102_v8 = vadd.f32 %v168_v4, %v132_v5 }
  0xdf   :  { %v169_v7 = vpop.f32.mrb[2].mxu0  ;;  %v94_v11 = vadd.f32 %v132_v5, %v93_v6 }
  0xe0   :  { %v105_v9 = vadd.f32 %v169_v7, %v132_v5  ;;  %v96_v10 = vpop.f32.mrb[3].mxu0 }
  0xe1   :  { %v97_v12 = vadd.f32 %v132_v5, %v96_v10 }
  0xe2   :  { %v155_v13 = vpack.c.bf16 %v105_v9, %v102_v8 }
  0xe3   :  { %v150_v14 = vpack.c.bf16 %v97_v12, %v94_v11 }
  0xe4   :  { %157 = vst [vmem:[%s218_s3 + $0x8] sm:$0xff] %v155_v13  }
  0xe5   :  { %151 = vst [vmem:[%s218_s3] sm:$0xff] %v150_v14  }

// kernel: upsample_forward.9
= control target key start
LH: loop header
LB: loop body
LE: loop exit
PB: predicated region body
PF: predicated region fallthrough
CT: control target
= control target key end

     0   :  { %vm31_vm0 = vcmask 261120   ;;  %vm344_vm1 = vcmask 257024   ;;  %s577_s0 = inlined_call_operand.vmem [shape: f32[32,32], index: 0, kind: input, shape index: {}]   ;;  %s578_s1 = inlined_call_operand.vmem [shape: f32[32,32], index: 1, kind: input, shape index: {}]   ;;  %s579_s4 = inlined_call_operand.vmem [shape: bf16[32,32], index: 4, kind: input, shape index: {}]   ;;  %s580_s5 = inlined_call_operand.vmem [shape: bf16[32,32], index: 5, kind: input, shape index: {}]   ;;  %s581_s2 = inlined_call_operand.vmem [shape: f32[1,32], index: 2, kind: input, shape index: {}]   ;;  %s582_s3 = inlined_call_operand.vmem [shape: f32[1,32], index: 3, kind: input, shape index: {}]   ;;  %s583_s6 = inlined_call_operand.vmem [shape: f32[1,32], index: 6, kind: input, shape index: {}]   ;;  %s584_s7 = inlined_call_operand.vmem [shape: bf16[32,32], index: 7, kind: output, shape index: {}]  }
   0x1   :  { %v27_v0 = vld [vmem:[%s577_s0] sm:$0xff]  ;;  %v28_v2 = vld [vmem:[%s577_s0 + $0x8] sm:$0xff]  ;;  %v29_v8 = vld [vmem:[%s577_s0 + $0x10] sm:$0xff] }
   0x2   :  { %v109_v1 = vld [vmem:[%s578_s1] sm:$0xff]  ;;  %v32_v3 = vsel %vm31_vm0, %v27_v0, 0.0  ;;  %v110_v5 = vld [vmem:[%s578_s1 + $0x8] sm:$0xff]  ;;  %v35_v6 = vsel %vm31_vm0, %v28_v2, 0.0  ;;  %v30_v9 = vld [vmem:[%s577_s0 + $0x18] sm:$0xff]  ;;  %v38_v10 = vsel %vm31_vm0, %v29_v8, 0.0 }
   0x3   :  { %v113_v4 = vsel %vm31_vm0, %v109_v1, 0.0  ;;  %33 = vadd.xlane.f32.xlu0 %v32_v3  ;;  %v116_v7 = vsel %vm31_vm0, %v110_v5, 0.0  ;;  %v41_v11 = vsel %vm31_vm0, %v30_v9, 0.0  ;;  %v111_v12 = vld [vmem:[%s578_s1 + $0x10] sm:$0xff]  ;;  %v112_v13 = vld [vmem:[%s578_s1 + $0x18] sm:$0xff]  ;;  %v400_v56 = vld [vmem:[%s579_s4] sm:$0xff]  }
   0x4   :  { %114 = vadd.xlane.f32.xlu1 %v113_v4  ;;  %v119_v14 = vsel %vm31_vm0, %v111_v12, 0.0  ;;  %v122_v15 = vsel %vm31_vm0, %v112_v13, 0.0  ;;  %388 = vmatprep.subr.bf16.mxu0 %v400_v56  ;;  %v401_v57 = vld [vmem:[%s580_s5] sm:$0xff]   ;;  %v402_v58 = vld [vmem:[%s579_s4 + $0x8] sm:$0xff]  }
   0x5   :  { %389 = vmatpush3.bf16.msra.mxu0 %v400_v56  ;;  %380 = vmatprep.subr.bf16.mxu1 %v401_v57  ;;  %v403_v59 = vld [vmem:[%s580_s5 + $0x8] sm:$0xff]  }
   0x6   :  { %390 = vmatprep.subr.bf16.mxu0 %v402_v58  ;;  %381 = vmatpush3.bf16.msra.mxu1 %v401_v57 }
   0x7   :  { %36 = vadd.xlane.f32.xlu0 %v35_v6  ;;  %382 = vmatprep.subr.bf16.mxu1 %v403_v59 }
   0x8   :  { %117 = vadd.xlane.f32.xlu1 %v116_v7 }
   0x9   :  { %391 = vmatpush3.bf16.msra.mxu0 %v402_v58 }
   0xa   :  { %383 = vmatpush3.bf16.msra.mxu1 %v403_v59 }
   0xb   :  { %39 = vadd.xlane.f32.xlu0 %v38_v10 }
   0xc   :  { %42 = vadd.xlane.f32.xlu1 %v41_v11 }
   0xf   :  { %120 = vadd.xlane.f32.xlu0 %v119_v14 }
  0x10   :  { %123 = vadd.xlane.f32.xlu1 %v122_v15 }
  0x90   :  { %v34_v16 = vpop.xlane.xlu0 %33 }
  0x91   :  { %v115_v17 = vpop.xlane.xlu1 %114  ;;  %v45_v18 = vmul.f32 0.03125, %v34_v16 }
  0x92   :  { %v125_v19 = vmul.f32 0.03125, %v115_v17 }
  0x93   :  { %v492_v20 = vsub.f32 %v27_v0, %v45_v18 }
  0x94   :  { %v494_v21 = vsub.f32 %v109_v1, %v125_v19  ;;  %v37_v22 = vpop.xlane.xlu0 %36 }
  0x95   :  { %v118_v23 = vpop.xlane.xlu1 %117  ;;  %v46_v24 = vmul.f32 0.03125, %v37_v22  ;;  %v53_v26 = vmul.f32 %v492_v20, %v492_v20 }
  0x96   :  { %v126_v25 = vmul.f32 0.03125, %v118_v23  ;;  %v133_v27 = vmul.f32 %v494_v21, %v494_v21  ;;  %v353_v23 = vld [vmem:[%s581_s2] ss:$0 sm:$0xff] }
  0x97   :  { %v500_v28 = vsub.f32 %v28_v2, %v46_v24  ;;  %v57_v30 = vsel %vm31_vm0, %v53_v26, 0.0 }
  0x98   :  { %v502_v29 = vsub.f32 %v110_v5, %v126_v25  ;;  %58 = vadd.xlane.f32.xlu0 %v57_v30  ;;  %v40_v31 = vpop.xlane.xlu0 %39  ;;  %v137_v33 = vsel %vm31_vm0, %v133_v27, 0.0 }
  0x99   :  { %v43_v32 = vpop.xlane.xlu1 %42  ;;  %v47_v34 = vmul.f32 0.03125, %v40_v31  ;;  %v54_v36 = vmul.f32 %v500_v28, %v500_v28  ;;  %v354_v31 = vld [vmem:[%s582_s3] ss:$0 sm:$0xff] }
  0x9a   :  { %v48_v35 = vmul.f32 0.03125, %v43_v32  ;;  %v134_v37 = vmul.f32 %v502_v29, %v502_v29 }
  0x9b   :  { %v510_v38 = vsub.f32 %v29_v8, %v47_v34  ;;  %v60_v40 = vsel %vm31_vm0, %v54_v36, 0.0 }
  0x9c   :  { %v512_v39 = vsub.f32 %v30_v9, %v48_v35  ;;  %138 = vadd.xlane.f32.xlu0 %v137_v33  ;;  %61 = vadd.xlane.f32.xlu1 %v60_v40  ;;  %v121_v41 = vpop.xlane.xlu0 %120  ;;  %v140_v43 = vsel %vm31_vm0, %v134_v37, 0.0 }
  0x9d   :  { %v124_v42 = vpop.xlane.xlu1 %123  ;;  %v127_v44 = vmul.f32 0.03125, %v121_v41  ;;  %v55_v46 = vmul.f32 %v510_v38, %v510_v38 }
  0x9e   :  { %v128_v45 = vmul.f32 0.03125, %v124_v42  ;;  %v56_v47 = vmul.f32 %v512_v39, %v512_v39 }
  0x9f   :  { %v520_v48 = vsub.f32 %v111_v12, %v127_v44  ;;  %v63_v50 = vsel %vm31_vm0, %v55_v46, 0.0 }
  0xa0   :  { %v522_v49 = vsub.f32 %v112_v13, %v128_v45  ;;  %141 = vadd.xlane.f32.xlu1 %v140_v43  ;;  %64 = vadd.xlane.f32.xlu0 %v63_v50  ;;  %v66_v51 = vsel %vm31_vm0, %v56_v47, 0.0 }
  0xa1   :  { %v135_v52 = vmul.f32 %v520_v48, %v520_v48 }
  0xa2   :  { %v136_v53 = vmul.f32 %v522_v49, %v522_v49 }
  0xa3   :  { %v143_v54 = vsel %vm31_vm0, %v135_v52, 0.0 }
  0xa4   :  { %67 = vadd.xlane.f32.xlu1 %v66_v51  ;;  %144 = vadd.xlane.f32.xlu0 %v143_v54  ;;  %v146_v55 = vsel %vm31_vm0, %v136_v53, 0.0 }
  0xa8   :  { %147 = vadd.xlane.f32.xlu1 %v146_v55 }
 0x125   :  { %v59_v60 = vpop.xlane.xlu0 %58 }
 0x126   :  { %v69_v61 = vmul.f32 0.03125, %v59_v60 }
 0x128   :  { %v73_v62 = vadd.f32 1e-06, %v69_v61 }
 0x129   :  { %v62_v63 = vpop.xlane.xlu1 %61  ;;  %v139_v0 = vpop.xlane.xlu0 %138 }
 0x12a   :  { %404 = vrsqrt.f32 %v73_v62  ;;  %v70_v1 = vmul.f32 0.03125, %v62_v63  ;;  %v149_v2 = vmul.f32 0.03125, %v139_v0 }
 0x12c   :  { %v74_v3 = vadd.f32 1e-06, %v70_v1  ;;  %v153_v4 = vadd.f32 1e-06, %v149_v2 }
 0x12d   :  { %v142_v5 = vpop.xlane.xlu1 %141  ;;  %v65_v6 = vpop.xlane.xlu0 %64 }
 0x12e   :  { %406 = vrsqrt.f32 %v74_v3  ;;  %v150_v7 = vmul.f32 0.03125, %v142_v5  ;;  %v71_v8 = vmul.f32 0.03125, %v65_v6 }
 0x12f   :  { %408 = vrsqrt.f32 %v153_v4 }
 0x130   :  { %v154_v9 = vadd.f32 1e-06, %v150_v7  ;;  %v75_v10 = vadd.f32 1e-06, %v71_v8 }
 0x131   :  { %v68_v11 = vpop.xlane.xlu1 %67  ;;  %v145_v12 = vpop.xlane.xlu0 %144 }
 0x132   :  { %410 = vrsqrt.f32 %v154_v9  ;;  %v72_v13 = vmul.f32 0.03125, %v68_v11  ;;  %v151_v14 = vmul.f32 0.03125, %v145_v12 }
 0x133   :  { %412 = vrsqrt.f32 %v75_v10 }
 0x134   :  { %v405_v15 = vpop.eup %404  ;;  %v76_v16 = vadd.f32 1e-06, %v72_v13  ;;  %v155_v17 = vadd.f32 1e-06, %v151_v14 }
 0x135   :  { %v148_v18 = vpop.xlane.xlu1 %147  ;;  %v81_v19 = vmul.f32 %v405_v15, %v492_v20 }
 0x136   :  { %414 = vrsqrt.f32 %v76_v16  ;;  %v152_v22 = vmul.f32 0.03125, %v148_v18 }
 0x137   :  { %416 = vrsqrt.f32 %v155_v17  ;;  %v92_v30 = vmul.f32 %v353_v23, %v81_v19 }
 0x138   :  { %v407_v24 = vpop.eup %406  ;;  %v156_v25 = vadd.f32 1e-06, %v152_v22 }
 0x139   :  { %v409_v26 = vpop.eup %408  ;;  %v82_v27 = vmul.f32 %v407_v24, %v500_v28  ;;  %v103_v35 = vadd.f32 %v354_v31, %v92_v30 }
 0x13a   :  { %418 = vrsqrt.f32 %v156_v25  ;;  %v161_v20 = vmul.f32 %v409_v26, %v494_v21 }
 0x13b   :  { %v93_v32 = vmul.f32 %v353_v23, %v82_v27 }
 0x13c   :  { %v411_v33 = vpop.eup %410  ;;  %v165_v40 = vmul.f32 %v353_v23, %v161_v20 }
 0x13d   :  { %v413_v34 = vpop.eup %412  ;;  %v104_v36 = vadd.f32 %v354_v31, %v93_v32  ;;  %v162_v37 = vmul.f32 %v411_v33, %v502_v29 }
 0x13e   :  { %v83_v41 = vmul.f32 %v413_v34, %v510_v38  ;;  %v169_v46 = vadd.f32 %v354_v31, %v165_v40 }
 0x13f   :  { %v107_v42 = vpack.c.bf16 %v104_v36, %v103_v35  ;;  %v166_v28 = vmul.f32 %v353_v23, %v162_v37 }
 0x140   :  { %v415_v43 = vpop.eup %414  ;;  %v94_v47 = vmul.f32 %v353_v23, %v83_v41 }
 0x141   :  { %v417_v44 = vpop.eup %416  ;;  %v84_v45 = vmul.f32 %v415_v43, %v512_v39  ;;  %392 = vmatprep.mubr.msk.bf16.mxu0 %vm31_vm0, %v107_v42  ;;  %v170_v21 = vadd.f32 %v354_v31, %v166_v28 }
 0x142   :  { %v163_v50 = vmul.f32 %v417_v44, %v520_v48  ;;  %v105_v38 = vadd.f32 %v354_v31, %v94_v47 }
 0x143   :  { %v173_v51 = vpack.c.bf16 %v170_v21, %v169_v46  ;;  %v95_v52 = vmul.f32 %v353_v23, %v84_v45 }
 0x144   :  { %v419_v53 = vpop.eup %418  ;;  %v167_v55 = vmul.f32 %v353_v23, %v163_v50 }
 0x145   :  { %v164_v29 = vmul.f32 %v419_v53, %v522_v49  ;;  %384 = vmatprep.mubr.msk.bf16.mxu1 %vm31_vm0, %v173_v51  ;;  %v106_v54 = vadd.f32 %v354_v31, %v95_v52  ;;  %v363_v49 = vld [vmem:[%s583_s6] ss:$0 sm:$0xff] }
 0x146   :  { %v171_v39 = vadd.f32 %v354_v31, %v167_v55 }
 0x147   :  { %v108_v56 = vpack.c.bf16 %v106_v54, %v105_v38  ;;  %v168_v57 = vmul.f32 %v353_v23, %v164_v29 }
 0x149   :  { %393 = vmatmul.mubr.msk.bf16.vlgmr.msra.gmra.mrb[0].mxu0 %vm31_vm0, %v108_v56  ;;  %v172_v58 = vadd.f32 %v354_v31, %v168_v57 }
 0x14b   :  { %v174_v59 = vpack.c.bf16 %v172_v58, %v171_v39 }
 0x14d   :  { %385 = vmatmul.mubr.msk.bf16.vlgmr.msra.gmra.mrb[0].mxu1 %vm31_vm0, %v174_v59 }
 0x21c   :  { %v394_v48 = vpop.f32.mrb[0].mxu0 }
 0x21d   :  { %v302_v60 = vpop.f32.mrb[1].mxu0 }
 0x21e   :  { %v395_v61 = vpop.f32.mrb[2].mxu0 }
 0x21f   :  { %v305_v62 = vpop.f32.mrb[3].mxu0 }
 0x220   :  { %v386_v63 = vpop.f32.mrb[0].mxu1 }
 0x221   :  { %v311_v0 = vadd.f32 %v394_v48, %v386_v63  ;;  %v235_v1 = vpop.f32.mrb[1].mxu1 }
 0x222   :  { %v303_v2 = vadd.f32 %v302_v60, %v235_v1  ;;  %v387_v3 = vpop.f32.mrb[2].mxu1 }
 0x223   :  { %v326_v4 = vadd.f32 %v363_v49, %v311_v0  ;;  %v314_v5 = vadd.f32 %v395_v61, %v387_v3  ;;  %v238_v6 = vpop.f32.mrb[3].mxu1 }
 0x224   :  { %v324_v7 = vadd.f32 %v363_v49, %v303_v2  ;;  %v306_v8 = vadd.f32 %v305_v62, %v238_v6 }
 0x225   :  { %v370_v9 = vpack.c.bf16 %v326_v4, %v326_v4  ;;  %v327_v10 = vadd.f32 %v363_v49, %v314_v5 }
 0x226   :  { %v368_v11 = vpack.c.bf16 %v324_v7, %v324_v7  ;;  %v325_v12 = vadd.f32 %v363_v49, %v306_v8 }
 0x227   :  { %347 = vst.msk [vmem:[%s584_s7 + $0x8] sm:$0xf] %vm344_vm1, %v370_v9  ;;  %v371_v13 = vpack.c.bf16 %v327_v10, %v327_v10 }
 0x228   :  { %345 = vst.msk [vmem:[%s584_s7] sm:$0xf] %vm344_vm1, %v368_v11  ;;  %v369_v14 = vpack.c.bf16 %v325_v12, %v325_v12 }
 0x229   :  { %348 = vst.msk [vmem:[%s584_s7 + $0xc] sm:$0xf] %vm344_vm1, %v371_v13 }
 0x22a   :  { %346 = vst.msk [vmem:[%s584_s7 + $0x4] sm:$0xf] %vm344_vm1, %v369_v14 }

// kernel: upsample_forward.11
= control target key start
LH: loop header
LB: loop body
LE: loop exit
PB: predicated region body
PF: predicated region fallthrough
CT: control target
= control target key end

     0   :  { %s688_s12 = smov 0   ;;  %s866_s0 = inlined_call_operand.vmem [shape: bf16[2,6,768], index: 0, kind: input, shape index: {}]   ;;  %s867_s1 = inlined_call_operand.vmem [shape: f32[9,512], index: 1, kind: input, shape index: {}]   ;;  %s868_s2 = inlined_call_operand.vmem [shape: f32[1,512], index: 2, kind: input, shape index: {}]   ;;  %s869_s3 = inlined_call_operand.vmem [shape: bf16[2,4,512], index: 3, kind: output, shape index: {}]  }
   0x1 LB: > { %s612_s13 = sadd.s32 4294967295, %s665_s12   ;;  %p616_p0 = scmp.ge.s32.totalorder %s665_s12, 1  ;;  %s665_s12 = sphi %s688_s12, %s13_s12  }
   0x2   : > { %p137_p1 = scmp.lt.s32.totalorder %s665_s12, 3 }
   0x4   : > { %p138_p2 = pnand %p616_p0, %p137_p1 }
   0x5   : > { %p161_p3 = scmp.lt.s32.totalorder (!%p138_p2), %s612_s13, 1  ;;  %v190_v0 = vlaneseq (!%p138_p2)  ;;  %v701_v1 = vld [vmem:[%s867_s1] sm:$0xff] (!%p138_p2)  ;;  %v708_v3 = vld [vmem:[%s867_s1 + $0x8] sm:$0xff] (!%p138_p2)  ;;  %v713_v4 = vld [vmem:[%s867_s1 + $0x10] sm:$0xff] (!%p138_p2) }
   0x6   : > { %141 = sbr.rel (%p138_p2) target bundleno = 87 (0x57), region = 32  ;;  %v188_v5 = vld [vmem:[%s868_s2] sm:$0xf] (!%p138_p2)  ;;  %v722_v6 = vld [vmem:[%s867_s1 + $0x18] sm:$0xff] (!%p138_p2) }
   0x7   : > { %v703_v2 = vshrl.u32 (!%p138_p2), %v190_v0, 7 }
   0x9   : > { %v192_v7 = vsub.s32 (!%p138_p2), 0, %v703_v2  ;;  %v196_v8 = vsub.s32 (!%p138_p2), 1, %v703_v2  ;;  %v200_v9 = vsub.s32 (!%p138_p2), 2, %v703_v2  ;;  %v728_v10 = vsub.s32 (!%p138_p2), 3, %v703_v2 }
   0xa   : > { %v731_v11 = vsub.s32 (!%p138_p2), 4, %v703_v2  ;;  %v734_v12 = vsub.s32 (!%p138_p2), 5, %v703_v2  ;;  %v737_v13 = vsub.s32 (!%p138_p2), 6, %v703_v2  ;;  %v740_v14 = vsub.s32 (!%p138_p2), 7, %v703_v2 }
   0xb   : > { %v193_v15 = vrot.slane (!%p138_p2), %v188_v5, %v192_v7  ;;  %v197_v16 = vrot.slane (!%p138_p2), %v188_v5, %v196_v8  ;;  %v201_v17 = vrot.slane (!%p138_p2), %v188_v5, %v200_v9  ;;  %v205_v18 = vrot.slane (!%p138_p2), %v188_v5, %v728_v10 }
   0xc   : > { %v217_v22 = vrot.slane (!%p138_p2), %v701_v1, %v192_v7  ;;  %v221_v23 = vrot.slane (!%p138_p2), %v708_v3, %v192_v7  ;;  %v225_v24 = vrot.slane (!%p138_p2), %v713_v4, %v192_v7  ;;  %v229_v25 = vrot.slane (!%p138_p2), %v722_v6, %v192_v7 }
   0xd   : > { %s871_s13 = smov (!%p161_p3, %s612_s13), 1  ;;  %v241_v32 = vrot.slane %v701_v1, %v196_v8  ;;  %v245_v33 = vrot.slane %v708_v3, %v196_v8  ;;  %v249_v38 = vrot.slane %v713_v4, %v196_v8  ;;  %v253_v39 = vrot.slane %v722_v6, %v196_v8 }
   0xe   : > { %s633_s22 = smul.u32 24, %s871_s13  ;;  %v265_v48 = vrot.slane %v701_v1, %v200_v9  ;;  %v269_v49 = vrot.slane %v708_v3, %v200_v9  ;;  %v273_v52 = vrot.slane %v713_v4, %v200_v9  ;;  %v277_v53 = vrot.slane %v722_v6, %v200_v9  ;;  %s632_s9 = sshll.u32 %s871_s13, 3 }
   0xf   : > { %v289_v60 = vrot.slane %v701_v1, %v728_v10  ;;  %v293_v61 = vrot.slane %v708_v3, %v728_v10  ;;  %v297_v0 = vrot.slane %v713_v4, %v728_v10  ;;  %v301_v5 = vrot.slane %v722_v6, %v728_v10  ;;  %s170_s14 = scalar_lea.vmem %s869_s3, %s632_s9 }
  0x10   : > { %s165_s27 = scalar_lea.vmem %s866_s0, %s633_s22  ;;  %v333_v10 = vrot.slane %v713_v4, %v731_v11 }
  0x11   : > { %v171_v19 = vld [vmem:[%s165_s27] sm:$0x77]  ;;  %v172_v20 = vld [vmem:[%s165_s27 + $0x8] sm:$0x77]  ;;  %v173_v21 = vld [vmem:[%s165_s27 + $0x10] sm:$0x77] }
  0x12   : > { %v750_v26 = vunpack.c.l.bf16 %v171_v19  ;;  %v752_v27 = vunpack.c.h.bf16 %v171_v19  ;;  %v754_v28 = vunpack.c.l.bf16 %v172_v20  ;;  %v756_v29 = vunpack.c.h.bf16 %v172_v20 }
  0x13   : > { %v758_v30 = vunpack.c.l.bf16 %v173_v21  ;;  %v760_v31 = vunpack.c.h.bf16 %v173_v21  ;;  %v329_v19 = vrot.slane %v708_v3, %v731_v11 }
  0x14   : > { %v230_v34 = vmul.f32 %v217_v22, %v750_v26  ;;  %v231_v35 = vmul.f32 %v221_v23, %v752_v27  ;;  %v232_v36 = vmul.f32 %v225_v24, %v754_v28  ;;  %v233_v37 = vmul.f32 %v229_v25, %v756_v29 }
  0x15   : > { %v254_v40 = vmul.f32 %v241_v32, %v752_v27  ;;  %v255_v41 = vmul.f32 %v245_v33, %v754_v28  ;;  %v256_v46 = vmul.f32 %v249_v38, %v756_v29  ;;  %v257_v47 = vmul.f32 %v253_v39, %v758_v30 }
  0x16   : > { %v234_v42 = vadd.f32 %v230_v34, %v193_v15  ;;  %v235_v43 = vadd.f32 %v231_v35, %v197_v16  ;;  %v236_v44 = vadd.f32 %v232_v36, %v201_v17  ;;  %v237_v45 = vadd.f32 %v233_v37, %v205_v18 }
  0x17   : > { %v278_v56 = vmul.f32 %v265_v48, %v754_v28  ;;  %v279_v57 = vmul.f32 %v269_v49, %v756_v29  ;;  %v280_v58 = vmul.f32 %v273_v52, %v758_v30  ;;  %v281_v59 = vmul.f32 %v277_v53, %v760_v31 }
  0x18   : > { %v258_v50 = vadd.f32 %v254_v40, %v234_v42  ;;  %v259_v51 = vadd.f32 %v255_v41, %v235_v43  ;;  %v260_v54 = vadd.f32 %v256_v46, %v236_v44  ;;  %v261_v55 = vadd.f32 %v257_v47, %v237_v45 }
  0x19   : > { %v302_v9 = vmul.f32 %v289_v60, %v750_v26  ;;  %v303_v15 = vmul.f32 %v293_v61, %v752_v27  ;;  %v304_v16 = vmul.f32 %v297_v0, %v754_v28  ;;  %v305_v17 = vmul.f32 %v301_v5, %v756_v29 }
  0x1a   : > { %v282_v62 = vadd.f32 %v278_v56, %v258_v50  ;;  %v283_v63 = vadd.f32 %v279_v57, %v259_v51  ;;  %v284_v7 = vadd.f32 %v280_v58, %v260_v54  ;;  %v285_v8 = vadd.f32 %v281_v59, %v261_v55 }
  0x1b   : > { %v325_v18 = vrot.slane %v701_v1, %v731_v11  ;;  %v310_v20 = vrot.slane %v302_v9, 1  ;;  %v311_v21 = vrot.slane %v303_v15, 1  ;;  %v337_v22 = vrot.slane %v722_v6, %v731_v11 }
  0x1c   : > { %v312_v23 = vrot.slane %v304_v16, 1  ;;  %v313_v24 = vrot.slane %v305_v17, 1  ;;  %v339_v32 = vmul.f32 %v329_v19, %v754_v28  ;;  %v340_v35 = vmul.f32 %v333_v10, %v756_v29  ;;  %v623_v10 = vld [vmem:[%s867_s1 + $0x38] ss:$0 sm:$0xff] }
  0x1d   : > { %v338_v25 = vmul.f32 %v325_v18, %v752_v27  ;;  %v318_v33 = vadd.f32 %v310_v20, %v282_v62  ;;  %v319_v34 = vadd.f32 %v311_v21, %v283_v63  ;;  %v341_v36 = vmul.f32 %v337_v22, %v758_v30  ;;  %v622_v21 = vld [vmem:[%s867_s1 + $0x30] ss:$0 sm:$0xff] }
  0x1e   : > { %v320_v37 = vadd.f32 %v312_v23, %v284_v7  ;;  %v321_v38 = vadd.f32 %v313_v24, %v285_v8  ;;  %v347_v40 = vrot.slane %v339_v32, 1  ;;  %v348_v41 = vrot.slane %v340_v35, 1 }
  0x1f   : > { %v346_v39 = vrot.slane %v338_v25, 1  ;;  %v349_v42 = vrot.slane %v341_v36, 1  ;;  %v361_v11 = vrot.slane %v701_v1, %v734_v12  ;;  %v365_v43 = vrot.slane %v708_v3, %v734_v12 }
  0x20   : > { %v355_v45 = vadd.f32 %v347_v40, %v319_v34  ;;  %v369_v46 = vrot.slane %v713_v4, %v734_v12  ;;  %v373_v47 = vrot.slane %v722_v6, %v734_v12  ;;  %v356_v48 = vadd.f32 %v348_v41, %v320_v37 }
  0x21   : > { %v354_v44 = vadd.f32 %v346_v39, %v318_v33  ;;  %v357_v49 = vadd.f32 %v349_v42, %v321_v38  ;;  %v374_v50 = vmul.f32 %v361_v11, %v754_v28  ;;  %v375_v51 = vmul.f32 %v365_v43, %v756_v29 }
  0x22   : > { %v376_v52 = vmul.f32 %v369_v46, %v758_v30  ;;  %v377_v53 = vmul.f32 %v373_v47, %v760_v31  ;;  %v397_v54 = vrot.slane %v701_v1, %v737_v13  ;;  %v401_v55 = vrot.slane %v708_v3, %v737_v13 }
  0x23   : > { %v382_v56 = vrot.slane %v374_v50, 1  ;;  %v383_v57 = vrot.slane %v375_v51, 1  ;;  %v405_v12 = vrot.slane %v713_v4, %v737_v13  ;;  %v409_v58 = vrot.slane %v722_v6, %v737_v13  ;;  %v620_v13 = vld [vmem:[%s867_s1 + $0x20] ss:$0 sm:$0xff] }
  0x24   : > { %v384_v59 = vrot.slane %v376_v52, 1  ;;  %v385_v60 = vrot.slane %v377_v53, 1  ;;  %v410_v61 = vmul.f32 %v397_v54, %v750_v26  ;;  %v411_v62 = vmul.f32 %v401_v55, %v752_v27  ;;  %v621_v26 = vld [vmem:[%s867_s1 + $0x28] ss:$0 sm:$0xff] }
  0x25   : > { %v390_v63 = vadd.f32 %v382_v56, %v354_v44  ;;  %v391_v0 = vadd.f32 %v383_v57, %v355_v45  ;;  %v412_v5 = vmul.f32 %v405_v12, %v754_v28  ;;  %v413_v7 = vmul.f32 %v409_v58, %v756_v29 }
  0x26   : > { %v392_v8 = vadd.f32 %v384_v59, %v356_v48  ;;  %v393_v9 = vadd.f32 %v385_v60, %v357_v49  ;;  %v418_v15 = vrot.slane %v410_v61, 2  ;;  %v419_v16 = vrot.slane %v411_v62, 2 }
  0x27   : > { %v420_v17 = vrot.slane %v412_v5, 2  ;;  %v421_v18 = vrot.slane %v413_v7, 2  ;;  %v433_v19 = vrot.slane %v701_v1, %v740_v14  ;;  %v437_v20 = vrot.slane %v708_v3, %v740_v14 }
  0x28   : > { %v426_v22 = vadd.f32 %v418_v15, %v390_v63  ;;  %v427_v23 = vadd.f32 %v419_v16, %v391_v0  ;;  %v441_v24 = vrot.slane %v713_v4, %v740_v14  ;;  %v445_v25 = vrot.slane %v722_v6, %v740_v14 }
  0x29   : > { %v428_v1 = vadd.f32 %v420_v17, %v392_v8  ;;  %v429_v32 = vadd.f32 %v421_v18, %v393_v9  ;;  %v446_v3 = vmul.f32 %v433_v19, %v752_v27  ;;  %v447_v33 = vmul.f32 %v437_v20, %v754_v28 }
  0x2a   : > { %v448_v34 = vmul.f32 %v441_v24, %v756_v29  ;;  %v449_v35 = vmul.f32 %v445_v25, %v758_v30  ;;  %v482_v36 = vmul.f32 %v620_v13, %v754_v28  ;;  %v483_v37 = vmul.f32 %v621_v26, %v756_v29 }
  0x2b   : > { %v454_v38 = vrot.slane %v446_v3, 2  ;;  %v455_v39 = vrot.slane %v447_v33, 2  ;;  %v484_v4 = vmul.f32 %v622_v21, %v758_v30  ;;  %v485_v6 = vmul.f32 %v623_v10, %v760_v31 }
  0x2c   : > { %v456_v14 = vrot.slane %v448_v34, 2  ;;  %v457_v40 = vrot.slane %v449_v35, 2  ;;  %v490_v41 = vrot.slane %v482_v36, 2  ;;  %v491_v27 = vrot.slane %v483_v37, 2 }
  0x2d   : > { %v462_v42 = vadd.f32 %v454_v38, %v426_v22  ;;  %v463_v11 = vadd.f32 %v455_v39, %v427_v23  ;;  %v492_v43 = vrot.slane %v484_v4, 2  ;;  %v493_v44 = vrot.slane %v485_v6, 2 }
  0x2e   : > { %v464_v45 = vadd.f32 %v456_v14, %v428_v1  ;;  %v465_v46 = vadd.f32 %v457_v40, %v429_v32  ;;  %v667_v58 = vmov 1983009808  }
  0x2f   : > { %v498_v47 = vadd.f32 %v490_v41, %v462_v42  ;;  %v499_v28 = vadd.f32 %v491_v27, %v463_v11  ;;  %v541_v59 = vunpack.c.l.s4 %v667_v58 }
  0x30   : > { %v500_v48 = vadd.f32 %v492_v43, %v464_v45  ;;  %v501_v29 = vadd.f32 %v493_v44, %v465_v46 }
  0x31   : > { %v624_v49 = vmul.f32 -1.442695, %v498_v47  ;;  %v625_v50 = vmul.f32 -1.442695, %v499_v28  ;;  %v542_v60 = vunpack.c.0.s8 %v541_v59 }
  0x32   : > { %v626_v51 = vmul.f32 -1.442695, %v500_v48  ;;  %v627_v30 = vmul.f32 -1.442695, %v501_v29 }
  0x33   : > { %643 = vpow2.f32 %v624_v49  ;;  %v545_v7 = vsub.s32 %v542_v60, %v703_v2 }
  0x34   : > { %645 = vpow2.f32 %v625_v50 }
  0x35   : > { %647 = vpow2.f32 %v626_v51 }
  0x36   : > { %649 = vpow2.f32 %v627_v30 }
  0x3d   : > { %v644_v31 = vpop.eup %643 }
  0x3e   : > { %v646_v52 = vpop.eup %645  ;;  %v514_v53 = vadd.f32 1.0, %v644_v31 }
  0x3f   : > { %v648_v54 = vpop.eup %647  ;;  %v515_v55 = vadd.f32 1.0, %v646_v52 }
  0x40   : > { %v650_v56 = vpop.eup %649  ;;  %v516_v57 = vadd.f32 1.0, %v648_v54  ;;  %651 = vrcp.f32 %v514_v53 }
  0x41   : > { %v517_v12 = vadd.f32 1.0, %v650_v56  ;;  %653 = vrcp.f32 %v515_v55 }
  0x42   : > { %655 = vrcp.f32 %v516_v57 }
  0x43   : > { %657 = vrcp.f32 %v517_v12 }
  0x4a   : > { %v652_v61 = vpop.eup %651 }
  0x4b   : > { %v654_v62 = vpop.eup %653  ;;  %v526_v63 = vmul.f32 %v652_v61, %v498_v47 }
  0x4c   : > { %v656_v0 = vpop.eup %655  ;;  %v527_v5 = vmul.f32 %v654_v62, %v499_v28 }
  0x4d   : > { %v658_v8 = vpop.eup %657  ;;  %v528_v9 = vmul.f32 %v656_v0, %v500_v48 }
  0x4e   : > { %v529_v15 = vmul.f32 %v658_v8, %v501_v29  ;;  %v628_v16 = vpack.c.bf16 %v527_v5, %v526_v63 }
  0x50   : > { %v629_v13 = vpack.c.bf16 %v529_v15, %v528_v9  ;;  %v546_v26 = vrot.slane %v628_v16, %v545_v7 }
  0x52   : > { %v553_v17 = vrot.slane %v629_v13, %v545_v7 }
  0x54   : > { %v554_v18 = vcombine.low %v546_v26, %v553_v17 }
  0x56   : > { %556 = vst [vmem:[%s170_s14] sm:$0xff] %v554_v18 }
  0x57 PF: > { %s13_s12 = sadd.s32 1, %s665_s12  }
  0x58   : > { %p10_p4 = scmp.ge.s32.totalorder %s13_s12, 4  }
  0x5a   :  { %12 = sbr.rel (!%p10_p4) target bundleno = 1 (0x1), region = 62 }

// kernel: upsample_forward.12
= control target key start
LH: loop header
LB: loop body
LE: loop exit
PB: predicated region body
PF: predicated region fallthrough
CT: control target
= control target key end

     0   :  { %s604_s9 = smov 0   ;;  %s606_s10 = smov 0   ;;  %s658_s0 = inlined_call_operand.vmem [shape: bf16[2,4,16,64], index: 0, kind: input, shape index: {}]   ;;  %s659_s1 = inlined_call_operand.vmem [shape: bf16[4,64,96], index: 1, kind: input, shape index: {}]   ;;  %s660_s2 = inlined_call_operand.vmem [shape: bf16[2,4,16,96], index: 2, kind: output, shape index: {}]  }
   0x1   :  { %s608_s11 = smov 0   ;;  %s610_s12 = smov 0  }
   0x2   :  { %s612_s13 = smov 0  }
   0x3 LB: > { %s27_s14 = sadd.s32 1, %s577_s11  ;;  %s31_s15 = sadd.s32 1, %s581_s12  ;;  %s585_s13 = sphi %s612_s13, %s12_s13   ;;  %s581_s12 = sphi %s610_s12, %s664_s12   ;;  %s577_s11 = sphi %s608_s11, %s663_s11   ;;  %s573_s10 = sphi %s606_s10, %s662_s10   ;;  %s569_s9 = sphi %s604_s9, %s661_s9  }
   0x4   : > { %p29_p0 = scmp.ge.s32.totalorder %s27_s14, 4  ;;  %p461_p1 = scmp.ge.s32.totalorder %s585_s13, 1 }
   0x5   : > { %p158_p2 = scmp.lt.s32.totalorder %s585_s13, 9 }
   0x6   : > { %s666_s14 = smov (%p29_p0, %s27_s14), 0  ;;  %s668_s15 = smov (!%p29_p0, %s31_s15), %s581_s12 }
   0x7   : > { %p159_p3 = pnand %p461_p1, %p158_p2  ;;  %p33_p4 = scmp.ge.s32.totalorder %s668_s15, 2 }
   0x8   : > { %p204_p5 = scmp.lt.s32.totalorder (!%p159_p3), %s569_s9, 3  ;;  %p202_p6 = scmp.lt.s32.totalorder (!%p159_p3), %s573_s10, 1  ;;  %v587_v0 = vmov (!%p159_p3), 0.0   ;;  %vm588_vm0 = vmmov (!%p159_p3), 0   ;;  %vm274_vm1 = vcmask (!%p159_p3), 523264   ;;  %vm327_vm2 = vcmask (!%p159_p3), 781312  }
   0x9   : > { %s670_s15 = smov (%p33_p4, %s668_s15), 0  ;;  %162 = sbr.rel (%p159_p3) target bundleno = 252 (0xfc), region = 28 }
   0xa   : > { %488 = vmatprep.subr.bf16.mxu0 (!%p159_p3), %v587_v0  ;;  %496 = vmatprep.mubr.msk.bf16.mxu0 (!%p159_p3), %vm588_vm0, %v587_v0 }
  0x10   : > { %s672_s9 = smov (!%p204_p5, %s569_s9), 3  ;;  %s674_s10 = smov (!%p202_p6, %s573_s10), 1 }
  0x11   : > { %s480_s16 = sshll.u32 %s672_s9, 5  ;;  %s462_s17 = sshll.u32 %s672_s9, 1 }
  0x12   : > { %s219_s20 = scalar_lea.vmem %s659_s1, %s480_s16  ;;  %s463_s21 = sshll.u32 %s674_s10, 3 }
  0x13   : > { %v542_v1 = vld [vmem:[%s219_s20] sm:$0xff]   ;;  %s211_s22 = sadd.s32 %s463_s21, %s462_s17  ;;  %v543_v2 = vld [vmem:[%s219_s20 + $0x8] sm:$0xff]   ;;  %v544_v3 = vld [vmem:[%s219_s20 + $0x10] sm:$0xff]  }
  0x14   : > { %s464_s23 = sshll.u32 %s211_s22, 2  ;;  %489 = vmatpush3.bf16.msra.mxu0 %v542_v1  ;;  %v545_v4 = vld [vmem:[%s219_s20 + $0x18] sm:$0xff]  }
  0x15   : > { %490 = vmatprep.subr.bf16.mxu0 %v587_v0  ;;  %s213_s26 = scalar_lea.vmem %s658_s0, %s464_s23  ;;  %s232_s29 = scalar_lea.vmem %s660_s2, %s464_s23 }
  0x16   : > { %v546_v5 = vld [vmem:[%s213_s26] sm:$0xff]  }
  0x18   : > { %491 = vmatpush3.bf16.msra.mxu0 %v543_v2 }
  0x19   : > { %492 = vmatprep.subr.bf16.mxu0 %v587_v0 }
  0x1c   : > { %493 = vmatpush3.bf16.msra.mxu0 %v544_v3 }
  0x1d   : > { %494 = vmatprep.subr.bf16.mxu0 %v587_v0 }
  0x20   : > { %495 = vmatpush3.bf16.msra.mxu0 %v545_v4 }
  0x23   : > { %497 = vmatmul.mubr.msk.bf16.vlgmr.msra.gmra.mrb[0].mxu0 %vm274_vm1, %v546_v5 }
  0xf6   : > { %v312_v6 = vpop.f32.mrb[0].mxu0 }
  0xf7   : > { %v481_v7 = vpack.c.bf16 %v312_v6, %v312_v6  ;;  %v498_v8 = vpop.f32.mrb[1].mxu0 }
  0xf8   : > { %v315_v9 = vpop.f32.mrb[2].mxu0 }
  0xf9   : > { %328 = vst.msk [vmem:[%s232_s29] sm:$0xf] %vm327_vm2, %v481_v7  ;;  %v482_v10 = vpack.c.bf16 %v315_v9, %v315_v9  ;;  %v499_v11 = vpop.f32.mrb[3].mxu0 }
  0xfb   : > { %329 = vst.msk [vmem:[%s232_s29 + $0x4] sm:$0xf] %vm327_vm2, %v482_v10 }
  0xfc PF: > { %s12_s13 = sadd.s32 1, %s585_s13   ;;  %s661_s9 = smov %s577_s11 }
  0xfd   : > { %p9_p7 = scmp.ge.s32.totalorder %s12_s13, 10   ;;  %s662_s10 = smov %s581_s12 }
  0xfe   : > { %s663_s11 = smov %s666_s14  ;;  %s664_s12 = smov %s670_s15 }
  0xff   :  { %11 = sbr.rel (!%p9_p7) target bundleno = 3 (0x3), region = 61 }

// kernel: upsample_forward.15
= control target key start
LH: loop header
LB: loop body
LE: loop exit
PB: predicated region body
PF: predicated region fallthrough
CT: control target
= control target key end

     0   :  { %vm44_vm0 = vcmask 261120   ;;  %vm116_vm1 = vcmask 519168   ;;  %s205_s1 = inlined_call_operand.vmem [shape: bf16[32,64], index: 1, kind: input, shape index: {}]   ;;  %s206_s0 = inlined_call_operand.vmem [shape: f32[32,32], index: 0, kind: input, shape index: {}]   ;;  %s207_s2 = inlined_call_operand.vmem [shape: f32[1,64], index: 2, kind: input, shape index: {}]   ;;  %s208_s3 = inlined_call_operand.vmem [shape: bf16[32,64], index: 3, kind: output, shape index: {}]  }
   0x1   :  { %v150_v0 = vld [vmem:[%s205_s1] sm:$0xff]   ;;  %v151_v1 = vld [vmem:[%s205_s1 + $0x8] sm:$0xff]   ;;  %v17_v5 = vld [vmem:[%s206_s0 + $0x10] sm:$0xff] }
   0x2   :  { %142 = vmatprep.subr.bf16.mxu0 %v150_v0  ;;  %v15_v2 = vld [vmem:[%s206_s0] sm:$0xff]  ;;  %v16_v3 = vld [vmem:[%s206_s0 + $0x8] sm:$0xff]  ;;  %v18_v6 = vld [vmem:[%s206_s0 + $0x18] sm:$0xff] }
   0x3   :  { %143 = vmatpush3.bf16.msra.mxu0 %v150_v0  ;;  %v19_v4 = vpack.c.bf16 %v16_v3, %v15_v2  ;;  %v20_v7 = vpack.c.bf16 %v18_v6, %v17_v5  ;;  %v125_v8 = vld [vmem:[%s207_s2] ss:$0 sm:$0xff] }
   0x4   :  { %144 = vmatprep.subr.bf16.mxu0 %v151_v1 }
   0x5   :  { %146 = vmatprep.mubr.msk.bf16.mxu0 %vm44_vm0, %v19_v4 }
   0x7   :  { %145 = vmatpush3.bf16.msra.mxu0 %v151_v1 }
   0xa   :  { %147 = vmatmul.mubr.msk.bf16.vlgmr.msra.gmra.mrb[0].mxu0 %vm44_vm0, %v20_v7 }
  0xdd   :  { %v148_v9 = vpop.f32.mrb[0].mxu0 }
  0xde   :  { %v94_v10 = vadd.f32 %v148_v9, %v125_v8  ;;  %v85_v11 = vpop.f32.mrb[1].mxu0 }
  0xdf   :  { %v86_v12 = vadd.f32 %v125_v8, %v85_v11  ;;  %v149_v13 = vpop.f32.mrb[2].mxu0 }
  0xe0   :  { %v136_v14 = vpack.c.bf16 %v94_v10, %v94_v10  ;;  %v97_v15 = vadd.f32 %v149_v13, %v125_v8  ;;  %v88_v16 = vpop.f32.mrb[3].mxu0 }
  0xe1   :  { %v134_v17 = vpack.c.bf16 %v86_v12, %v86_v12  ;;  %v89_v18 = vadd.f32 %v125_v8, %v88_v16 }
  0xe2   :  { %119 = vst.msk [vmem:[%s208_s3 + $0x8] sm:$0xf] %vm116_vm1, %v136_v14  ;;  %v137_v19 = vpack.c.bf16 %v97_v15, %v97_v15 }
  0xe3   :  { %117 = vst.msk [vmem:[%s208_s3] sm:$0xf] %vm116_vm1, %v134_v17  ;;  %v135_v20 = vpack.c.bf16 %v89_v18, %v89_v18 }
  0xe4   :  { %120 = vst.msk [vmem:[%s208_s3 + $0xc] sm:$0xf] %vm116_vm1, %v137_v19 }
  0xe5   :  { %118 = vst.msk [vmem:[%s208_s3 + $0x4] sm:$0xf] %vm116_vm1, %v135_v20 }

// kernel: upsample_forward.14
= control target key start
LH: loop header
LB: loop body
LE: loop exit
PB: predicated region body
PF: predicated region fallthrough
CT: control target
= control target key end

     0   :  { %vm34_vm0 = vcmask 523264   ;;  %s624_s0 = inlined_call_operand.vmem [shape: f32[32,32], index: 0, kind: input, shape index: {}]   ;;  %s625_s1 = inlined_call_operand.vmem [shape: f32[32,64], index: 1, kind: input, shape index: {}]   ;;  %s626_s2 = inlined_call_operand.vmem [shape: bf16[32,64], index: 2, kind: input, shape index: {}]   ;;  %s627_s3 = inlined_call_operand.vmem [shape: f32[32,32], index: 3, kind: input, shape index: {}]   ;;  %s628_s4 = inlined_call_operand.vmem [shape: f32[1,64], index: 4, kind: input, shape index: {}]   ;;  %s629_s5 = inlined_call_operand.vmem [shape: f32[1,64], index: 5, kind: input, shape index: {}]   ;;  %s630_s6 = inlined_call_operand.vmem [shape: bf16[64,32], index: 6, kind: input, shape index: {}]   ;;  %s631_s7 = inlined_call_operand.vmem [shape: f32[32,32], index: 7, kind: output, shape index: {0}]   ;;  %s632_s8 = inlined_call_operand.hbm [shape: f32[32,32], index: 8, kind: output, shape index: {1}]  }
   0x1   :  { %v30_v0 = vld [vmem:[%s625_s1] sm:$0xff]  ;;  %v32_v1 = vld [vmem:[%s625_s1 + $0x10] sm:$0xff]  ;;  %v31_v2 = vld [vmem:[%s625_s1 + $0x8] sm:$0xff] }
   0x2   :  { %v35_v3 = vsel %vm34_vm0, %v30_v0, 0.0  ;;  %v41_v4 = vsel %vm34_vm0, %v32_v1, 0.0  ;;  %v33_v5 = vld [vmem:[%s625_s1 + $0x18] sm:$0xff]  ;;  %v38_v6 = vsel %vm34_vm0, %v31_v2, 0.0 }
   0x3   :  { %36 = vadd.xlane.f32.xlu0 %v35_v3  ;;  %42 = vadd.xlane.f32.xlu1 %v41_v4  ;;  %v44_v7 = vsel %vm34_vm0, %v33_v5, 0.0 }
   0x4   :  { %14 = vsyncpa [#allocation3], 0  ;;  %v370_v28 = vld [vmem:[%s630_s6] sm:$0xff]   ;;  %v371_v29 = vld [vmem:[%s630_s6 + $0x8] sm:$0xff]   ;;  %vm287_vm1 = vcmask 261120   ;;  %s454_s16 = smov [#allocation2]  }
   0x5   :  { %355 = vmatprep.subr.bf16.mxu0 %v370_v28  ;;  %v372_v30 = vld [vmem:[%s630_s6 + $0x10] sm:$0xff]   ;;  %v373_v31 = vld [vmem:[%s630_s6 + $0x18] sm:$0xff]   ;;  %v341_v32 = vld [vmem:[%s626_s2] sm:$0xff]   ;;  %s311_s17 = sshll.u32 %s454_s16, 4  ;;  %s312_s17 = int_to_ptr.vmem [resolvable:$true] %s311_s17 }
   0x6   :  { %356 = vmatpush3.bf16.msra.mxu0 %v370_v28  ;;  %v342_v33 = vunpack.c.l.bf16 %v341_v32  ;;  %v343_v34 = vunpack.c.h.bf16 %v341_v32  ;;  %v348_v35 = vld [vmem:[%s626_s2 + $0x8] sm:$0xff]   ;;  %v324_v63 = vld [vmem:[%s628_s4] ss:$0 sm:$0xff]  ;;  %p435_p1 = scmp.lt.s32.totalorder %s312_s17, %s312_s17 }
   0x7   :  { %39 = vadd.xlane.f32.xlu0 %v38_v6  ;;  %45 = vadd.xlane.f32.xlu1 %v44_v7  ;;  %v346_v37 = vunpack.c.l.bf16 %v348_v35  ;;  %v347_v39 = vunpack.c.h.bf16 %v348_v35 }
   0x8   :  { %357 = vmatprep.subr.bf16.mxu0 %v371_v29  ;;  %v326_v36 = vmul.f32 -1.442695, %v342_v33  ;;  %v327_v38 = vmul.f32 -1.442695, %v343_v34 }
   0x9   :  { %v328_v40 = vmul.f32 -1.442695, %v346_v37  ;;  %v329_v41 = vmul.f32 -1.442695, %v347_v39 }
   0xa   :  { %358 = vmatpush3.bf16.msra.mxu0 %v371_v29  ;;  %374 = vpow2.f32 %v326_v36  ;;  %v153_v36 = vld [vmem:[%s624_s0 + $0x8] sm:$0xff] }
   0xb   :  { %359 = vmatprep.subr.bf16.mxu0 %v372_v30  ;;  %376 = vpow2.f32 %v327_v38 }
   0xc   :  { %378 = vpow2.f32 %v328_v40 }
   0xd   :  { %380 = vpow2.f32 %v329_v41 }
   0xe   :  { %360 = vmatpush3.bf16.msra.mxu0 %v372_v30 }
   0xf   :  { %361 = vmatprep.subr.bf16.mxu0 %v373_v31 }
  0x12   :  { %362 = vmatpush3.bf16.msra.mxu0 %v373_v31  ;;  %v152_v31 = vld [vmem:[%s624_s0] sm:$0xff] }
  0x14   :  { %v375_v42 = vpop.eup %374 }
  0x15   :  { %v377_v44 = vpop.eup %376  ;;  %v130_v47 = vadd.f32 1.0, %v375_v42 }
  0x16   :  { %v379_v48 = vpop.eup %378  ;;  %v131_v51 = vadd.f32 1.0, %v377_v44 }
  0x17   :  { %v381_v52 = vpop.eup %380  ;;  %v132_v57 = vadd.f32 1.0, %v379_v48 }
  0x18   :  { %v133_v59 = vadd.f32 1.0, %v381_v52 }
  0x90   :  { %v37_v8 = vpop.xlane.xlu0 %36  ;;  %v43_v9 = vpop.xlane.xlu1 %42 }
  0x91   :  { %v48_v10 = vmul.f32 0.015625, %v37_v8  ;;  %v50_v11 = vmul.f32 0.015625, %v43_v9 }
  0x93   :  { %v518_v12 = vsub.f32 %v30_v0, %v48_v10  ;;  %v520_v13 = vsub.f32 %v32_v1, %v50_v11 }
  0x94   :  { %v40_v14 = vpop.xlane.xlu0 %39  ;;  %v46_v15 = vpop.xlane.xlu1 %45 }
  0x95   :  { %v49_v16 = vmul.f32 0.015625, %v40_v14  ;;  %v51_v17 = vmul.f32 0.015625, %v46_v15  ;;  %v56_v18 = vmul.f32 %v518_v12, %v518_v12  ;;  %v58_v19 = vmul.f32 %v520_v13, %v520_v13 }
  0x97   :  { %v526_v20 = vsub.f32 %v31_v2, %v49_v16  ;;  %v528_v21 = vsub.f32 %v33_v5, %v51_v17  ;;  %v60_v22 = vsel %vm34_vm0, %v56_v18, 0.0  ;;  %v66_v23 = vsel %vm34_vm0, %v58_v19, 0.0  ;;  %v325_v5 = vld [vmem:[%s629_s5] ss:$0 sm:$0xff] }
  0x98   :  { %61 = vadd.xlane.f32.xlu0 %v60_v22 }
  0x99   :  { %v57_v24 = vmul.f32 %v526_v20, %v526_v20  ;;  %v59_v25 = vmul.f32 %v528_v21, %v528_v21 }
  0x9b   :  { %v63_v26 = vsel %vm34_vm0, %v57_v24, 0.0  ;;  %v69_v27 = vsel %vm34_vm0, %v59_v25, 0.0 }
  0x9c   :  { %67 = vadd.xlane.f32.xlu0 %v66_v23  ;;  %64 = vadd.xlane.f32.xlu1 %v63_v26 }
  0xa0   :  { %70 = vadd.xlane.f32.xlu1 %v69_v27 }
 0x125   :  { %v62_v43 = vpop.xlane.xlu0 %61 }
 0x126   :  { %v72_v45 = vmul.f32 0.015625, %v62_v43 }
 0x128   :  { %v76_v46 = vadd.f32 1e-05, %v72_v45 }
 0x129   :  { %v65_v49 = vpop.xlane.xlu1 %64  ;;  %v68_v50 = vpop.xlane.xlu0 %67 }
 0x12a   :  { %382 = vrsqrt.f32 %v76_v46  ;;  %v73_v53 = vmul.f32 0.015625, %v65_v49  ;;  %v74_v54 = vmul.f32 0.015625, %v68_v50 }
 0x12b   :  { %384 = vrcp.f32 %v130_v47 }
 0x12c   :  { %v77_v55 = vadd.f32 1e-05, %v73_v53  ;;  %v78_v56 = vadd.f32 1e-05, %v74_v54  ;;  %386 = vrcp.f32 %v131_v51 }
 0x12d   :  { %v71_v58 = vpop.xlane.xlu1 %70 }
 0x12e   :  { %388 = vrsqrt.f32 %v77_v55  ;;  %v75_v60 = vmul.f32 0.015625, %v71_v58  ;;  %v273_v55 = vld [vmem:[%s627_s3 + $0x10] sm:$0xff] }
 0x12f   :  { %390 = vrsqrt.f32 %v78_v56 }
 0x130   :  { %v79_v61 = vadd.f32 1e-05, %v75_v60  ;;  %392 = vrcp.f32 %v132_v57  ;;  %v271_v57 = vld [vmem:[%s627_s3] sm:$0xff] }
 0x131   :  { %394 = vrcp.f32 %v133_v59  ;;  %v274_v59 = vld [vmem:[%s627_s3 + $0x18] sm:$0xff] }
 0x132   :  { %396 = vrsqrt.f32 %v79_v61 }
 0x134   :  { %v383_v62 = vpop.eup %382 }
 0x135   :  { %v84_v0 = vmul.f32 %v383_v62, %v518_v12  ;;  %v385_v1 = vpop.eup %384 }
 0x136   :  { %v387_v2 = vpop.eup %386  ;;  %v142_v15 = vmul.f32 %v385_v1, %v342_v33  ;;  %v155_v33 = vld [vmem:[%s624_s0 + $0x18] sm:$0xff] }
 0x137   :  { %v95_v3 = vmul.f32 %v324_v63, %v84_v0  ;;  %v143_v16 = vmul.f32 %v387_v2, %v343_v34  ;;  %v272_v0 = vld [vmem:[%s627_s3 + $0x8] sm:$0xff]  ;;  %s430_s3 = scalar_lea.vmem %s312_s17, 512 }
 0x138   :  { %v389_v4 = vpop.eup %388  ;;  %p431_p0 = scmp.ne.s32.totalorder %s312_s17, %s430_s3  ;;  %p436_p2 = scmp.lt.s32.totalorder %s430_s3, %s430_s3 }
 0x139   :  { %v391_v6 = vpop.eup %390  ;;  %v85_v7 = vmul.f32 %v389_v4, %v526_v20  ;;  %v106_v14 = vadd.f32 %v325_v5, %v95_v3 }
 0x13a   :  { %v393_v8 = vpop.eup %392  ;;  %v86_v9 = vmul.f32 %v391_v6, %v520_v13  ;;  %p437_p3 = por %p436_p2, %p435_p1 }
 0x13b   :  { %v395_v10 = vpop.eup %394  ;;  %v96_v11 = vmul.f32 %v324_v63, %v85_v7  ;;  %v144_v22 = vmul.f32 %v393_v8, %v346_v37  ;;  %v146_v24 = vmul.f32 %v142_v15, %v106_v14 }
 0x13c   :  { %v397_v12 = vpop.eup %396  ;;  %v97_v17 = vmul.f32 %v324_v63, %v86_v9  ;;  %v145_v23 = vmul.f32 %v395_v10, %v347_v39  ;;  %p438_p4 = pnand %p437_p3, %p431_p0 }
 0x13d   :  { %v87_v18 = vmul.f32 %v397_v12, %v528_v21  ;;  %v107_v19 = vadd.f32 %v325_v5, %v96_v11  ;;  %v154_v21 = vld [vmem:[%s624_s0 + $0x10] sm:$0xff] }
 0x13e   :  { %v108_v27 = vadd.f32 %v325_v5, %v97_v17 }
 0x13f   :  { %v147_v25 = vmul.f32 %v143_v16, %v107_v19  ;;  %v98_v26 = vmul.f32 %v324_v63, %v87_v18 }
 0x140   :  { %v148_v13 = vmul.f32 %v144_v22, %v108_v27 }
 0x141   :  { %v150_v20 = vpack.c.bf16 %v147_v25, %v146_v24  ;;  %v109_v28 = vadd.f32 %v325_v5, %v98_v26 }
 0x143   :  { %363 = vmatprep.mubr.msk.bf16.mxu0 %vm34_vm0, %v150_v20  ;;  %v149_v29 = vmul.f32 %v145_v23, %v109_v28 }
 0x145   :  { %v151_v30 = vpack.c.bf16 %v149_v29, %v148_v13 }
 0x147   :  { %364 = vmatmul.mubr.msk.bf16.vlgmr.msra.gmra.mrb[0].mxu0 %vm34_vm0, %v151_v30 }
 0x21a   :  { %v365_v32 = vpop.f32.mrb[0].mxu0 }
 0x21b   :  { %v245_v34 = vadd.f32 %v365_v32, %v154_v21  ;;  %v228_v35 = vpop.f32.mrb[1].mxu0 }
 0x21c   :  { %v243_v37 = vadd.f32 %v228_v35, %v152_v31  ;;  %v366_v38 = vpop.f32.mrb[2].mxu0 }
 0x21d   :  { %v338_v39 = vmul.f32 -1.442695, %v245_v34  ;;  %v246_v40 = vadd.f32 %v366_v38, %v155_v33  ;;  %v231_v41 = vpop.f32.mrb[3].mxu0 }
 0x21e   :  { %v336_v42 = vmul.f32 -1.442695, %v243_v37  ;;  %v244_v43 = vadd.f32 %v231_v41, %v153_v36 }
 0x21f   :  { %398 = vpow2.f32 %v338_v39  ;;  %v339_v44 = vmul.f32 -1.442695, %v246_v40 }
 0x220   :  { %400 = vpow2.f32 %v336_v42  ;;  %v337_v45 = vmul.f32 -1.442695, %v244_v43 }
 0x221   :  { %402 = vpow2.f32 %v339_v44 }
 0x222   :  { %404 = vpow2.f32 %v337_v45 }
 0x223   :  { %406 = vtanh.f32 %v245_v34 }
 0x224   :  { %408 = vtanh.f32 %v243_v37 }
 0x225   :  { %410 = vtanh.f32 %v246_v40 }
 0x226   :  { %412 = vtanh.f32 %v244_v43 }
 0x229   :  { %v399_v46 = vpop.eup %398 }
 0x22a   :  { %v401_v47 = vpop.eup %400  ;;  %v261_v48 = vadd.f32 1.0, %v399_v46 }
 0x22b   :  { %v403_v49 = vpop.eup %402  ;;  %v259_v50 = vadd.f32 1.0, %v401_v47 }
 0x22c   :  { %414 = vrcp.f32 %v261_v48  ;;  %v262_v51 = vadd.f32 1.0, %v403_v49  ;;  %v405_v52 = vpop.eup %404 }
 0x22d   :  { %416 = vrcp.f32 %v259_v50  ;;  %v260_v53 = vadd.f32 1.0, %v405_v52  ;;  %v407_v54 = vpop.eup %406 }
 0x22e   :  { %418 = vrcp.f32 %v262_v51  ;;  %v409_v56 = vpop.eup %408  ;;  %v281_v61 = vadd.f32 %v407_v54, %v273_v55 }
 0x22f   :  { %420 = vrcp.f32 %v260_v53  ;;  %v411_v58 = vpop.eup %410  ;;  %v279_v63 = vadd.f32 %v409_v56, %v271_v57 }
 0x230   :  { %v413_v60 = vpop.eup %412  ;;  %v282_v3 = vadd.f32 %v411_v58, %v274_v59 }
 0x231   :  { %v280_v7 = vadd.f32 %v413_v60, %v272_v0 }
 0x236   :  { %v415_v62 = vpop.eup %414 }
 0x237   :  { %v417_v1 = vpop.eup %416  ;;  %v285_v2 = vmul.f32 %v415_v62, %v281_v61 }
 0x238   :  { %v419_v4 = vpop.eup %418  ;;  %v283_v5 = vmul.f32 %v417_v1, %v279_v63 }
 0x239   :  { %422 = vtanh.f32 %v285_v2  ;;  %290 = vst.msk [vmem:[#allocation2 + $0x10] sm:$0xff] %vm287_vm1, %v285_v2  ;;  %v286_v6 = vmul.f32 %v419_v4, %v282_v3  ;;  %v421_v8 = vpop.eup %420 }
 0x23a   :  { %424 = vtanh.f32 %v283_v5  ;;  %288 = vst.msk [vmem:[#allocation2] sm:$0xff] %vm287_vm1, %v283_v5  ;;  %v284_v9 = vmul.f32 %v421_v8, %v280_v7 }
 0x23b   :  { %426 = vtanh.f32 %v286_v6  ;;  %291 = vst.msk [vmem:[#allocation2 + $0x18] sm:$0xff] %vm287_vm1, %v286_v6 }
 0x23c   :  { %428 = vtanh.f32 %v284_v9  ;;  %289 = vst.msk [vmem:[#allocation2 + $0x8] sm:$0xff] %vm287_vm1, %v284_v9 }
 0x23d   :  { %441 = shalt.err (!%p438_p4)
}
 0x23e   :  { %s442_s20 = scalar_lea.hbm %s632_s8, 512 }
 0x23f   :  { %p443_p5 = scmp.ne.s32.totalorder %s632_s8, %s442_s20  ;;  %p446_p6 = scmp.lt.u32.totalorder %s442_s20, %s632_s8 }
 0x241   :  { %p448_p7 = pnand %p446_p6, %p443_p5 }
 0x243   :  { %451 = shalt.err (!%p448_p7)
}
 0x244   :  { %s455_s6 = smov 128   ;;  %s456_s24 = smov 8   ;;  %v423_v10 = vpop.eup %422 }
 0x245   :  { %317 = dma.vmem_to_hbm [thread:$0]  %s312_s17, 512, %s632_s8, [#allocation3], %s455_s6, %s455_s6, %s456_s24   ;;  %v425_v11 = vpop.eup %424  ;;  %v298_v14 = vmul.f32 %v423_v10, %v415_v62 }
 0x246   :  { %v427_v15 = vpop.eup %426  ;;  %v296_v16 = vmul.f32 %v425_v11, %v417_v1 }
 0x247   :  { %302 = vst.msk [vmem:[%s631_s7 + $0x10] sm:$0xff] %vm287_vm1, %v298_v14  ;;  %v299_v12 = vmul.f32 %v427_v15, %v419_v4  ;;  %v429_v17 = vpop.eup %428 }
 0x248   :  { %300 = vst.msk [vmem:[%s631_s7] sm:$0xff] %vm287_vm1, %v296_v16  ;;  %v297_v18 = vmul.f32 %v429_v17, %v421_v8 }
 0x249   :  { %303 = vst.msk [vmem:[%s631_s7 + $0x18] sm:$0xff] %vm287_vm1, %v299_v12 }
 0x24a   :  { %301 = vst.msk [vmem:[%s631_s7 + $0x8] sm:$0xff] %vm287_vm1, %v297_v18 }
 0x24b   :  { %452 = dma.done.wait [#allocation3], 512  }
 0x24c   :  { %453 = vsyncadd [#allocation3], 4294966784 }
 0x24d   :  { %323 = vsyncpa [#allocation3], 1 }

// kernel: upsample_forward.16
= control target key start
LH: loop header
LB: loop body
LE: loop exit
PB: predicated region body
PF: predicated region fallthrough
CT: control target
= control target key end

     0   :  { %vm46_vm0 = vcmask 130048   ;;  %s745_s0 = inlined_call_operand.vmem [shape: bf16[128,16], index: 0, kind: input, shape index: {}]   ;;  %s746_s1 = inlined_call_operand.vmem [shape: f32[1,16], index: 1, kind: input, shape index: {}]   ;;  %s747_s2 = inlined_call_operand.vmem [shape: f32[1,16], index: 2, kind: input, shape index: {}]   ;;  %s748_s3 = inlined_call_operand.vmem [shape: f32[128,16], index: 3, kind: output, shape index: {}]  }
   0x1   :  { %v418_v0 = vld [vmem:[%s745_s0] sm:$0xff]   ;;  %v423_v1 = vld [vmem:[%s745_s0 + $0x8] sm:$0xff]   ;;  %v432_v6 = vld [vmem:[%s745_s0 + $0x10] sm:$0xff]  }
   0x2   :  { %v326_v2 = vunpack.c.l.bf16 %v418_v0  ;;  %v330_v3 = vunpack.c.l.bf16 %v423_v1  ;;  %v327_v4 = vunpack.c.h.bf16 %v418_v0  ;;  %v331_v5 = vunpack.c.h.bf16 %v423_v1  ;;  %v447_v13 = vld [vmem:[%s745_s0 + $0x18] sm:$0xff]   ;;  %v460_v18 = vld [vmem:[%s745_s0 + $0x20] sm:$0xff]   ;;  %v473_v23 = vld [vmem:[%s745_s0 + $0x28] sm:$0xff]  }
   0x3   :  { %v334_v11 = vunpack.c.l.bf16 %v432_v6  ;;  %v335_v12 = vunpack.c.h.bf16 %v432_v6  ;;  %v338_v16 = vunpack.c.l.bf16 %v447_v13  ;;  %v339_v17 = vunpack.c.h.bf16 %v447_v13  ;;  %v486_v28 = vld [vmem:[%s745_s0 + $0x30] sm:$0xff]   ;;  %v499_v33 = vld [vmem:[%s745_s0 + $0x38] sm:$0xff]  }
   0x4   :  { %v47_v7 = vsel %vm46_vm0, %v326_v2, 0.0  ;;  %v53_v8 = vsel %vm46_vm0, %v330_v3, 0.0  ;;  %v50_v9 = vsel %vm46_vm0, %v327_v4, 0.0  ;;  %v56_v10 = vsel %vm46_vm0, %v331_v5, 0.0 }
   0x5   :  { %48 = vadd.xlane.f32.xlu0 %v47_v7  ;;  %54 = vadd.xlane.f32.xlu1 %v53_v8  ;;  %v59_v14 = vsel %vm46_vm0, %v334_v11, 0.0  ;;  %v62_v15 = vsel %vm46_vm0, %v335_v12, 0.0  ;;  %v65_v19 = vsel %vm46_vm0, %v338_v16, 0.0  ;;  %v68_v20 = vsel %vm46_vm0, %v339_v17, 0.0 }
   0x6   :  { %v342_v21 = vunpack.c.l.bf16 %v460_v18  ;;  %v343_v22 = vunpack.c.h.bf16 %v460_v18  ;;  %v346_v26 = vunpack.c.l.bf16 %v473_v23  ;;  %v347_v27 = vunpack.c.h.bf16 %v473_v23 }
   0x7   :  { %v350_v31 = vunpack.c.l.bf16 %v486_v28  ;;  %v351_v32 = vunpack.c.h.bf16 %v486_v28  ;;  %v354_v36 = vunpack.c.l.bf16 %v499_v33  ;;  %v355_v37 = vunpack.c.h.bf16 %v499_v33 }
   0x8   :  { %v71_v24 = vsel %vm46_vm0, %v342_v21, 0.0  ;;  %v74_v25 = vsel %vm46_vm0, %v343_v22, 0.0  ;;  %v77_v29 = vsel %vm46_vm0, %v346_v26, 0.0  ;;  %v80_v30 = vsel %vm46_vm0, %v347_v27, 0.0 }
   0x9   :  { %51 = vadd.xlane.f32.xlu0 %v50_v9  ;;  %57 = vadd.xlane.f32.xlu1 %v56_v10  ;;  %v83_v34 = vsel %vm46_vm0, %v350_v31, 0.0  ;;  %v86_v35 = vsel %vm46_vm0, %v351_v32, 0.0  ;;  %v89_v38 = vsel %vm46_vm0, %v354_v36, 0.0  ;;  %v92_v39 = vsel %vm46_vm0, %v355_v37, 0.0 }
   0xd   :  { %60 = vadd.xlane.f32.xlu0 %v59_v14  ;;  %63 = vadd.xlane.f32.xlu1 %v62_v15 }
  0x11   :  { %66 = vadd.xlane.f32.xlu0 %v65_v19  ;;  %69 = vadd.xlane.f32.xlu1 %v68_v20 }
  0x15   :  { %72 = vadd.xlane.f32.xlu0 %v71_v24  ;;  %75 = vadd.xlane.f32.xlu1 %v74_v25 }
  0x19   :  { %78 = vadd.xlane.f32.xlu0 %v77_v29  ;;  %81 = vadd.xlane.f32.xlu1 %v80_v30 }
  0x1d   :  { %84 = vadd.xlane.f32.xlu0 %v83_v34  ;;  %87 = vadd.xlane.f32.xlu1 %v86_v35 }
  0x21   :  { %90 = vadd.xlane.f32.xlu0 %v89_v38  ;;  %93 = vadd.xlane.f32.xlu1 %v92_v39 }
  0x92   :  { %v49_v40 = vpop.xlane.xlu0 %48  ;;  %v55_v41 = vpop.xlane.xlu1 %54 }
  0x93   :  { %v96_v42 = vmul.f32 0.0625, %v49_v40  ;;  %v98_v43 = vmul.f32 0.0625, %v55_v41 }
  0x95   :  { %v515_v44 = vsub.f32 %v326_v2, %v96_v42  ;;  %v517_v45 = vsub.f32 %v330_v3, %v98_v43 }
  0x96   :  { %v52_v46 = vpop.xlane.xlu0 %51  ;;  %v58_v47 = vpop.xlane.xlu1 %57 }
  0x97   :  { %v97_v48 = vmul.f32 0.0625, %v52_v46  ;;  %v99_v49 = vmul.f32 0.0625, %v58_v47  ;;  %v128_v50 = vmul.f32 %v515_v44, %v515_v44  ;;  %v130_v51 = vmul.f32 %v517_v45, %v517_v45 }
  0x99   :  { %v525_v52 = vsub.f32 %v327_v4, %v97_v48  ;;  %v529_v53 = vsub.f32 %v331_v5, %v99_v49  ;;  %v144_v54 = vsel %vm46_vm0, %v128_v50, 0.0  ;;  %v150_v57 = vsel %vm46_vm0, %v130_v51, 0.0 }
  0x9a   :  { %145 = vadd.xlane.f32.xlu0 %v144_v54  ;;  %v61_v55 = vpop.xlane.xlu0 %60  ;;  %v64_v56 = vpop.xlane.xlu1 %63 }
  0x9b   :  { %v100_v58 = vmul.f32 0.0625, %v61_v55  ;;  %v101_v59 = vmul.f32 0.0625, %v64_v56  ;;  %v129_v60 = vmul.f32 %v525_v52, %v525_v52  ;;  %v131_v61 = vmul.f32 %v529_v53, %v529_v53 }
  0x9d   :  { %v539_v62 = vsub.f32 %v334_v11, %v100_v58  ;;  %v543_v63 = vsub.f32 %v335_v12, %v101_v59  ;;  %v147_v0 = vsel %vm46_vm0, %v129_v60, 0.0  ;;  %v153_v3 = vsel %vm46_vm0, %v131_v61, 0.0 }
  0x9e   :  { %151 = vadd.xlane.f32.xlu0 %v150_v57  ;;  %148 = vadd.xlane.f32.xlu1 %v147_v0  ;;  %v67_v1 = vpop.xlane.xlu0 %66  ;;  %v70_v2 = vpop.xlane.xlu1 %69 }
  0x9f   :  { %v102_v4 = vmul.f32 0.0625, %v67_v1  ;;  %v103_v5 = vmul.f32 0.0625, %v70_v2  ;;  %v132_v7 = vmul.f32 %v539_v62, %v539_v62  ;;  %v133_v8 = vmul.f32 %v543_v63, %v543_v63 }
  0xa1   :  { %v553_v6 = vsub.f32 %v338_v16, %v102_v4  ;;  %v557_v9 = vsub.f32 %v339_v17, %v103_v5  ;;  %v156_v10 = vsel %vm46_vm0, %v132_v7, 0.0  ;;  %v159_v14 = vsel %vm46_vm0, %v133_v8, 0.0 }
  0xa2   :  { %154 = vadd.xlane.f32.xlu1 %v153_v3  ;;  %157 = vadd.xlane.f32.xlu0 %v156_v10  ;;  %v73_v11 = vpop.xlane.xlu0 %72  ;;  %v76_v12 = vpop.xlane.xlu1 %75 }
  0xa3   :  { %v104_v15 = vmul.f32 0.0625, %v73_v11  ;;  %v105_v19 = vmul.f32 0.0625, %v76_v12  ;;  %v134_v20 = vmul.f32 %v553_v6, %v553_v6  ;;  %v135_v16 = vmul.f32 %v557_v9, %v557_v9 }
  0xa5   :  { %v567_v13 = vsub.f32 %v342_v21, %v104_v15  ;;  %v571_v17 = vsub.f32 %v343_v22, %v105_v19  ;;  %v162_v24 = vsel %vm46_vm0, %v134_v20, 0.0  ;;  %v165_v30 = vsel %vm46_vm0, %v135_v16, 0.0 }
  0xa6   :  { %160 = vadd.xlane.f32.xlu1 %v159_v14  ;;  %163 = vadd.xlane.f32.xlu0 %v162_v24  ;;  %v79_v25 = vpop.xlane.xlu0 %78  ;;  %v82_v29 = vpop.xlane.xlu1 %81 }
  0xa7   :  { %v106_v34 = vmul.f32 0.0625, %v79_v25  ;;  %v107_v35 = vmul.f32 0.0625, %v82_v29  ;;  %v136_v38 = vmul.f32 %v567_v13, %v567_v13  ;;  %v137_v21 = vmul.f32 %v571_v17, %v571_v17  ;;  %v626_v29 = vld [vmem:[%s746_s1] ss:$0 sm:$0xff] }
  0xa9   :  { %v581_v18 = vsub.f32 %v346_v26, %v106_v34  ;;  %v585_v22 = vsub.f32 %v347_v27, %v107_v35  ;;  %v168_v39 = vsel %vm46_vm0, %v136_v38, 0.0  ;;  %v171_v42 = vsel %vm46_vm0, %v137_v21, 0.0 }
  0xaa   :  { %166 = vadd.xlane.f32.xlu1 %v165_v30  ;;  %169 = vadd.xlane.f32.xlu0 %v168_v39  ;;  %v85_v40 = vpop.xlane.xlu0 %84  ;;  %v88_v41 = vpop.xlane.xlu1 %87  ;;  %v632_v39 = vld [vmem:[%s747_s2] ss:$0 sm:$0xff] }
  0xab   :  { %v108_v43 = vmul.f32 0.0625, %v85_v40  ;;  %v109_v46 = vmul.f32 0.0625, %v88_v41  ;;  %v138_v47 = vmul.f32 %v581_v18, %v581_v18  ;;  %v139_v26 = vmul.f32 %v585_v22, %v585_v22 }
  0xad   :  { %v595_v23 = vsub.f32 %v350_v31, %v108_v43  ;;  %v599_v27 = vsub.f32 %v351_v32, %v109_v46  ;;  %v174_v48 = vsel %vm46_vm0, %v138_v47, 0.0  ;;  %v177_v51 = vsel %vm46_vm0, %v139_v26, 0.0 }
  0xae   :  { %172 = vadd.xlane.f32.xlu1 %v171_v42  ;;  %175 = vadd.xlane.f32.xlu0 %v174_v48  ;;  %v91_v49 = vpop.xlane.xlu0 %90  ;;  %v94_v50 = vpop.xlane.xlu1 %93 }
  0xaf   :  { %v110_v54 = vmul.f32 0.0625, %v91_v49  ;;  %v111_v55 = vmul.f32 0.0625, %v94_v50  ;;  %v140_v56 = vmul.f32 %v595_v23, %v595_v23  ;;  %v141_v31 = vmul.f32 %v599_v27, %v599_v27 }
  0xb1   :  { %v609_v28 = vsub.f32 %v354_v36, %v110_v54  ;;  %v613_v32 = vsub.f32 %v355_v37, %v111_v55  ;;  %v180_v57 = vsel %vm46_vm0, %v140_v56, 0.0  ;;  %v183_v58 = vsel %vm46_vm0, %v141_v31, 0.0 }
  0xb2   :  { %178 = vadd.xlane.f32.xlu1 %v177_v51  ;;  %181 = vadd.xlane.f32.xlu0 %v180_v57 }
  0xb3   :  { %v142_v59 = vmul.f32 %v609_v28, %v609_v28  ;;  %v143_v60 = vmul.f32 %v613_v32, %v613_v32 }
  0xb5   :  { %v186_v61 = vsel %vm46_vm0, %v142_v59, 0.0  ;;  %v189_v33 = vsel %vm46_vm0, %v143_v60, 0.0 }
  0xb6   :  { %184 = vadd.xlane.f32.xlu1 %v183_v58  ;;  %187 = vadd.xlane.f32.xlu0 %v186_v61 }
  0xba   :  { %190 = vadd.xlane.f32.xlu1 %v189_v33 }
 0x127   :  { %v146_v36 = vpop.xlane.xlu0 %145 }
 0x128   :  { %v192_v37 = vmul.f32 0.0625, %v146_v36 }
 0x12a   :  { %v208_v0 = vadd.f32 1e-05, %v192_v37 }
 0x12b   :  { %v149_v1 = vpop.xlane.xlu1 %148  ;;  %v152_v2 = vpop.xlane.xlu0 %151 }
 0x12c   :  { %363 = vrsqrt.f32 %v208_v0  ;;  %v193_v3 = vmul.f32 0.0625, %v149_v1  ;;  %v194_v4 = vmul.f32 0.0625, %v152_v2 }
 0x12e   :  { %v209_v5 = vadd.f32 1e-05, %v193_v3  ;;  %v210_v7 = vadd.f32 1e-05, %v194_v4 }
 0x12f   :  { %v155_v8 = vpop.xlane.xlu1 %154  ;;  %v158_v10 = vpop.xlane.xlu0 %157 }
 0x130   :  { %365 = vrsqrt.f32 %v209_v5  ;;  %v195_v11 = vmul.f32 0.0625, %v155_v8  ;;  %v196_v12 = vmul.f32 0.0625, %v158_v10 }
 0x131   :  { %367 = vrsqrt.f32 %v210_v7 }
 0x132   :  { %v211_v14 = vadd.f32 1e-05, %v195_v11  ;;  %v212_v15 = vadd.f32 1e-05, %v196_v12 }
 0x133   :  { %v161_v19 = vpop.xlane.xlu1 %160  ;;  %v164_v20 = vpop.xlane.xlu0 %163 }
 0x134   :  { %369 = vrsqrt.f32 %v211_v14  ;;  %v197_v16 = vmul.f32 0.0625, %v161_v19  ;;  %v198_v24 = vmul.f32 0.0625, %v164_v20 }
 0x135   :  { %371 = vrsqrt.f32 %v212_v15 }
 0x136   :  { %v364_v25 = vpop.eup %363  ;;  %v213_v30 = vadd.f32 1e-05, %v197_v16  ;;  %v214_v34 = vadd.f32 1e-05, %v198_v24 }
 0x137   :  { %v240_v35 = vmul.f32 %v364_v25, %v515_v44  ;;  %v167_v38 = vpop.xlane.xlu1 %166  ;;  %v170_v21 = vpop.xlane.xlu0 %169 }
 0x138   :  { %373 = vrsqrt.f32 %v213_v30  ;;  %v199_v40 = vmul.f32 0.0625, %v167_v38  ;;  %v200_v41 = vmul.f32 0.0625, %v170_v21 }
 0x139   :  { %v263_v42 = vmul.f32 %v626_v29, %v240_v35  ;;  %375 = vrsqrt.f32 %v214_v34 }
 0x13a   :  { %v366_v43 = vpop.eup %365  ;;  %v215_v46 = vadd.f32 1e-05, %v199_v40  ;;  %v216_v47 = vadd.f32 1e-05, %v200_v41 }
 0x13b   :  { %v368_v26 = vpop.eup %367  ;;  %v286_v48 = vadd.f32 %v632_v39, %v263_v42  ;;  %v241_v44 = vmul.f32 %v366_v43, %v525_v52  ;;  %v173_v49 = vpop.xlane.xlu1 %172 }
 0x13c   :  { %v176_v50 = vpop.xlane.xlu0 %175  ;;  %v242_v51 = vmul.f32 %v368_v26, %v517_v45  ;;  %377 = vrsqrt.f32 %v215_v46  ;;  %v201_v54 = vmul.f32 0.0625, %v173_v49 }
 0x13d   :  { %v202_v55 = vmul.f32 0.0625, %v176_v50  ;;  %302 = vst.msk [vmem:[%s748_s3] sm:$0xff] %vm46_vm0, %v286_v48  ;;  %v264_v56 = vmul.f32 %v626_v29, %v241_v44  ;;  %379 = vrsqrt.f32 %v216_v47 }
 0x13e   :  { %v370_v31 = vpop.eup %369  ;;  %v265_v57 = vmul.f32 %v626_v29, %v242_v51  ;;  %v217_v58 = vadd.f32 1e-05, %v201_v54 }
 0x13f   :  { %v218_v52 = vadd.f32 1e-05, %v202_v55  ;;  %v372_v59 = vpop.eup %371  ;;  %v287_v60 = vadd.f32 %v632_v39, %v264_v56  ;;  %v243_v45 = vmul.f32 %v370_v31, %v529_v53  ;;  %v179_v61 = vpop.xlane.xlu1 %178 }
 0x140   :  { %v182_v33 = vpop.xlane.xlu0 %181  ;;  %v288_v36 = vadd.f32 %v632_v39, %v265_v57  ;;  %v244_v37 = vmul.f32 %v372_v59, %v539_v62  ;;  %381 = vrsqrt.f32 %v217_v58  ;;  %v203_v0 = vmul.f32 0.0625, %v179_v61 }
 0x141   :  { %303 = vst.msk [vmem:[%s748_s3 + $0x8] sm:$0xff] %vm46_vm0, %v287_v60  ;;  %v266_v1 = vmul.f32 %v626_v29, %v243_v45  ;;  %383 = vrsqrt.f32 %v218_v52  ;;  %v204_v2 = vmul.f32 0.0625, %v182_v33 }
 0x142   :  { %v374_v3 = vpop.eup %373  ;;  %304 = vst.msk [vmem:[%s748_s3 + $0x10] sm:$0xff] %vm46_vm0, %v288_v36  ;;  %v267_v53 = vmul.f32 %v626_v29, %v244_v37  ;;  %v219_v62 = vadd.f32 1e-05, %v203_v0 }
 0x143   :  { %v376_v4 = vpop.eup %375  ;;  %v289_v5 = vadd.f32 %v632_v39, %v266_v1  ;;  %v245_v7 = vmul.f32 %v374_v3, %v543_v63  ;;  %v220_v8 = vadd.f32 1e-05, %v204_v2  ;;  %v185_v10 = vpop.xlane.xlu1 %184 }
 0x144   :  { %v188_v11 = vpop.xlane.xlu0 %187  ;;  %v290_v12 = vadd.f32 %v632_v39, %v267_v53  ;;  %v246_v14 = vmul.f32 %v376_v4, %v553_v6  ;;  %385 = vrsqrt.f32 %v219_v62  ;;  %v205_v15 = vmul.f32 0.0625, %v185_v10 }
 0x145   :  { %305 = vst.msk [vmem:[%s748_s3 + $0x18] sm:$0xff] %vm46_vm0, %v289_v5  ;;  %v268_v19 = vmul.f32 %v626_v29, %v245_v7  ;;  %387 = vrsqrt.f32 %v220_v8  ;;  %v206_v20 = vmul.f32 0.0625, %v188_v11 }
 0x146   :  { %v378_v16 = vpop.eup %377  ;;  %306 = vst.msk [vmem:[%s748_s3 + $0x20] sm:$0xff] %vm46_vm0, %v290_v12  ;;  %v269_v63 = vmul.f32 %v626_v29, %v246_v14  ;;  %v221_v6 = vadd.f32 1e-05, %v205_v15 }
 0x147   :  { %v380_v24 = vpop.eup %379  ;;  %v291_v25 = vadd.f32 %v632_v39, %v268_v19  ;;  %v247_v30 = vmul.f32 %v378_v16, %v557_v9  ;;  %v222_v34 = vadd.f32 1e-05, %v206_v20  ;;  %v191_v35 = vpop.xlane.xlu1 %190 }
 0x148   :  { %v292_v38 = vadd.f32 %v632_v39, %v269_v63  ;;  %v248_v21 = vmul.f32 %v380_v24, %v567_v13  ;;  %389 = vrsqrt.f32 %v221_v6  ;;  %v207_v40 = vmul.f32 0.0625, %v191_v35 }
 0x149   :  { %307 = vst.msk [vmem:[%s748_s3 + $0x28] sm:$0xff] %vm46_vm0, %v291_v25  ;;  %v270_v41 = vmul.f32 %v626_v29, %v247_v30  ;;  %391 = vrsqrt.f32 %v222_v34 }
 0x14a   :  { %v382_v42 = vpop.eup %381  ;;  %308 = vst.msk [vmem:[%s748_s3 + $0x30] sm:$0xff] %vm46_vm0, %v292_v38  ;;  %v271_v9 = vmul.f32 %v626_v29, %v248_v21  ;;  %v223_v43 = vadd.f32 1e-05, %v207_v40 }
 0x14b   :  { %v384_v13 = vpop.eup %383  ;;  %v293_v46 = vadd.f32 %v632_v39, %v270_v41  ;;  %v249_v47 = vmul.f32 %v382_v42, %v571_v17 }
 0x14c   :  { %v294_v26 = vadd.f32 %v632_v39, %v271_v9  ;;  %v250_v48 = vmul.f32 %v384_v13, %v581_v18  ;;  %393 = vrsqrt.f32 %v223_v43 }
 0x14d   :  { %309 = vst.msk [vmem:[%s748_s3 + $0x38] sm:$0xff] %vm46_vm0, %v293_v46  ;;  %v272_v44 = vmul.f32 %v626_v29, %v249_v47 }
 0x14e   :  { %v386_v49 = vpop.eup %385  ;;  %310 = vst.msk [vmem:[%s748_s3 + $0x40] sm:$0xff] %vm46_vm0, %v294_v26  ;;  %v273_v17 = vmul.f32 %v626_v29, %v250_v48 }
 0x14f   :  { %v388_v50 = vpop.eup %387  ;;  %v295_v51 = vadd.f32 %v632_v39, %v272_v44  ;;  %v251_v18 = vmul.f32 %v386_v49, %v585_v22 }
 0x150   :  { %v296_v54 = vadd.f32 %v632_v39, %v273_v17  ;;  %v252_v55 = vmul.f32 %v388_v50, %v595_v23 }
 0x151   :  { %311 = vst.msk [vmem:[%s748_s3 + $0x48] sm:$0xff] %vm46_vm0, %v295_v51  ;;  %v274_v56 = vmul.f32 %v626_v29, %v251_v18 }
 0x152   :  { %v390_v31 = vpop.eup %389  ;;  %312 = vst.msk [vmem:[%s748_s3 + $0x50] sm:$0xff] %vm46_vm0, %v296_v54  ;;  %v275_v57 = vmul.f32 %v626_v29, %v252_v55 }
 0x153   :  { %v392_v22 = vpop.eup %391  ;;  %v297_v58 = vadd.f32 %v632_v39, %v274_v56  ;;  %v253_v23 = vmul.f32 %v390_v31, %v599_v27 }
 0x154   :  { %v298_v52 = vadd.f32 %v632_v39, %v275_v57  ;;  %v254_v59 = vmul.f32 %v392_v22, %v609_v28 }
 0x155   :  { %313 = vst.msk [vmem:[%s748_s3 + $0x58] sm:$0xff] %vm46_vm0, %v297_v58  ;;  %v276_v60 = vmul.f32 %v626_v29, %v253_v23 }
 0x156   :  { %v394_v45 = vpop.eup %393  ;;  %314 = vst.msk [vmem:[%s748_s3 + $0x60] sm:$0xff] %vm46_vm0, %v298_v52  ;;  %v277_v61 = vmul.f32 %v626_v29, %v254_v59 }
 0x157   :  { %v299_v27 = vadd.f32 %v632_v39, %v276_v60  ;;  %v255_v33 = vmul.f32 %v394_v45, %v613_v32 }
 0x158   :  { %v300_v28 = vadd.f32 %v632_v39, %v277_v61 }
 0x159   :  { %315 = vst.msk [vmem:[%s748_s3 + $0x68] sm:$0xff] %vm46_vm0, %v299_v27  ;;  %v278_v36 = vmul.f32 %v626_v29, %v255_v33 }
 0x15a   :  { %316 = vst.msk [vmem:[%s748_s3 + $0x70] sm:$0xff] %vm46_vm0, %v300_v28 }
 0x15b   :  { %v301_v37 = vadd.f32 %v632_v39, %v278_v36 }
 0x15d   :  { %317 = vst.msk [vmem:[%s748_s3 + $0x78] sm:$0xff] %vm46_vm0, %v301_v37 }

// kernel: upsample_forward.13
= control target key start
LH: loop header
LB: loop body
LE: loop exit
PB: predicated region body
PF: predicated region fallthrough
CT: control target
= control target key end

     0   :  { %s3366_s18 = smov 0   ;;  %s3368_s19 = smov 0   ;;  %s3974_s0 = inlined_call_operand.vmem [shape: bf16[2,4,16,64], index: 0, kind: input, shape index: {}]   ;;  %s3975_s1 = inlined_call_operand.vmem [shape: bf16[2,4,16,96], index: 1, kind: input, shape index: {}]   ;;  %s3976_s2 = inlined_call_operand.vmem [shape: f32[4,16,64], index: 2, kind: input, shape index: {}]   ;;  %s3977_s3 = inlined_call_operand.vmem [shape: f32[4,1,64], index: 3, kind: input, shape index: {}]   ;;  %s3978_s4 = inlined_call_operand.vmem [shape: f32[4,1,64], index: 4, kind: input, shape index: {}]   ;;  %s3979_s5 = inlined_call_operand.vmem [shape: f32[2,4,16,64], index: 5, kind: output, shape index: {}]  }
   0x1   :  { %s3370_s20 = smov 0   ;;  %s3372_s21 = smov 0  }
   0x2   :  { %s3374_s22 = smov 0  }
   0x3 LB: > { %s30_s23 = sadd.s32 1, %s3321_s20  ;;  %s34_s24 = sadd.s32 1, %s3325_s21  ;;  %s3329_s22 = sphi %s3374_s22, %s15_s22   ;;  %s3325_s21 = sphi %s3372_s21, %s3985_s21   ;;  %s3321_s20 = sphi %s3370_s20, %s3984_s20   ;;  %s3317_s19 = sphi %s3368_s19, %s3983_s19   ;;  %s3313_s18 = sphi %s3366_s18, %s3982_s18  }
   0x4   : > { %p32_p0 = scmp.ge.s32.totalorder %s30_s23, 4  ;;  %p2886_p1 = scmp.ge.s32.totalorder %s3329_s22, 1 }
   0x5   : > { %p272_p2 = scmp.lt.s32.totalorder %s3329_s22, 9 }
   0x6   : > { %s3987_s23 = smov (%p32_p0, %s30_s23), 0  ;;  %s3989_s24 = smov (!%p32_p0, %s34_s24), %s3325_s21 }
   0x7   : > { %p273_p3 = pnand %p2886_p1, %p272_p2  ;;  %p36_p4 = scmp.ge.s32.totalorder %s3989_s24, 2 }
   0x8   : > { %p341_p5 = scmp.lt.s32.totalorder (!%p273_p3), %s3317_s19, 1  ;;  %p343_p6 = scmp.lt.s32.totalorder (!%p273_p3), %s3313_s18, 3  ;;  %v461_v0 = vlaneseq (!%p273_p3)  ;;  %vm397_vm0 = vcmask (!%p273_p3), 523264   ;;  %v3331_v1 = vmov (!%p273_p3), 0.0   ;;  %v3332_v19 = vmov (!%p273_p3), 0.0|0.0  }
   0x9   : > { %s3991_s24 = smov (%p36_p4, %s3989_s24), 0  ;;  %276 = sbr.rel (%p273_p3) target bundleno = 442 (0x1ba), region = 40 }
   0xa   : > { %398 = vst.msk [vmem:[#allocation5] sm:$0xff] (!%p273_p3), %vm397_vm0, %v3331_v1  ;;  %399 = vst.msk [vmem:[#allocation5 + $0x8] sm:$0xff] (!%p273_p3), %vm397_vm0, %v3331_v1  ;;  %v3402_v2 = vshrl.u32 (!%p273_p3), %v461_v0, 7  ;;  %3086 = vmatprep.subr.bf16.mxu0 (!%p273_p3), %v3332_v19  ;;  %3089 = vmatprep.subr.bf16.mxu1 (!%p273_p3), %v3332_v19  ;;  %v3333_v39 = vmov (!%p273_p3), 1966171168   ;;  %vm3334_vm3 = vmmov (!%p273_p3), 0  }
   0xb   : > { %v459_v40 = vunpack.c.l.s4 (!%p273_p3), %v3333_v39  ;;  %2978 = vmatprep.mubr.msk.f32.mxu0 (!%p273_p3), %vm3334_vm3, %v3331_v1  ;;  %2985 = vmatprep.mubr.msk.f32.mxu1 (!%p273_p3), %vm3334_vm3, %v3331_v1  ;;  %s3335_s14 = smov (!%p273_p3), 48   ;;  %vm1217_vm6 = vcmask (!%p273_p3), 130048   ;;  %vm1290_vm7 = vcmask (!%p273_p3), 516096  }
   0xc   : > { %v3414_v3 = vsub.s32 (!%p273_p3), 0, %v3402_v2  ;;  %v880_v4 = vsub.s32 (!%p273_p3), 1, %v3402_v2  ;;  %v892_v9 = vsub.s32 (!%p273_p3), 2, %v3402_v2  ;;  %v904_v11 = vsub.s32 (!%p273_p3), 3, %v3402_v2 }
   0xd   : > { %v916_v17 = vsub.s32 (!%p273_p3), 4, %v3402_v2  ;;  %v928_v23 = vsub.s32 (!%p273_p3), 5, %v3402_v2  ;;  %v940_v28 = vsub.s32 (!%p273_p3), 6, %v3402_v2  ;;  %v952_v30 = vsub.s32 (!%p273_p3), 7, %v3402_v2 }
   0xe   : > { %v460_v44 = vunpack.c.0.s8 (!%p273_p3), %v459_v40 }
  0x10   : > { %s3993_s19 = smov (!%p341_p5, %s3317_s19), 1  ;;  %s3995_s18 = smov (!%p343_p6, %s3313_s18), 3  ;;  %v3463_v51 = vsub.s32 %v460_v44, %v3402_v2 }
  0x11   : > { %s2888_s25 = sshll.u32 %s3993_s19, 3  ;;  %s2887_s26 = sshll.u32 %s3995_s18, 1 }
  0x12   : > { %s3405_s27 = sadd.s32 %s2888_s25, %s2887_s26  ;;  %s378_s9 = scalar_lea.vmem %s3978_s4, %s3995_s18 }
  0x13   : > { %s2889_s28 = sshll.u32 %s3405_s27, 2  ;;  %v2898_v12 = vld [vmem:[%s378_s9] ss:$0 sm:$0xff]  ;;  %s2917_s10 = sshll.u32 %s3995_s18, 4 }
  0x14   : > { %s366_s6 = scalar_lea.vmem %s3975_s1, %s2889_s28  ;;  %s372_s13 = scalar_lea.vmem %s3976_s2, %s2917_s10 }
  0x15   : > { %v2923_v5 = vld [vmem:[%s366_s6] sm:$0xff]   ;;  %s352_s17 = scalar_lea.vmem %s3974_s0, %s2889_s28  ;;  %s375_s26 = scalar_lea.vmem %s3977_s3, %s3995_s18 }
  0x16   : > { %v3417_v6 = vunpack.c.l.bf16 %v2923_v5  ;;  %v3429_v13 = vunpack.c.h.bf16 %v2923_v5  ;;  %s2897_s28 = sshll.u32 %s3405_s27, 3 }
  0x17   : > { %s3899_s30 = scalar_lea.vmem %s3979_s5, %s2897_s28 }
  0x18   : > { %v881_v7 = vrot.slane %v3417_v6, %v880_v4  ;;  %v869_v8 = vrot.slane %v3417_v6, %v3414_v3  ;;  %v893_v10 = vrot.slane %v3417_v6, %v892_v9  ;;  %v3432_v14 = vadd.f32 %v3417_v6, %v2898_v12 }
  0x19   : > { %v3435_v15 = vadd.f32 %v3429_v13, %v2898_v12  ;;  %v905_v16 = vrot.slane %v3417_v6, %v904_v11  ;;  %v917_v22 = vrot.slane %v3417_v6, %v916_v17  ;;  %v929_v27 = vrot.slane %v3417_v6, %v928_v23 }
  0x1a   : > { %884 = vbcast.lane.b32.xlu1 %v881_v7, 320  ;;  %872 = vbcast.lane.b32.xlu0 %v869_v8, 320  ;;  %v423_v18 = vand.u32 2147483647, %v3432_v14  ;;  %v941_v29 = vrot.slane %v3417_v6, %v940_v28  ;;  %v953_v31 = vrot.slane %v3417_v6, %v952_v30  ;;  %v965_v35 = vrot.slane %v3429_v13, %v3414_v3 }
  0x1b   : > { %v424_v20 = vand.u32 2147483647, %v3435_v15  ;;  %v977_v38 = vrot.slane %v3429_v13, %v880_v4  ;;  %v989_v43 = vrot.slane %v3429_v13, %v892_v9  ;;  %v417_v47 = vmax.f32 %v3432_v14, 0.0 }
  0x1c   : > { %v425_v21 = vsub.f32 0.0, %v423_v18  ;;  %v1001_v50 = vrot.slane %v3429_v13, %v904_v11  ;;  %v1327_v52 = vrot.slane %v3417_v6, 1  ;;  %vm419_vm2 = vcmp.ne.f32.partialorder %v3432_v14, %v3432_v14 }
  0x1d   : > { %v426_v24 = vsub.f32 0.0, %v424_v20  ;;  %v1013_v58 = vrot.slane %v3429_v13, %v916_v17  ;;  %v1025_v59 = vrot.slane %v3429_v13, %v928_v23  ;;  %v1416_v60 = vrot.slane %v3417_v6, 2  ;;  %v3506_v20 = vld [vmem:[%s372_s13] sm:$0xff] }
  0x1e   : > { %888 = vbcast.lane.b32.xlu1 %v881_v7, 328  ;;  %876 = vbcast.lane.b32.xlu0 %v869_v8, 328  ;;  %v427_v25 = vmul.f32 1.442695, %v425_v21  ;;  %v3179_v62 = vpack.i.bf16 %v1327_v52, %v3417_v6  ;;  %v1505_v63 = vrot.slane %v3417_v6, 3  ;;  %v3488_v2 = vrot.slane %v3429_v13, %v940_v28 }
  0x1f   : > { %v429_v26 = vmul.f32 1.442695, %v426_v24  ;;  %v3491_v5 = vrot.slane %v3429_v13, %v952_v30  ;;  %v1793_v17 = vrot.slane %v3417_v6, 6  ;;  %v1882_v18 = vrot.slane %v3417_v6, 7  ;;  %v3515_v30 = vld [vmem:[%s372_s13 + $0x8] sm:$0xff] }
  0x20   : > { %3219 = vpow2.f32 %v427_v25  ;;  %v418_v24 = vmax.f32 %v3435_v15, 0.0  ;;  %v3184_v25 = vpack.i.bf16 %v1505_v63, %v1416_v60  ;;  %vm420_vm5 = vcmp.ne.f32.partialorder %v3435_v15, %v3435_v15 }
  0x21   : > { %3221 = vpow2.f32 %v429_v26  ;;  %v2080_v26 = vrot.slane %v3429_v13, 1 }
  0x22   : > { %900 = vbcast.lane.b32.xlu1 %v893_v10, 328  ;;  %896 = vbcast.lane.b32.xlu0 %v893_v10, 320 }
  0x26   : > { %912 = vbcast.lane.b32.xlu1 %v905_v16, 328  ;;  %908 = vbcast.lane.b32.xlu0 %v905_v16, 320  ;;  %v1704_v16 = vrot.slane %v3417_v6, 5 }
  0x2a   : > { %924 = vbcast.lane.b32.xlu1 %v917_v22, 328  ;;  %920 = vbcast.lane.b32.xlu0 %v917_v22, 320  ;;  %v3220_v32 = vpop.eup %3219 }
  0x2b   : > { %v3222_v33 = vpop.eup %3221  ;;  %v431_v34 = vadd.f32 1.0, %v3220_v32  ;;  %v434_v36 = vmul.f32 -0.5, %v3220_v32  ;;  %v437_v42 = vand.u32 2147483647, %v3220_v32 }
  0x2c   : > { %v440_v37 = vadd.f32 1.0, %v3222_v33  ;;  %v443_v48 = vmul.f32 -0.5, %v3222_v33  ;;  %v446_v57 = vand.u32 2147483647, %v3222_v33 }
  0x2d   : > { %3223 = vlog2.f32 %v431_v34  ;;  %v435_v41 = vadd.f32 1.0, %v434_v36  ;;  %vm438_vm1 = vcmp.lt.f32.partialorder %v437_v42, 0.0004427343  ;;  %v2258_v34 = vrot.slane %v3429_v13, 3 }
  0x2e   : > { %936 = vbcast.lane.b32.xlu1 %v929_v27, 328  ;;  %932 = vbcast.lane.b32.xlu0 %v929_v27, 320  ;;  %3225 = vlog2.f32 %v440_v37  ;;  %v444_v55 = vadd.f32 1.0, %v443_v48  ;;  %vm3498_vm4 = vcmp.lt.f32.partialorder %v446_v57, 0.0004427343  ;;  %v3523_v37 = vpack.i.bf16 %v1882_v18, %v1793_v17 }
  0x2f   : > { %v436_v45 = vmul.f32 %v3220_v32, %v435_v41  ;;  %v2361_v41 = vrot.slane %v3429_v13, 4  ;;  %v3537_v48 = vpack.i.bf16 %v2080_v26, %v3429_v13 }
  0x30   : > { %v445_v8 = vmul.f32 %v3222_v33, %v444_v55 }
  0x32   : > { %948 = vbcast.lane.b32.xlu1 %v941_v29, 328  ;;  %944 = vbcast.lane.b32.xlu0 %v941_v29, 320  ;;  %v2169_v29 = vrot.slane %v3429_v13, 2 }
  0x36   : > { %960 = vbcast.lane.b32.xlu1 %v953_v31, 328  ;;  %956 = vbcast.lane.b32.xlu0 %v953_v31, 320 }
  0x37   : > { %v3224_v46 = vpop.eup %3223 }
  0x38   : > { %v433_v49 = vmul.f32 0.6931472, %v3224_v46  ;;  %v3226_v56 = vpop.eup %3225 }
  0x39   : > { %v442_v7 = vmul.f32 0.6931472, %v3226_v56 }
  0x3a   : > { %972 = vbcast.lane.b32.xlu1 %v965_v35, 328  ;;  %968 = vbcast.lane.b32.xlu0 %v965_v35, 320  ;;  %v439_v53 = vsel %vm438_vm1, %v436_v45, %v433_v49  ;;  %v2457_v49 = vrot.slane %v3429_v13, 5 }
  0x3b   : > { %v449_v54 = vadd.f32 %v439_v53, %v417_v47  ;;  %v448_v28 = vsel %vm3498_vm4, %v445_v8, %v442_v7 }
  0x3c   : > { %v450_v40 = vadd.f32 %v448_v28, %v418_v24 }
  0x3d   : > { %v3479_v61 = vsel %vm419_vm2, %v3432_v14, %v449_v54  ;;  %v1608_v14 = vrot.slane %v3417_v6, 4 }
  0x3e   : > { %984 = vbcast.lane.b32.xlu1 %v977_v38, 328  ;;  %980 = vbcast.lane.b32.xlu0 %v977_v38, 320  ;;  %v457_v0 = vcombine.high %v3479_v61, %v3479_v61  ;;  %v464_v4 = vrot.slane %v3479_v61, %v3463_v51  ;;  %v3544_v56 = vsel %vm420_vm5, %v3435_v15, %v450_v40 }
  0x3f   : > { %v3189_v33 = vpack.i.bf16 %v1704_v16, %v1608_v14  ;;  %v513_v14 = vrot.slane %v3544_v56, %v3463_v51  ;;  %v506_v17 = vcombine.high %v3544_v56, %v3544_v56 }
  0x40   : > { %v471_v9 = vrot.slane %v457_v0, %v3463_v51  ;;  %v472_v10 = vcombine.high %v464_v4, %v464_v4  ;;  %v480_v11 = vrot.slane %v464_v4, %v3463_v51  ;;  %v3204_v4 = vpack.i.bf16 %v2258_v34, %v2169_v29 }
  0x41   : > { %v529_v28 = vrot.slane %v513_v14, %v3463_v51  ;;  %v2635_v29 = vrot.slane %v3429_v13, 7 }
  0x42   : > { %996 = vbcast.lane.b32.xlu1 %v989_v43, 328  ;;  %992 = vbcast.lane.b32.xlu0 %v989_v43, 320  ;;  %v473_v21 = vcombine.high %v471_v9, %v471_v9  ;;  %v494_v22 = vrot.slane %v472_v10, %v3463_v51  ;;  %v502_v23 = vcombine.high %v480_v11, %v480_v11 }
  0x43   : > { %v558_v27 = vrot.slane %v480_v11, %v3414_v3  ;;  %v487_v6 = vrot.slane %v471_v9, %v3463_v51 }
  0x44   : > { %v504_v31 = vcombine.high %v494_v22, %v494_v22  ;;  %v562_v32 = vrot.slane %v494_v22, %v3414_v3  ;;  %v566_v35 = vrot.slane %v502_v23, %v3414_v3  ;;  %v501_v38 = vrot.slane %v473_v21, %v3463_v51 }
  0x45   : > { %v635_v36 = vmul.f32 %v558_v27, %v3506_v20  ;;  %v636_v42 = vmul.f32 %v558_v27, %v3515_v30  ;;  %v503_v44 = vcombine.high %v487_v6, %v487_v6  ;;  %v574_v45 = vrot.slane %v487_v6, %v3414_v3 }
  0x46   : > { %1008 = vbcast.lane.b32.xlu1 %v1001_v50, 328  ;;  %1004 = vbcast.lane.b32.xlu0 %v1001_v50, 320  ;;  %v570_v39 = vrot.slane %v504_v31, %v3414_v3  ;;  %v637_v43 = vmul.f32 %v562_v32, %v3506_v20  ;;  %v638_v46 = vmul.f32 %v562_v32, %v3515_v30  ;;  %v2546_v23 = vrot.slane %v3429_v13, 6 }
  0x47   : > { %v639_v47 = vmul.f32 %v566_v35, %v3506_v20  ;;  %v640_v50 = vmul.f32 %v566_v35, %v3515_v30  ;;  %v667_v52 = vmul.f32 1.442695, %v635_v36  ;;  %v505_v53 = vcombine.high %v501_v38, %v501_v38 }
  0x48   : > { %v578_v54 = vrot.slane %v501_v38, %v3414_v3  ;;  %v641_v55 = vmul.f32 %v570_v39, %v3506_v20  ;;  %v642_v57 = vmul.f32 %v570_v39, %v3515_v30  ;;  %v582_v60 = vrot.slane %v503_v44, %v3414_v3 }
  0x49   : > { %3227 = vpow2.f32 %v667_v52  ;;  %v673_v63 = vmul.f32 1.442695, %v638_v46  ;;  %v675_v0 = vmul.f32 1.442695, %v639_v47  ;;  %v644_v7 = vmul.f32 %v574_v45, %v3515_v30 }
  0x4a   : > { %1020 = vbcast.lane.b32.xlu1 %v1013_v58, 328  ;;  %1016 = vbcast.lane.b32.xlu0 %v1013_v58, 320  ;;  %v669_v58 = vmul.f32 1.442695, %v636_v42  ;;  %v677_v15 = vmul.f32 1.442695, %v640_v50  ;;  %v586_v8 = vrot.slane %v505_v53, %v3414_v3  ;;  %v645_v9 = vmul.f32 %v578_v54, %v3506_v20 }
  0x4b   : > { %v679_v10 = vmul.f32 1.442695, %v641_v55  ;;  %v646_v11 = vmul.f32 %v578_v54, %v3515_v30  ;;  %v681_v12 = vmul.f32 1.442695, %v642_v57  ;;  %v648_v18 = vmul.f32 %v582_v60, %v3515_v30 }
  0x4c   : > { %3229 = vpow2.f32 %v669_v58  ;;  %v685_v21 = vmul.f32 1.442695, %v644_v7  ;;  %v521_v22 = vcombine.high %v513_v14, %v513_v14  ;;  %v649_v24 = vmul.f32 %v586_v8, %v3506_v20 }
  0x4d   : > { %v650_v26 = vmul.f32 %v586_v8, %v3515_v30  ;;  %v689_v27 = vmul.f32 1.442695, %v646_v11  ;;  %v520_v31 = vrot.slane %v506_v17, %v3463_v51  ;;  %v551_v35 = vcombine.high %v529_v28, %v529_v28 }
  0x4e   : > { %1028 = vbcast.lane.b32.xlu1 %v1025_v59, 320  ;;  %3180 = vrot.lane.b32.xlu0 %v3179_v62, %s3335_s14  ;;  %v643_v62 = vmul.f32 %v574_v45, %v3506_v20  ;;  %v543_v34 = vrot.slane %v521_v22, %v3463_v51  ;;  %v695_v36 = vmul.f32 1.442695, %v649_v24  ;;  %v3214_v46 = vpack.i.bf16 %v2635_v29, %v2546_v23 }
  0x4f   : > { %v697_v39 = vmul.f32 1.442695, %v650_v26  ;;  %v522_v40 = vcombine.high %v520_v31, %v520_v31  ;;  %v536_v13 = vrot.slane %v520_v31, %v3463_v51 }
  0x50   : > { %v683_v16 = vmul.f32 1.442695, %v643_v62  ;;  %v553_v42 = vcombine.high %v543_v34, %v543_v34  ;;  %v594_v44 = vrot.slane %v543_v34, %v3414_v3 }
  0x51   : > { %v552_v54 = vcombine.high %v536_v13, %v536_v13 }
  0x52   : > { %3185 = vrot.lane.b32.xlu1 %v3184_v25, %s3335_s14  ;;  %1032 = vbcast.lane.b32.xlu0 %v1025_v59, 328  ;;  %v671_v59 = vmul.f32 1.442695, %v637_v43  ;;  %v687_v25 = vmul.f32 1.442695, %v645_v9  ;;  %v602_v50 = vrot.slane %v553_v42, %v3414_v3  ;;  %v653_v57 = vmul.f32 %v594_v44, %v3506_v20 }
  0x53   : > { %v3228_v32 = vpop.eup %3227 }
  0x54   : > { %3231 = vpow2.f32 %v671_v59  ;;  %732 = vst.msk [vmem:[#allocation2] sm:$0xff] %vm397_vm0, %v3228_v32  ;;  %v606_v59 = vrot.slane %v536_v13, %v3414_v3  ;;  %v657_v9 = vmul.f32 %v602_v50, %v3506_v20  ;;  %v658_v11 = vmul.f32 %v602_v50, %v3515_v30 }
  0x55   : > { %3233 = vpow2.f32 %v673_v63  ;;  %v703_v14 = vmul.f32 1.442695, %v653_v57 }
  0x56   : > { %1044 = vbcast.lane.b32.xlu1 %v3488_v2, 328  ;;  %1040 = vbcast.lane.b32.xlu0 %v3488_v2, 320  ;;  %v647_v2 = vmul.f32 %v582_v60, %v3506_v20  ;;  %3235 = vpow2.f32 %v675_v0  ;;  %v3230_v38 = vpop.eup %3229  ;;  %v654_v60 = vmul.f32 %v594_v44, %v3515_v30  ;;  %v659_v17 = vmul.f32 %v606_v59, %v3506_v20 }
  0x57   : > { %3237 = vpow2.f32 %v677_v15  ;;  %733 = vst.msk [vmem:[#allocation2 + $0x8] sm:$0xff] %vm397_vm0, %v3230_v38  ;;  %v660_v23 = vmul.f32 %v606_v59, %v3515_v30  ;;  %v713_v31 = vmul.f32 1.442695, %v658_v11 }
  0x58   : > { %3239 = vpow2.f32 %v679_v10  ;;  %v691_v6 = vmul.f32 1.442695, %v647_v2  ;;  %v715_v34 = vmul.f32 1.442695, %v659_v17 }
  0x59   : > { %3241 = vpow2.f32 %v681_v12 }
  0x5a   : > { %1052 = vbcast.lane.b32.xlu1 %v3491_v5, 320  ;;  %3190 = vrot.lane.b32.xlu0 %v3189_v33, %s3335_s14  ;;  %3243 = vpow2.f32 %v683_v16  ;;  %v693_v33 = vmul.f32 1.442695, %v648_v18  ;;  %v614_v16 = vrot.slane %v552_v54, %v3414_v3  ;;  %v705_v18 = vmul.f32 1.442695, %v654_v60 }
  0x5b   : > { %3245 = vpow2.f32 %v685_v21 }
  0x5c   : > { %3247 = vpow2.f32 %v687_v25 }
  0x5d   : > { %3249 = vpow2.f32 %v689_v27 }
  0x5e   : > { %3195 = vrot.lane.b32.xlu1 %v3523_v37, %s3335_s14  ;;  %1056 = vbcast.lane.b32.xlu0 %v3491_v5, 328  ;;  %v3232_v43 = vpop.eup %3231  ;;  %v3209_v5 = vpack.i.bf16 %v2457_v49, %v2361_v41  ;;  %3251 = vpow2.f32 %v691_v6  ;;  %v590_v37 = vrot.slane %v529_v28, %v3414_v3  ;;  %v598_v41 = vrot.slane %v551_v35, %v3414_v3 }
  0x5f   : > { %v3234_v45 = vpop.eup %3233  ;;  %3253 = vpow2.f32 %v693_v33  ;;  %734 = vst.msk [vmem:[#allocation2 + $0x10] sm:$0xff] %vm397_vm0, %v3232_v43  ;;  %v711_v28 = vmul.f32 1.442695, %v657_v9  ;;  %v663_v33 = vmul.f32 %v614_v16, %v3506_v20  ;;  %v664_v35 = vmul.f32 %v614_v16, %v3515_v30 }
  0x60   : > { %v3236_v47 = vpop.eup %3235  ;;  %3255 = vpow2.f32 %v695_v36  ;;  %735 = vst.msk [vmem:[#allocation2 + $0x18] sm:$0xff] %vm397_vm0, %v3234_v45  ;;  %v651_v52 = vmul.f32 %v590_v37, %v3506_v20  ;;  %v652_v55 = vmul.f32 %v590_v37, %v3515_v30  ;;  %v655_v62 = vmul.f32 %v598_v41, %v3506_v20 }
  0x61   : > { %v3238_v49 = vpop.eup %3237  ;;  %3257 = vpow2.f32 %v697_v39  ;;  %736 = vst.msk [vmem:[#allocation2 + $0x20] sm:$0xff] %vm397_vm0, %v3236_v47  ;;  %v717_v36 = vmul.f32 1.442695, %v660_v23  ;;  %v723_v37 = vmul.f32 1.442695, %v663_v33 }
  0x62   : > { %3200 = vrot.lane.b32.xlu0 %v3537_v48, %s3335_s14  ;;  %3205 = vrot.lane.b32.xlu1 %v3204_v4, %s3335_s14  ;;  %v550_v48 = vrot.slane %v522_v40, %v3463_v51  ;;  %v3240_v53 = vpop.eup %3239  ;;  %737 = vst.msk [vmem:[#allocation2 + $0x28] sm:$0xff] %vm397_vm0, %v3238_v49  ;;  %v699_v63 = vmul.f32 1.442695, %v651_v52  ;;  %v656_v4 = vmul.f32 %v598_v41, %v3515_v30  ;;  %v701_v12 = vmul.f32 1.442695, %v652_v55 }
  0x63   : > { %v3242_v58 = vpop.eup %3241  ;;  %738 = vst.msk [vmem:[#allocation2 + $0x30] sm:$0xff] %vm397_vm0, %v3240_v53  ;;  %v707_v21 = vmul.f32 1.442695, %v655_v62  ;;  %v725_v44 = vmul.f32 1.442695, %v664_v35 }
  0x64   : > { %v3244_v0 = vpop.eup %3243  ;;  %739 = vst.msk [vmem:[#allocation2 + $0x38] sm:$0xff] %vm397_vm0, %v3242_v58  ;;  %v554_v15 = vcombine.high %v550_v48, %v550_v48  ;;  %v610_v8 = vrot.slane %v550_v48, %v3414_v3  ;;  %3259 = vpow2.f32 %v699_v63  ;;  %v709_v24 = vmul.f32 1.442695, %v656_v4 }
  0x65   : > { %v3246_v7 = vpop.eup %3245  ;;  %740 = vst.msk [vmem:[#allocation2 + $0x40] sm:$0xff] %vm397_vm0, %v3244_v0  ;;  %3261 = vpow2.f32 %v701_v12 }
  0x66   : > { %3210 = vrot.lane.b32.xlu0 %v3209_v5, %s3335_s14  ;;  %3215 = vrot.lane.b32.xlu1 %v3214_v46, %s3335_s14  ;;  %v3248_v10 = vpop.eup %3247  ;;  %741 = vst.msk [vmem:[#allocation2 + $0x48] sm:$0xff] %vm397_vm0, %v3246_v7  ;;  %v618_v26 = vrot.slane %v554_v15, %v3414_v3  ;;  %v661_v27 = vmul.f32 %v610_v8, %v3506_v20  ;;  %3263 = vpow2.f32 %v703_v14  ;;  %v3629_v5 = vld [vmem:[%s352_s17] sm:$0xff]  }
  0x67   : > { %v3250_v2 = vpop.eup %3249  ;;  %742 = vst.msk [vmem:[#allocation2 + $0x50] sm:$0xff] %vm397_vm0, %v3248_v10  ;;  %v662_v6 = vmul.f32 %v610_v8, %v3515_v30  ;;  %3265 = vpow2.f32 %v705_v18  ;;  %v1203_v18 = vld [vmem:[#allocation5] sm:$0xff] }
  0x68   : > { %v3252_v22 = vpop.eup %3251  ;;  %743 = vst.msk [vmem:[#allocation2 + $0x58] sm:$0xff] %vm397_vm0, %v3250_v2  ;;  %3267 = vpow2.f32 %v707_v21  ;;  %v665_v38 = vmul.f32 %v618_v26, %v3506_v20  ;;  %v719_v39 = vmul.f32 1.442695, %v661_v27  ;;  %v666_v40 = vmul.f32 %v618_v26, %v3515_v30  ;;  %v1205_v21 = vld [vmem:[#allocation2] sm:$0xff] }
  0x69   : > { %v3254_v25 = vpop.eup %3253  ;;  %744 = vst.msk [vmem:[#allocation2 + $0x60] sm:$0xff] %vm397_vm0, %v3252_v22  ;;  %3269 = vpow2.f32 %v709_v24  ;;  %v721_v42 = vmul.f32 1.442695, %v662_v6  ;;  %v3633_v20 = vunpack.c.l.bf16 %v3629_v5  ;;  %v1207_v26 = vmul.f32 %v1205_v21, %v1203_v18  ;;  %v1206_v6 = vld [vmem:[#allocation2 + $0x8] sm:$0xff] }
  0x6a   : > { %v3256_v29 = vpop.eup %3255  ;;  %745 = vst.msk [vmem:[#allocation2 + $0x68] sm:$0xff] %vm397_vm0, %v3254_v25  ;;  %3271 = vpow2.f32 %v711_v28  ;;  %v727_v45 = vmul.f32 1.442695, %v665_v38  ;;  %v729_v13 = vmul.f32 1.442695, %v666_v40  ;;  %v1293_v38 = vld [vmem:[#allocation2 + $0x10] sm:$0xff] }
  0x6b   : > { %v3258_v32 = vpop.eup %3257  ;;  %746 = vst.msk [vmem:[#allocation2 + $0x70] sm:$0xff] %vm397_vm0, %v3256_v29  ;;  %3273 = vpow2.f32 %v713_v31  ;;  %v764_v48 = vmul.f32 %v3633_v20, %v3479_v61  ;;  %v1204_v29 = vld [vmem:[#allocation5 + $0x8] sm:$0xff]  ;;  %v1494_v21 = vld [vmem:[#allocation2 + $0x38] sm:$0xff] }
  0x6c   : > { %747 = vst.msk [vmem:[#allocation2 + $0x78] sm:$0xff] %vm397_vm0, %v3258_v32  ;;  %3275 = vpow2.f32 %v715_v34 }
  0x6d   : > { %3277 = vpow2.f32 %v717_v36  ;;  %v775_v55 = vrot.slane %v764_v48, %v3463_v51  ;;  %v768_v10 = vcombine.high %v764_v48, %v764_v48 }
  0x6e   : > { %v3260_v43 = vpop.eup %3259  ;;  %3279 = vpow2.f32 %v719_v39  ;;  %v1208_v39 = vmul.f32 %v1206_v6, %v1204_v29 }
  0x6f   : > { %748 = vst.msk [vmem:[#allocation2 + $0x80] sm:$0xff] %vm397_vm0, %v3260_v43  ;;  %v3262_v46 = vpop.eup %3261  ;;  %3281 = vpow2.f32 %v721_v42  ;;  %v783_v60 = vcombine.high %v775_v55, %v775_v55  ;;  %v791_v4 = vrot.slane %v775_v55, %v3463_v51  ;;  %v782_v17 = vrot.slane %v768_v10, %v3463_v51 }
  0x70   : > { %v3264_v30 = vpop.eup %3263  ;;  %3283 = vpow2.f32 %v723_v37  ;;  %749 = vst.msk [vmem:[#allocation2 + $0x88] sm:$0xff] %vm397_vm0, %v3262_v46 }
  0x71   : > { %v3266_v41 = vpop.eup %3265  ;;  %3285 = vpow2.f32 %v725_v44  ;;  %750 = vst.msk [vmem:[#allocation2 + $0x90] sm:$0xff] %vm397_vm0, %v3264_v30  ;;  %v805_v0 = vrot.slane %v783_v60, %v3463_v51  ;;  %v1061_v15 = vrot.slane %v791_v4, %v3414_v3  ;;  %v813_v14 = vcombine.high %v791_v4, %v791_v4 }
  0x72   : > { %v3268_v47 = vpop.eup %3267  ;;  %3287 = vpow2.f32 %v727_v45  ;;  %751 = vst.msk [vmem:[#allocation2 + $0x98] sm:$0xff] %vm397_vm0, %v3266_v41  ;;  %v784_v31 = vcombine.high %v782_v17, %v782_v17  ;;  %v798_v35 = vrot.slane %v782_v17, %v3463_v51  ;;  %v3669_v44 = vunpack.c.h.bf16 %v3629_v5 }
  0x73   : > { %v3270_v49 = vpop.eup %3269  ;;  %3289 = vpow2.f32 %v729_v13  ;;  %752 = vst.msk [vmem:[#allocation2 + $0xa0] sm:$0xff] %vm397_vm0, %v3268_v47  ;;  %v1065_v7 = vrot.slane %v805_v0, %v3414_v3  ;;  %v1069_v24 = vrot.slane %v813_v14, %v3414_v3  ;;  %v815_v25 = vcombine.high %v805_v0, %v805_v0  ;;  %v1294_v47 = vld [vmem:[#allocation2 + $0x18] sm:$0xff] }
  0x74   : > { %v3272_v50 = vpop.eup %3271  ;;  %753 = vst.msk [vmem:[#allocation2 + $0xa8] sm:$0xff] %vm397_vm0, %v3270_v49  ;;  %v812_v37 = vrot.slane %v784_v31, %v3463_v51  ;;  %v1077_v13 = vrot.slane %v798_v35, %v3414_v3  ;;  %v814_v55 = vcombine.high %v798_v35, %v798_v35 }
  0x75   : > { %v3274_v52 = vpop.eup %3273  ;;  %754 = vst.msk [vmem:[#allocation2 + $0xb0] sm:$0xff] %vm397_vm0, %v3272_v50  ;;  %v1073_v34 = vrot.slane %v815_v25, %v3414_v3  ;;  %v1582_v25 = vld [vmem:[#allocation2 + $0x40] sm:$0xff] }
  0x76   : > { %v3276_v53 = vpop.eup %3275  ;;  %755 = vst.msk [vmem:[#allocation2 + $0xb8] sm:$0xff] %vm397_vm0, %v3274_v52  ;;  %v1404_v52 = vld [vmem:[#allocation2 + $0x20] sm:$0xff]  ;;  %v1081_v5 = vrot.slane %v812_v37, %v3414_v3 }
  0x77   : > { %v3278_v54 = vpop.eup %3277  ;;  %756 = vst.msk [vmem:[#allocation2 + $0xc0] sm:$0xff] %vm397_vm0, %v3276_v53 }
  0x78   : > { %v3280_v57 = vpop.eup %3279  ;;  %757 = vst.msk [vmem:[#allocation2 + $0xc8] sm:$0xff] %vm397_vm0, %v3278_v54 }
  0x79   : > { %v3282_v61 = vpop.eup %3281  ;;  %758 = vst.msk [vmem:[#allocation2 + $0xd0] sm:$0xff] %vm397_vm0, %v3280_v57  ;;  %v3677_v57 = vmul.f32 %v3669_v44, %v3544_v56  ;;  %v1085_v56 = vrot.slane %v814_v55, %v3414_v3 }
  0x7a   : > { %v3284_v58 = vpop.eup %3283  ;;  %759 = vst.msk [vmem:[#allocation2 + $0xd8] sm:$0xff] %vm397_vm0, %v3282_v61 }
  0x7b   : > { %v3286_v59 = vpop.eup %3285  ;;  %760 = vst.msk [vmem:[#allocation2 + $0xe0] sm:$0xff] %vm397_vm0, %v3284_v58 }
  0x7c   : > { %v3288_v62 = vpop.eup %3287  ;;  %761 = vst.msk [vmem:[#allocation2 + $0xe8] sm:$0xff] %vm397_vm0, %v3286_v59 }
  0x7d   : > { %v3290_v63 = vpop.eup %3289  ;;  %762 = vst.msk [vmem:[#allocation2 + $0xf0] sm:$0xff] %vm397_vm0, %v3288_v62 }
  0x7e   : > { %763 = vst.msk [vmem:[#allocation2 + $0xf8] sm:$0xff] %vm397_vm0, %v3290_v63  ;;  %v1405_v63 = vld [vmem:[#allocation2 + $0x28] sm:$0xff] }
  0x8c   : > { %v885_v8 = vpop.permute.xlu1 %884  ;;  %v873_v9 = vpop.permute.xlu0 %872 }
  0x8d   : > { %v1140_v11 = vmul.f32 %v1065_v7, %v885_v8  ;;  %v1138_v12 = vmul.f32 %v1061_v15, %v873_v9 }
  0x8f   : > { %1172 = vst.msk [vmem:[#allocation3 + $0x10] sm:$0xff] %vm397_vm0, %v1140_v11  ;;  %1170 = vst.msk [vmem:[#allocation3] sm:$0xff] %vm397_vm0, %v1138_v12  ;;  %v816_v11 = vcombine.high %v812_v37, %v812_v37  ;;  %v824_v12 = vrot.slane %v3677_v57, %v3463_v51 }
  0x90   : > { %v889_v2 = vpop.permute.xlu1 %888  ;;  %v877_v16 = vpop.permute.xlu0 %876 }
  0x91   : > { %v1141_v22 = vmul.f32 %v1065_v7, %v889_v2  ;;  %v1139_v23 = vmul.f32 %v1061_v15, %v877_v16  ;;  %v1493_v15 = vld [vmem:[#allocation2 + $0x30] sm:$0xff]  ;;  %v832_v29 = vcombine.high %v824_v12, %v824_v12 }
  0x93   : > { %1173 = vst.msk [vmem:[#allocation3 + $0x18] sm:$0xff] %vm397_vm0, %v1141_v22  ;;  %1171 = vst.msk [vmem:[#allocation3 + $0x8] sm:$0xff] %vm397_vm0, %v1139_v23 }
  0x94   : > { %v901_v27 = vpop.permute.xlu1 %900  ;;  %v897_v28 = vpop.permute.xlu0 %896 }
  0x95   : > { %v1143_v32 = vmul.f32 %v1069_v24, %v901_v27  ;;  %v1142_v33 = vmul.f32 %v1069_v24, %v897_v28  ;;  %v1089_v28 = vrot.slane %v816_v11, %v3414_v3 }
  0x96   : > { %v1209_v36 = vld [vmem:[#allocation3] sm:$0xff]  ;;  %v1298_v49 = vld [vmem:[#allocation3 + $0x10] sm:$0xff] }
  0x97   : > { %1175 = vst.msk [vmem:[#allocation3 + $0x28] sm:$0xff] %vm397_vm0, %v1143_v32  ;;  %1174 = vst.msk [vmem:[#allocation3 + $0x20] sm:$0xff] %vm397_vm0, %v1142_v33  ;;  %v1211_v40 = vadd.f32 %v1209_v36, %v1207_v26  ;;  %v1583_v36 = vld [vmem:[#allocation2 + $0x48] sm:$0xff] }
  0x98   : > { %v913_v42 = vpop.permute.xlu1 %912  ;;  %v909_v43 = vpop.permute.xlu0 %908 }
  0x99   : > { %v1145_v45 = vmul.f32 %v1073_v34, %v913_v42  ;;  %v1144_v46 = vmul.f32 %v1073_v34, %v909_v43  ;;  %v1295_v30 = vmul.f32 %v1293_v38, %v1211_v40  ;;  %v840_v34 = vrot.slane %v824_v12, %v3463_v51  ;;  %v1685_v42 = vld [vmem:[#allocation2 + $0x50] sm:$0xff] }
  0x9a   : > { %v1210_v41 = vld [vmem:[#allocation3 + $0x8] sm:$0xff]  ;;  %v1299_v62 = vld [vmem:[#allocation3 + $0x18] sm:$0xff] }
  0x9b   : > { %1177 = vst.msk [vmem:[#allocation3 + $0x38] sm:$0xff] %vm397_vm0, %v1145_v45  ;;  %1176 = vst.msk [vmem:[#allocation3 + $0x30] sm:$0xff] %vm397_vm0, %v1144_v46  ;;  %v1212_v48 = vadd.f32 %v1210_v41, %v1208_v39  ;;  %v1300_v50 = vadd.f32 %v1298_v49, %v1295_v30  ;;  %v854_v45 = vrot.slane %v832_v29, %v3463_v51 }
  0x9c   : > { %v925_v53 = vpop.permute.xlu1 %924  ;;  %v921_v54 = vpop.permute.xlu0 %920  ;;  %v1093_v41 = vrot.slane %v840_v34, %v3414_v3 }
  0x9d   : > { %v1147_v61 = vmul.f32 %v1077_v13, %v925_v53  ;;  %v1146_v58 = vmul.f32 %v1077_v13, %v921_v54  ;;  %v3087_v59 = vpack.c.bf16 %v1212_v48, %v1211_v40  ;;  %v1296_v60 = vmul.f32 %v1294_v47, %v1212_v48  ;;  %v1686_v48 = vld [vmem:[#allocation2 + $0x58] sm:$0xff]  ;;  %v1781_v54 = vld [vmem:[#allocation2 + $0x60] sm:$0xff] }
  0x9e   : > { %v1406_v0 = vmul.f32 %v1404_v52, %v1300_v50  ;;  %v1409_v4 = vld [vmem:[#allocation3 + $0x20] sm:$0xff]  ;;  %v1410_v18 = vld [vmem:[#allocation3 + $0x28] sm:$0xff]  ;;  %v864_v12 = vcombine.high %v854_v45, %v854_v45 }
  0x9f   : > { %1179 = vst.msk [vmem:[#allocation3 + $0x48] sm:$0xff] %vm397_vm0, %v1147_v61  ;;  %1178 = vst.msk [vmem:[#allocation3 + $0x40] sm:$0xff] %vm397_vm0, %v1146_v58  ;;  %3088 = vmatpush3.bf16.msra.mxu0 %v3087_v59  ;;  %v1301_v7 = vadd.f32 %v1299_v62, %v1296_v60  ;;  %v1097_v61 = vrot.slane %v854_v45, %v3414_v3  ;;  %v817_v58 = vcombine.high %v3677_v57, %v3677_v57 }
  0xa0   : > { %v937_v8 = vpop.permute.xlu1 %936  ;;  %v933_v9 = vpop.permute.xlu0 %932  ;;  %v3681_v10 = vadd.f32 %v1409_v4, %v1406_v0  ;;  %3092 = vmatprep.subr.bf16.mxu0 %v3332_v19 }
  0xa1   : > { %v1149_v14 = vmul.f32 %v1081_v5, %v937_v8  ;;  %v1148_v2 = vmul.f32 %v1081_v5, %v933_v9  ;;  %v3090_v16 = vpack.c.bf16 %v1301_v7, %v1300_v50  ;;  %v1407_v17 = vmul.f32 %v1405_v63, %v1301_v7  ;;  %v1782_v7 = vld [vmem:[#allocation2 + $0x68] sm:$0xff] }
  0xa2   : > { %v1495_v22 = vmul.f32 %v1493_v15, %v3681_v10  ;;  %v1498_v23 = vld [vmem:[#allocation3 + $0x30] sm:$0xff]  ;;  %v1499_v35 = vld [vmem:[#allocation3 + $0x38] sm:$0xff]  ;;  %v862_v63 = vcombine.high %v840_v34, %v840_v34 }
  0xa3   : > { %1181 = vst.msk [vmem:[#allocation3 + $0x58] sm:$0xff] %vm397_vm0, %v1149_v14  ;;  %1180 = vst.msk [vmem:[#allocation3 + $0x50] sm:$0xff] %vm397_vm0, %v1148_v2  ;;  %3091 = vmatpush3.bf16.msra.mxu1 %v3090_v16  ;;  %v3690_v24 = vadd.f32 %v1410_v18, %v1407_v17  ;;  %v831_v14 = vrot.slane %v817_v58, %v3463_v51 }
  0xa4   : > { %v949_v26 = vpop.permute.xlu1 %948  ;;  %v945_v27 = vpop.permute.xlu0 %944  ;;  %3095 = vmatprep.subr.bf16.mxu1 %v3332_v19  ;;  %v3694_v6 = vadd.f32 %v1498_v23, %v1495_v22  ;;  %v1101_v18 = vrot.slane %v862_v63, %v3414_v3  ;;  %v1871_v23 = vld [vmem:[#allocation2 + $0x78] sm:$0xff]  ;;  %v2157_v63 = vld [vmem:[#allocation2 + $0xa0] sm:$0xff] }
  0xa5   : > { %v1496_v31 = vmul.f32 %v1494_v21, %v3690_v24  ;;  %v1151_v32 = vmul.f32 %v1085_v56, %v949_v26  ;;  %v1150_v33 = vmul.f32 %v1085_v56, %v945_v27  ;;  %v1870_v56 = vld [vmem:[#allocation2 + $0x70] sm:$0xff] }
  0xa6   : > { %v1584_v38 = vmul.f32 %v1582_v25, %v3694_v6  ;;  %v1587_v39 = vld [vmem:[#allocation3 + $0x40] sm:$0xff]  ;;  %v1588_v49 = vld [vmem:[#allocation3 + $0x48] sm:$0xff] }
  0xa7   : > { %1183 = vst.msk [vmem:[#allocation3 + $0x68] sm:$0xff] %vm397_vm0, %v1151_v32  ;;  %1182 = vst.msk [vmem:[#allocation3 + $0x60] sm:$0xff] %vm397_vm0, %v1150_v33  ;;  %v3701_v40 = vadd.f32 %v1499_v35, %v1496_v31  ;;  %v1105_v32 = vrot.slane %v864_v12, %v3414_v3  ;;  %v847_v33 = vrot.slane %v831_v14, %v3463_v51 }
  0xa8   : > { %v961_v43 = vpop.permute.xlu1 %960  ;;  %v957_v37 = vpop.permute.xlu0 %956  ;;  %v3704_v46 = vadd.f32 %v1587_v39, %v1584_v38  ;;  %v833_v38 = vcombine.high %v831_v14, %v831_v14 }
  0xa9   : > { %v1153_v13 = vmul.f32 %v1089_v28, %v961_v43  ;;  %v1152_v30 = vmul.f32 %v1089_v28, %v957_v37  ;;  %v1585_v47 = vmul.f32 %v1583_v36, %v3701_v40  ;;  %v1959_v28 = vld [vmem:[#allocation2 + $0x80] sm:$0xff]  ;;  %v1960_v43 = vld [vmem:[#allocation2 + $0x88] sm:$0xff] }
  0xaa   : > { %v1687_v50 = vmul.f32 %v1685_v42, %v3704_v46  ;;  %v1690_v52 = vld [vmem:[#allocation3 + $0x50] sm:$0xff]  ;;  %v1691_v4 = vld [vmem:[#allocation3 + $0x58] sm:$0xff] }
  0xab   : > { %1185 = vst.msk [vmem:[#allocation3 + $0x78] sm:$0xff] %vm397_vm0, %v1153_v13  ;;  %1184 = vst.msk [vmem:[#allocation3 + $0x70] sm:$0xff] %vm397_vm0, %v1152_v30  ;;  %v3711_v53 = vadd.f32 %v1588_v49, %v1585_v47  ;;  %v2046_v30 = vld [vmem:[#allocation2 + $0x90] sm:$0xff]  ;;  %v1109_v49 = vrot.slane %v847_v33, %v3414_v3 }
  0xac   : > { %v973_v5 = vpop.permute.xlu1 %972  ;;  %v969_v55 = vpop.permute.xlu0 %968  ;;  %v3716_v59 = vadd.f32 %v1690_v52, %v1687_v50 }
  0xad   : > { %v1155_v60 = vmul.f32 %v1093_v41, %v973_v5  ;;  %v1154_v62 = vmul.f32 %v1093_v41, %v969_v55  ;;  %v1688_v0 = vmul.f32 %v1686_v48, %v3711_v53 }
  0xae   : > { %v1783_v15 = vmul.f32 %v1781_v54, %v3716_v59  ;;  %v1786_v8 = vld [vmem:[#allocation3 + $0x60] sm:$0xff]  ;;  %v1787_v22 = vld [vmem:[#allocation3 + $0x68] sm:$0xff]  ;;  %v3748_v54 = vrot.slane %v833_v38, %v3463_v51 }
  0xaf   : > { %1187 = vst.msk [vmem:[#allocation3 + $0x88] sm:$0xff] %vm397_vm0, %v1155_v60  ;;  %1186 = vst.msk [vmem:[#allocation3 + $0x80] sm:$0xff] %vm397_vm0, %v1154_v62  ;;  %v3722_v9 = vadd.f32 %v1691_v4, %v1688_v0 }
  0xb0   : > { %v985_v57 = vpop.permute.xlu1 %984  ;;  %v981_v11 = vpop.permute.xlu0 %980  ;;  %v3725_v2 = vadd.f32 %v1786_v8, %v1783_v15 }
  0xb1   : > { %v1157_v16 = vmul.f32 %v1097_v61, %v985_v57  ;;  %v1156_v17 = vmul.f32 %v1097_v61, %v981_v11  ;;  %v1784_v21 = vmul.f32 %v1782_v7, %v3722_v9  ;;  %v2047_v61 = vld [vmem:[#allocation2 + $0x98] sm:$0xff] }
  0xb2   : > { %v1872_v25 = vmul.f32 %v1870_v56, %v3725_v2  ;;  %v1875_v26 = vld [vmem:[#allocation3 + $0x70] sm:$0xff]  ;;  %v1876_v42 = vld [vmem:[#allocation3 + $0x78] sm:$0xff]  ;;  %v1113_v56 = vrot.slane %v3748_v54, %v3414_v3 }
  0xb3   : > { %1189 = vst.msk [vmem:[#allocation3 + $0x98] sm:$0xff] %vm397_vm0, %v1157_v16  ;;  %1188 = vst.msk [vmem:[#allocation3 + $0x90] sm:$0xff] %vm397_vm0, %v1156_v17  ;;  %v3732_v27 = vadd.f32 %v1787_v22, %v1784_v21  ;;  %v863_v16 = vcombine.high %v847_v33, %v847_v33  ;;  %v2246_v21 = vld [vmem:[#allocation2 + $0xb0] sm:$0xff] }
  0xb4   : > { %v997_v29 = vpop.permute.xlu1 %996  ;;  %v993_v31 = vpop.permute.xlu0 %992  ;;  %v3736_v34 = vadd.f32 %v1875_v26, %v1872_v25 }
  0xb5   : > { %v1159_v35 = vmul.f32 %v1101_v18, %v997_v29  ;;  %v1158_v36 = vmul.f32 %v1101_v18, %v993_v31  ;;  %v1873_v39 = vmul.f32 %v1871_v23, %v3732_v27  ;;  %v2158_v18 = vld [vmem:[#allocation2 + $0xa8] sm:$0xff]  ;;  %v3093_v31 = vpack.c.bf16 %v3690_v24, %v3681_v10 }
  0xb6   : > { %v1961_v37 = vmul.f32 %v1959_v28, %v3736_v34  ;;  %v1964_v45 = vld [vmem:[#allocation3 + $0x80] sm:$0xff]  ;;  %v1965_v55 = vld [vmem:[#allocation3 + $0x88] sm:$0xff]  ;;  %v1117_v38 = vrot.slane %v863_v16, %v3414_v3 }
  0xb7   : > { %1191 = vst.msk [vmem:[#allocation3 + $0xa8] sm:$0xff] %vm397_vm0, %v1159_v35  ;;  %1190 = vst.msk [vmem:[#allocation3 + $0xa0] sm:$0xff] %vm397_vm0, %v1158_v36  ;;  %v3742_v13 = vadd.f32 %v1876_v42, %v1873_v39  ;;  %v2247_v42 = vld [vmem:[#allocation2 + $0xb8] sm:$0xff] }
  0xb8   : > { %v1009_v41 = vpop.permute.xlu1 %1008  ;;  %v1005_v47 = vpop.permute.xlu0 %1004  ;;  %v3745_v48 = vadd.f32 %v1964_v45, %v1961_v37 }
  0xb9   : > { %v1161_v50 = vmul.f32 %v1105_v32, %v1009_v41  ;;  %v1160_v52 = vmul.f32 %v1105_v32, %v1005_v47  ;;  %v1962_v5 = vmul.f32 %v1960_v43, %v3742_v13  ;;  %v3096_v32 = vpack.c.bf16 %v3701_v40, %v3694_v6  ;;  %v2335_v43 = vld [vmem:[#allocation2 + $0xc0] sm:$0xff] }
  0xba   : > { %v2048_v58 = vmul.f32 %v2046_v30, %v3745_v48  ;;  %v2051_v60 = vld [vmem:[#allocation3 + $0x90] sm:$0xff]  ;;  %v2052_v11 = vld [vmem:[#allocation3 + $0x98] sm:$0xff]  ;;  %v865_v6 = vcombine.high %v3748_v54, %v3748_v54  ;;  %v3099_v47 = vpack.c.bf16 %v3711_v53, %v3704_v46  ;;  %v2336_v46 = vld [vmem:[#allocation2 + $0xc8] sm:$0xff] }
  0xbb   : > { %1193 = vst.msk [vmem:[#allocation3 + $0xb8] sm:$0xff] %vm397_vm0, %v1161_v50  ;;  %1192 = vst.msk [vmem:[#allocation3 + $0xb0] sm:$0xff] %vm397_vm0, %v1160_v52  ;;  %v3754_v62 = vadd.f32 %v1965_v55, %v1962_v5  ;;  %v2438_v53 = vld [vmem:[#allocation2 + $0xd0] sm:$0xff] }
  0xbc   : > { %v1021_v0 = vpop.permute.xlu1 %1020  ;;  %v1017_v4 = vpop.permute.xlu0 %1016  ;;  %v3756_v7 = vadd.f32 %v2051_v60, %v2048_v58 }
  0xbd   : > { %v1163_v15 = vmul.f32 %v1109_v49, %v1021_v0  ;;  %v1162_v8 = vmul.f32 %v1109_v49, %v1017_v4  ;;  %v2049_v57 = vmul.f32 %v2047_v61, %v3754_v62  ;;  %v3102_v49 = vpack.c.bf16 %v3722_v9, %v3716_v59 }
  0xbe   : > { %v2159_v12 = vmul.f32 %v2157_v63, %v3756_v7  ;;  %v2162_v14 = vld [vmem:[#allocation3 + $0xa0] sm:$0xff]  ;;  %v2163_v39 = vld [vmem:[#allocation3 + $0xa8] sm:$0xff]  ;;  %v1121_v63 = vrot.slane %v865_v6, %v3414_v3 }
  0xbf   : > { %1195 = vst.msk [vmem:[#allocation3 + $0xc8] sm:$0xff] %vm397_vm0, %v1163_v15  ;;  %1194 = vst.msk [vmem:[#allocation3 + $0xc0] sm:$0xff] %vm397_vm0, %v1162_v8  ;;  %v3764_v17 = vadd.f32 %v2052_v11, %v2049_v57  ;;  %v2439_v8 = vld [vmem:[#allocation2 + $0xd8] sm:$0xff] }
  0xc0   : > { %v1029_v22 = vpop.permute.xlu1 %1028  ;;  %v3181_v23 = vpop.permute.xlu0 %3180  ;;  %v3766_v25 = vadd.f32 %v2162_v14, %v2159_v12 }
  0xc1   : > { %v1164_v26 = vmul.f32 %v1113_v56, %v1029_v22  ;;  %v3183_v28 = vunpack.i.h.bf16 %v3181_v23  ;;  %v3182_v29 = vunpack.i.l.bf16 %v3181_v23  ;;  %v2160_v33 = vmul.f32 %v2158_v18, %v3764_v17 }
  0xc2   : > { %v2248_v35 = vmul.f32 %v2246_v21, %v3766_v25  ;;  %v2251_v36 = vld [vmem:[#allocation3 + $0xb0] sm:$0xff]  ;;  %v2252_v5 = vld [vmem:[#allocation3 + $0xb8] sm:$0xff]  ;;  %v3105_v21 = vpack.c.bf16 %v3732_v27, %v3725_v2  ;;  %v3108_v22 = vpack.c.bf16 %v3742_v13, %v3736_v34  ;;  %v3111_v13 = vpack.c.bf16 %v3754_v62, %v3745_v48 }
  0xc3   : > { %1196 = vst.msk [vmem:[#allocation3 + $0xd0] sm:$0xff] %vm397_vm0, %v1164_v26  ;;  %2979 = vmatmul.mubr.msk.f32.vlgmr.msra.gmra.mrb[0].mxu0 %vm1217_vm6, %v3182_v29  ;;  %2986 = vmatmul.mubr.msk.f32.vlgmr.msra.gmra.mrb[0].mxu1 %vm1217_vm6, %v3183_v28  ;;  %v3780_v40 = vadd.f32 %v2163_v39, %v2160_v33  ;;  %v2534_v28 = vld [vmem:[#allocation2 + $0xe0] sm:$0xff]  ;;  %v2535_v29 = vld [vmem:[#allocation2 + $0xe8] sm:$0xff] }
  0xc4   : > { %3094 = vmatpush3.bf16.msra.mxu0 %v3093_v31  ;;  %3097 = vmatpush3.bf16.msra.mxu1 %v3096_v32  ;;  %v3186_v10 = vpop.permute.xlu1 %3185  ;;  %v1033_v24 = vpop.permute.xlu0 %1032  ;;  %v3782_v37 = vadd.f32 %v2251_v36, %v2248_v35  ;;  %v3114_v36 = vpack.c.bf16 %v3764_v17, %v3756_v7 }
  0xc5   : > { %v3188_v45 = vunpack.i.h.bf16 %v3186_v10  ;;  %v3187_v30 = vunpack.i.l.bf16 %v3186_v10  ;;  %v1165_v41 = vmul.f32 %v1113_v56, %v1033_v24  ;;  %2992 = vmatprep.mubr.msk.f32.mxu0 %vm3334_vm3, %v3331_v1  ;;  %2999 = vmatprep.mubr.msk.f32.mxu1 %vm3334_vm3, %v3331_v1  ;;  %v2249_v50 = vmul.f32 %v2247_v42, %v3780_v40  ;;  %v2623_v10 = vld [vmem:[#allocation2 + $0xf0] sm:$0xff] }
  0xc6   : > { %3098 = vmatprep.subr.bf16.mxu0 %v3332_v19  ;;  %3101 = vmatprep.subr.bf16.mxu1 %v3332_v19  ;;  %v2337_v52 = vmul.f32 %v2335_v43, %v3782_v37  ;;  %v2340_v54 = vld [vmem:[#allocation3 + $0xc0] sm:$0xff]  ;;  %v2341_v3 = vld [vmem:[#allocation3 + $0xc8] sm:$0xff]  ;;  %v3117_v7 = vpack.c.bf16 %v3780_v40, %v3766_v25 }
  0xc7   : > { %1197 = vst.msk [vmem:[#allocation3 + $0xd8] sm:$0xff] %vm397_vm0, %v1165_v41  ;;  %2993 = vmatmul.mubr.msk.f32.vlgmr.msra.gmra.mrb[2].mxu0 %vm1217_vm6, %v3187_v30  ;;  %3000 = vmatmul.mubr.msk.f32.vlgmr.msra.gmra.mrb[2].mxu1 %vm1217_vm6, %v3188_v45  ;;  %v3799_v58 = vadd.f32 %v2252_v5, %v2249_v50  ;;  %v2624_v30 = vld [vmem:[#allocation2 + $0xf8] sm:$0xff] }
  0xc8   : > { %3100 = vmatpush3.bf16.msra.mxu0 %v3099_v47  ;;  %3103 = vmatpush3.bf16.msra.mxu1 %v3102_v49  ;;  %v1045_v55 = vpop.permute.xlu1 %1044  ;;  %v1041_v61 = vpop.permute.xlu0 %1040  ;;  %v3801_v59 = vadd.f32 %v2340_v54, %v2337_v52 }
  0xc9   : > { %v1167_v9 = vmul.f32 %v1117_v38, %v1045_v55  ;;  %v1166_v60 = vmul.f32 %v1117_v38, %v1041_v61  ;;  %3006 = vmatprep.mubr.msk.f32.mxu0 %vm3334_vm3, %v3331_v1  ;;  %3013 = vmatprep.mubr.msk.f32.mxu1 %vm3334_vm3, %v3331_v1  ;;  %v2338_v0 = vmul.f32 %v2336_v46, %v3799_v58 }
  0xca   : > { %3104 = vmatprep.subr.bf16.mxu0 %v3332_v19  ;;  %3107 = vmatprep.subr.bf16.mxu1 %v3332_v19  ;;  %v2440_v4 = vmul.f32 %v2438_v53, %v3801_v59  ;;  %v2443_v15 = vld [vmem:[#allocation3 + $0xd0] sm:$0xff]  ;;  %v3120_v17 = vpack.c.bf16 %v3799_v58, %v3782_v37 }
  0xcb   : > { %1199 = vst.msk [vmem:[#allocation3 + $0xe8] sm:$0xff] %vm397_vm0, %v1167_v9  ;;  %1198 = vst.msk [vmem:[#allocation3 + $0xe0] sm:$0xff] %vm397_vm0, %v1166_v60  ;;  %v3814_v11 = vadd.f32 %v2341_v3, %v2338_v0 }
  0xcc   : > { %v1053_v56 = vpop.permute.xlu1 %1052  ;;  %v3191_v57 = vpop.permute.xlu0 %3190  ;;  %v3816_v18 = vadd.f32 %v2443_v15, %v2440_v4  ;;  %v1591_v15 = vcombine.high %v3633_v20, %v3633_v20 }
  0xcd   : > { %v1168_v12 = vmul.f32 %v1121_v63, %v1053_v56  ;;  %v3193_v14 = vunpack.i.h.bf16 %v3191_v57  ;;  %v3192_v16 = vunpack.i.l.bf16 %v3191_v57  ;;  %v2441_v23 = vmul.f32 %v2439_v8, %v3814_v11 }
  0xce   : > { %v2444_v26 = vld [vmem:[#allocation3 + $0xd8] sm:$0xff]  ;;  %v2536_v34 = vmul.f32 %v2534_v28, %v3816_v18  ;;  %v3123_v40 = vpack.c.bf16 %v3814_v11, %v3801_v59  ;;  %v1598_v11 = vrot.slane %v1591_v15, %v3463_v51 }
  0xcf   : > { %1200 = vst.msk [vmem:[#allocation3 + $0xf0] sm:$0xff] %vm397_vm0, %v1168_v12  ;;  %3007 = vmatmul.mubr.msk.f32.vlgmr.msra.gmra.mrb[4].mxu0 %vm1217_vm6, %v3192_v16  ;;  %3014 = vmatmul.mubr.msk.f32.vlgmr.msra.gmra.mrb[4].mxu1 %vm1217_vm6, %v3193_v14  ;;  %v2446_v33 = vadd.f32 %v2444_v26, %v2441_v23 }
  0xd0   : > { %3106 = vmatpush3.bf16.msra.mxu0 %v3105_v21  ;;  %3109 = vmatpush3.bf16.msra.mxu1 %v3108_v22  ;;  %v3196_v31 = vpop.permute.xlu1 %3195  ;;  %v1057_v32 = vpop.permute.xlu0 %1056  ;;  %v1694_v26 = vcombine.high %v1598_v11, %v1598_v11 }
  0xd1   : > { %v3198_v2 = vunpack.i.h.bf16 %v3196_v31  ;;  %v3197_v27 = vunpack.i.l.bf16 %v3196_v31  ;;  %v1169_v35 = vmul.f32 %v1121_v63, %v1057_v32  ;;  %3020 = vmatprep.mubr.msk.f32.mxu0 %vm3334_vm3, %v3331_v1  ;;  %3027 = vmatprep.mubr.msk.f32.mxu1 %vm3334_vm3, %v3331_v1  ;;  %v2537_v38 = vmul.f32 %v2535_v29, %v2446_v33 }
  0xd2   : > { %3110 = vmatprep.subr.bf16.mxu0 %v3332_v19  ;;  %3113 = vmatprep.subr.bf16.mxu1 %v3332_v19  ;;  %v2539_v39 = vld [vmem:[#allocation3 + $0xe0] sm:$0xff]  ;;  %v2540_v42 = vld [vmem:[#allocation3 + $0xe8] sm:$0xff]  ;;  %v3126_v37 = vpack.c.bf16 %v2446_v33, %v3816_v18  ;;  %v2062_v31 = vrot.slane %v3669_v44, %v3463_v51 }
  0xd3   : > { %1201 = vst.msk [vmem:[#allocation3 + $0xf8] sm:$0xff] %vm397_vm0, %v1169_v35  ;;  %3021 = vmatmul.mubr.msk.f32.vlgmr.msra.gmra.mrb[6].mxu0 %vm1217_vm6, %v3197_v27  ;;  %3028 = vmatmul.mubr.msk.f32.vlgmr.msra.gmra.mrb[6].mxu1 %vm1217_vm6, %v3198_v2  ;;  %v2541_v43 = vadd.f32 %v2539_v39, %v2536_v34  ;;  %v2542_v62 = vadd.f32 %v2540_v42, %v2537_v38 }
  0xd4   : > { %3112 = vmatpush3.bf16.msra.mxu0 %v3111_v13  ;;  %3115 = vmatpush3.bf16.msra.mxu1 %v3114_v36  ;;  %v3201_v24 = vpop.permute.xlu0 %3200  ;;  %v3206_v6 = vpop.permute.xlu1 %3205  ;;  %v1605_v35 = vrot.slane %v1598_v11, %v3463_v51  ;;  %v1701_v34 = vrot.slane %v1694_v26, %v3463_v51  ;;  %v2063_v36 = vcombine.high %v2062_v31, %v2062_v31 }
  0xd5   : > { %v3203_v45 = vunpack.i.h.bf16 %v3201_v24  ;;  %v3202_v48 = vunpack.i.l.bf16 %v3201_v24  ;;  %3034 = vmatprep.mubr.msk.f32.mxu0 %vm3334_vm3, %v3331_v1  ;;  %3041 = vmatprep.mubr.msk.f32.mxu1 %vm3334_vm3, %v3331_v1  ;;  %v2625_v41 = vmul.f32 %v2623_v10, %v2541_v43  ;;  %v3208_v49 = vunpack.i.h.bf16 %v3206_v6 }
  0xd6   : > { %3116 = vmatprep.subr.bf16.mxu0 %v3332_v19  ;;  %3119 = vmatprep.subr.bf16.mxu1 %v3332_v19  ;;  %v2628_v47 = vld [vmem:[#allocation3 + $0xf0] sm:$0xff]  ;;  %v3207_v50 = vunpack.i.l.bf16 %v3206_v6  ;;  %v2626_v25 = vmul.f32 %v2624_v30, %v2542_v62  ;;  %v3129_v59 = vpack.c.bf16 %v2542_v62, %v2541_v43  ;;  %v1790_v13 = vcombine.high %v1605_v35, %v1605_v35 }
  0xd7   : > { %3035 = vmatmul.mubr.msk.f32.vlgmr.msra.gmra.mrb[8].mxu0 %vm1217_vm6, %v3202_v48  ;;  %3042 = vmatmul.mubr.msk.f32.vlgmr.msra.gmra.mrb[8].mxu1 %vm1217_vm6, %v3203_v45  ;;  %v2630_v54 = vadd.f32 %v2628_v47, %v2625_v41  ;;  %v2344_v38 = vcombine.high %v3669_v44, %v3669_v44  ;;  %v1879_v43 = vcombine.high %v1701_v34, %v1701_v34 }
  0xd8   : > { %3118 = vmatpush3.bf16.msra.mxu0 %v3117_v7  ;;  %3121 = vmatpush3.bf16.msra.mxu1 %v3120_v17  ;;  %v3211_v52 = vpop.permute.xlu0 %3210  ;;  %v3216_v61 = vpop.permute.xlu1 %3215  ;;  %v2077_v45 = vrot.slane %v2063_v36, %v3463_v51  ;;  %v2070_v47 = vrot.slane %v2062_v31, %v3463_v51 }
  0xd9   : > { %3048 = vmatprep.mubr.msk.f32.mxu0 %vm3334_vm3, %v3331_v1  ;;  %3055 = vmatprep.mubr.msk.f32.mxu1 %vm3334_vm3, %v3331_v1  ;;  %2711 = vst.msk [vmem:[#allocation5] sm:$0xff] %vm397_vm0, %v2630_v54  ;;  %v3213_v46 = vunpack.i.h.bf16 %v3211_v52  ;;  %v3212_v53 = vunpack.i.l.bf16 %v3211_v52  ;;  %v3218_v9 = vunpack.i.h.bf16 %v3216_v61  ;;  %v3217_v60 = vunpack.i.l.bf16 %v3216_v61 }
  0xda   : > { %3122 = vmatprep.subr.bf16.mxu0 %v3332_v19  ;;  %3125 = vmatprep.subr.bf16.mxu1 %v3332_v19  ;;  %v2629_v5 = vld [vmem:[#allocation3 + $0xf8] sm:$0xff]  ;;  %v2351_v48 = vrot.slane %v2344_v38, %v3463_v51 }
  0xdb   : > { %3049 = vmatmul.mubr.msk.f32.vlgmr.msra.gmra.mrb[10].mxu0 %vm1217_vm6, %v3207_v50  ;;  %3056 = vmatmul.mubr.msk.f32.vlgmr.msra.gmra.mrb[10].mxu1 %vm1217_vm6, %v3208_v49  ;;  %v2631_v55 = vadd.f32 %v2629_v5, %v2626_v25 }
  0xdc   : > { %3124 = vmatpush3.bf16.msra.mxu0 %v3123_v40  ;;  %3127 = vmatpush3.bf16.msra.mxu1 %v3126_v37  ;;  %v2447_v25 = vcombine.high %v2351_v48, %v2351_v48 }
  0xdd   : > { %3062 = vmatprep.mubr.msk.f32.mxu0 %vm3334_vm3, %v3331_v1  ;;  %3069 = vmatprep.mubr.msk.f32.mxu1 %vm3334_vm3, %v3331_v1  ;;  %v3132_v58 = vpack.c.bf16 %v2631_v55, %v2630_v54  ;;  %2712 = vst.msk [vmem:[#allocation5 + $0x8] sm:$0xff] %vm397_vm0, %v2631_v55  ;;  %v2255_v55 = vcombine.high %v2077_v45, %v2077_v45 }
  0xde   : > { %3128 = vmatprep.subr.bf16.mxu0 %v3332_v19  ;;  %3131 = vmatprep.subr.bf16.mxu1 %v3332_v19  ;;  %v1309_v19 = vrot.slane %v3633_v20, %v3463_v51 }
  0xdf   : > { %3063 = vmatmul.mubr.msk.f32.vlgmr.msra.gmra.mrb[12].mxu0 %vm1217_vm6, %v3212_v53  ;;  %3070 = vmatmul.mubr.msk.f32.vlgmr.msra.gmra.mrb[12].mxu1 %vm1217_vm6, %v3213_v46  ;;  %v2166_v53 = vcombine.high %v2070_v47, %v2070_v47 }
  0xe0   : > { %3130 = vmatpush3.bf16.msra.mxu0 %v3129_v59  ;;  %3133 = vmatpush3.bf16.msra.mxu1 %v3132_v58  ;;  %v1310_v63 = vcombine.high %v1309_v19, %v1309_v19  ;;  %v1317_v0 = vrot.slane %v1309_v19, %v3463_v51  ;;  %v2358_v59 = vrot.slane %v2351_v48, %v3463_v51 }
  0xe1   : > { %3076 = vmatprep.mubr.msk.f32.mxu0 %vm3334_vm3, %v3331_v1  ;;  %3083 = vmatprep.mubr.msk.f32.mxu1 %vm3334_vm3, %v3331_v1  ;;  %v3889_v1 = vld [vmem:[%s375_s26] sm:$0x1] }
  0xe2   : > { %v1324_v4 = vrot.slane %v1310_v63, %v3463_v51  ;;  %v1413_v3 = vcombine.high %v1317_v0, %v1317_v0  ;;  %v1213_v8 = vmul.f32 %v3633_v20, %v3889_v1  ;;  %v1607_v39 = vmul.f32 %v1605_v35, %v3889_v1 }
  0xe3   : > { %3077 = vmatmul.mubr.msk.f32.vlgmr.msra.gmra.mrb[14].mxu0 %vm1217_vm6, %v3217_v60  ;;  %3084 = vmatmul.mubr.msk.f32.vlgmr.msra.gmra.mrb[14].mxu1 %vm1217_vm6, %v3218_v9  ;;  %v1703_v42 = vmul.f32 %v1701_v34, %v3889_v1  ;;  %v1792_v6 = vmul.f32 %v1790_v13, %v3889_v1  ;;  %v1881_v41 = vmul.f32 %v1879_v43, %v3889_v1 }
  0xe4   : > { %v1326_v56 = vmul.f32 %v1324_v4, %v3889_v1  ;;  %v1502_v57 = vcombine.high %v1324_v4, %v1324_v4  ;;  %v1415_v16 = vmul.f32 %v1413_v3, %v3889_v1  ;;  %v1968_v52 = vmul.f32 %v3669_v44, %v3889_v1 }
  0xe5   : > { %v2079_v54 = vmul.f32 %v2077_v45, %v3889_v1  ;;  %v2454_v44 = vrot.slane %v2447_v25, %v3463_v51  ;;  %v2168_v0 = vmul.f32 %v2166_v53, %v3889_v1  ;;  %v2257_v4 = vmul.f32 %v2255_v55, %v3889_v1 }
  0xe6   : > { %v1504_v23 = vmul.f32 %v1502_v57, %v3889_v1 }
  0xe7   : > { %v2456_v51 = vmul.f32 %v2454_v44, %v3889_v1 }
 0x196   : > { %v1286_v12 = vpop.f32.mrb[0].mxu0  ;;  %v1398_v14 = vpop.f32.mrb[0].mxu1 }
 0x197   : > { %v1287_v18 = vadd.f32 %v1286_v12, %v1213_v8  ;;  %v1399_v21 = vadd.f32 %v1398_v14, %v1326_v56  ;;  %v2980_v20 = vpop.f32.mrb[1].mxu0  ;;  %v2987_v22 = vpop.f32.mrb[1].mxu1  ;;  %v2360_v8 = vmul.f32 %v2358_v59, %v3889_v1  ;;  %v2543_v14 = vcombine.high %v2358_v59, %v2358_v59 }
 0x199   : > { %1291 = vst.msk [vmem:[%s3899_s30] sm:$0x1] %vm1290_vm7, %v1287_v18  ;;  %1402 = vst.msk [vmem:[%s3899_s30 + $0x1] sm:$0x1] %vm1290_vm7, %v1399_v21 }
 0x19a   : > { %v1487_v28 = vpop.f32.mrb[2].mxu0  ;;  %v1576_v29 = vpop.f32.mrb[2].mxu1 }
 0x19b   : > { %v1488_v32 = vadd.f32 %v1487_v28, %v1415_v16  ;;  %v1577_v33 = vadd.f32 %v1576_v29, %v1504_v23  ;;  %v2994_v2 = vpop.f32.mrb[3].mxu0  ;;  %v3001_v27 = vpop.f32.mrb[3].mxu1  ;;  %v2632_v16 = vcombine.high %v2454_v44, %v2454_v44  ;;  %v2545_v28 = vmul.f32 %v2543_v14, %v3889_v1 }
 0x19d   : > { %1491 = vst.msk [vmem:[%s3899_s30 + $0x2] sm:$0x1] %vm1290_vm7, %v1488_v32  ;;  %1580 = vst.msk [vmem:[%s3899_s30 + $0x3] sm:$0x1] %vm1290_vm7, %v1577_v33  ;;  %v2634_v29 = vmul.f32 %v2632_v16, %v3889_v1 }
 0x1a2   : > { %v1679_v10 = vpop.f32.mrb[4].mxu0  ;;  %v1775_v24 = vpop.f32.mrb[4].mxu1 }
 0x1a3   : > { %v1680_v62 = vadd.f32 %v1679_v10, %v1607_v39  ;;  %v1776_v7 = vadd.f32 %v1775_v24, %v1703_v42  ;;  %v3008_v17 = vpop.f32.mrb[5].mxu0  ;;  %v3015_v30 = vpop.f32.mrb[5].mxu1 }
 0x1a5   : > { %1683 = vst.msk [vmem:[%s3899_s30 + $0x4] sm:$0x1] %vm1290_vm7, %v1680_v62  ;;  %1779 = vst.msk [vmem:[%s3899_s30 + $0x5] sm:$0x1] %vm1290_vm7, %v1776_v7 }
 0x1a6   : > { %v1864_v49 = vpop.f32.mrb[6].mxu0  ;;  %v1953_v50 = vpop.f32.mrb[6].mxu1 }
 0x1a7   : > { %v1865_v40 = vadd.f32 %v1864_v49, %v1792_v6  ;;  %v1954_v37 = vadd.f32 %v1953_v50, %v1881_v41  ;;  %v3022_v5 = vpop.f32.mrb[7].mxu0  ;;  %v3029_v46 = vpop.f32.mrb[7].mxu1 }
 0x1a9   : > { %1868 = vst.msk [vmem:[%s3899_s30 + $0x6] sm:$0x1] %vm1290_vm7, %v1865_v40  ;;  %1957 = vst.msk [vmem:[%s3899_s30 + $0x7] sm:$0x1] %vm1290_vm7, %v1954_v37 }
 0x1aa   : > { %v2040_v61 = vpop.f32.mrb[8].mxu0  ;;  %v2151_v58 = vpop.f32.mrb[8].mxu1 }
 0x1ab   : > { %v2041_v9 = vadd.f32 %v2040_v61, %v1968_v52  ;;  %v2152_v60 = vadd.f32 %v2151_v58, %v2079_v54  ;;  %v3036_v19 = vpop.f32.mrb[9].mxu0  ;;  %v3043_v63 = vpop.f32.mrb[9].mxu1 }
 0x1ad   : > { %2044 = vst.msk [vmem:[%s3899_s30 + $0x8] sm:$0x1] %vm1290_vm7, %v2041_v9  ;;  %2155 = vst.msk [vmem:[%s3899_s30 + $0x9] sm:$0x1] %vm1290_vm7, %v2152_v60 }
 0x1ae   : > { %v2240_v15 = vpop.f32.mrb[10].mxu0  ;;  %v2329_v3 = vpop.f32.mrb[10].mxu1 }
 0x1af   : > { %v2241_v56 = vadd.f32 %v2240_v15, %v2168_v0  ;;  %v2330_v57 = vadd.f32 %v2329_v3, %v2257_v4  ;;  %v3050_v11 = vpop.f32.mrb[11].mxu0  ;;  %v3057_v12 = vpop.f32.mrb[11].mxu1 }
 0x1b1   : > { %2244 = vst.msk [vmem:[%s3899_s30 + $0xa] sm:$0x1] %vm1290_vm7, %v2241_v56  ;;  %2333 = vst.msk [vmem:[%s3899_s30 + $0xb] sm:$0x1] %vm1290_vm7, %v2330_v57 }
 0x1b2   : > { %v2432_v18 = vpop.f32.mrb[12].mxu0  ;;  %v2528_v21 = vpop.f32.mrb[12].mxu1 }
 0x1b3   : > { %v2433_v20 = vadd.f32 %v2432_v18, %v2360_v8  ;;  %v2529_v22 = vadd.f32 %v2528_v21, %v2456_v51  ;;  %v3064_v23 = vpop.f32.mrb[13].mxu0  ;;  %v3071_v26 = vpop.f32.mrb[13].mxu1 }
 0x1b5   : > { %2436 = vst.msk [vmem:[%s3899_s30 + $0xc] sm:$0x1] %vm1290_vm7, %v2433_v20  ;;  %2532 = vst.msk [vmem:[%s3899_s30 + $0xd] sm:$0x1] %vm1290_vm7, %v2529_v22 }
 0x1b6   : > { %v2617_v31 = vpop.f32.mrb[14].mxu0  ;;  %v2706_v32 = vpop.f32.mrb[14].mxu1 }
 0x1b7   : > { %v2618_v33 = vadd.f32 %v2617_v31, %v2545_v28  ;;  %v2707_v2 = vadd.f32 %v2706_v32, %v2634_v29  ;;  %v3078_v27 = vpop.f32.mrb[15].mxu0  ;;  %v3085_v35 = vpop.f32.mrb[15].mxu1 }
 0x1b9   : > { %2621 = vst.msk [vmem:[%s3899_s30 + $0xe] sm:$0x1] %vm1290_vm7, %v2618_v33  ;;  %2710 = vst.msk [vmem:[%s3899_s30 + $0xf] sm:$0x1] %vm1290_vm7, %v2707_v2 }
 0x1ba PF: > { %s15_s22 = sadd.s32 1, %s3329_s22   ;;  %s3982_s18 = smov %s3321_s20 }
 0x1bb   : > { %p12_p7 = scmp.ge.s32.totalorder %s15_s22, 10   ;;  %s3983_s19 = smov %s3325_s21 }
 0x1bc   : > { %s3984_s20 = smov %s3987_s23  ;;  %s3985_s21 = smov %s3991_s24 }
 0x1bd   :  { %14 = sbr.rel (!%p12_p7) target bundleno = 3 (0x3), region = 116 }

// kernel: upsample_forward.17
= control target key start
LH: loop header
LB: loop body
LE: loop exit
PB: predicated region body
PF: predicated region fallthrough
CT: control target
= control target key end

     0   :  { %vm110_vm0 = vcmask 523264   ;;  %s654_s1 = inlined_call_operand.vmem [shape: bf16[64,64], index: 1, kind: input, shape index: {}]   ;;  %s655_s0 = inlined_call_operand.vmem [shape: bf16[128,64], index: 0, kind: input, shape index: {}]   ;;  %s656_s2 = inlined_call_operand.vmem [shape: f32[1,64], index: 2, kind: input, shape index: {}]   ;;  %s657_s3 = inlined_call_operand.vmem [shape: f32[128,64], index: 3, kind: output, shape index: {}]  }
   0x1   :  { %v429_v0 = vld [vmem:[%s654_s1] sm:$0xff]   ;;  %v430_v1 = vld [vmem:[%s654_s1 + $0x8] sm:$0xff]   ;;  %v431_v2 = vld [vmem:[%s654_s1 + $0x10] sm:$0xff]  }
   0x2   :  { %397 = vmatprep.subr.bf16.mxu0 %v429_v0  ;;  %421 = vmatprep.subr.bf16.mxu1 %v429_v0  ;;  %v433_v3 = vld [vmem:[%s655_s0] sm:$0xff]   ;;  %v432_v5 = vld [vmem:[%s654_s1 + $0x18] sm:$0xff]   ;;  %v435_v6 = vld [vmem:[%s655_s0 + $0x8] sm:$0xff]  }
   0x3   :  { %398 = vmatpush3.bf16.msra.mxu0 %v429_v0  ;;  %425 = vmatpush3.bf16.msra.mxu1 %v429_v0  ;;  %v434_v4 = vld [vmem:[%s655_s0 + $0x20] sm:$0xff]   ;;  %v436_v7 = vld [vmem:[%s655_s0 + $0x28] sm:$0xff]   ;;  %v437_v8 = vld [vmem:[%s655_s0 + $0x10] sm:$0xff]  }
   0x4   :  { %399 = vmatprep.subr.bf16.mxu0 %v430_v1  ;;  %422 = vmatprep.subr.bf16.mxu1 %v430_v1  ;;  %v438_v9 = vld [vmem:[%s655_s0 + $0x30] sm:$0xff]   ;;  %v439_v10 = vld [vmem:[%s655_s0 + $0x18] sm:$0xff]   ;;  %v572_v12 = vld [vmem:[%s656_s2] ss:$0 sm:$0xff] }
   0x5   :  { %405 = vmatprep.mubr.msk.bf16.mxu0 %vm110_vm0, %v433_v3  ;;  %413 = vmatprep.mubr.msk.bf16.mxu1 %vm110_vm0, %v434_v4  ;;  %v440_v11 = vld [vmem:[%s655_s0 + $0x38] sm:$0xff]  }
   0x7   :  { %400 = vmatpush3.bf16.msra.mxu0 %v430_v1  ;;  %426 = vmatpush3.bf16.msra.mxu1 %v430_v1 }
   0x8   :  { %401 = vmatprep.subr.bf16.mxu0 %v431_v2  ;;  %423 = vmatprep.subr.bf16.mxu1 %v431_v2 }
   0xb   :  { %402 = vmatpush3.bf16.msra.mxu0 %v431_v2  ;;  %427 = vmatpush3.bf16.msra.mxu1 %v431_v2 }
   0xc   :  { %403 = vmatprep.subr.bf16.mxu0 %v432_v5  ;;  %424 = vmatprep.subr.bf16.mxu1 %v432_v5 }
   0xf   :  { %404 = vmatpush3.bf16.msra.mxu0 %v432_v5  ;;  %428 = vmatpush3.bf16.msra.mxu1 %v432_v5 }
  0x12   :  { %406 = vmatmul.mubr.msk.bf16.vlgmr.msra.gmra.mrb[0].mxu0 %vm110_vm0, %v435_v6  ;;  %414 = vmatmul.mubr.msk.bf16.vlgmr.msra.gmra.mrb[0].mxu1 %vm110_vm0, %v436_v7 }
  0x13   :  { %409 = vmatprep.mubr.msk.bf16.mxu0 %vm110_vm0, %v437_v8  ;;  %417 = vmatprep.mubr.msk.bf16.mxu1 %vm110_vm0, %v438_v9 }
  0x1a   :  { %410 = vmatmul.mubr.msk.bf16.gmra.mrb[4].mxu0 %vm110_vm0, %v439_v10  ;;  %418 = vmatmul.mubr.msk.bf16.gmra.mrb[4].mxu1 %vm110_vm0, %v440_v11 }
  0xe5   :  { %v407_v13 = vpop.f32.mrb[0].mxu0  ;;  %v415_v14 = vpop.f32.mrb[0].mxu1 }
  0xe6   :  { %v178_v15 = vadd.f32 %v407_v13, %v572_v12  ;;  %v210_v16 = vadd.f32 %v415_v14, %v572_v12  ;;  %v169_v17 = vpop.f32.mrb[1].mxu0  ;;  %v201_v18 = vpop.f32.mrb[1].mxu1 }
  0xe7   :  { %v170_v19 = vadd.f32 %v572_v12, %v169_v17  ;;  %v202_v20 = vadd.f32 %v572_v12, %v201_v18  ;;  %v408_v21 = vpop.f32.mrb[2].mxu0  ;;  %v416_v22 = vpop.f32.mrb[2].mxu1 }
  0xe8   :  { %v371_v23 = vmul.f32 -1.442695, %v178_v15  ;;  %v379_v24 = vmul.f32 -1.442695, %v210_v16  ;;  %v181_v25 = vadd.f32 %v408_v21, %v572_v12  ;;  %v213_v26 = vadd.f32 %v416_v22, %v572_v12  ;;  %v172_v27 = vpop.f32.mrb[3].mxu0  ;;  %v204_v28 = vpop.f32.mrb[3].mxu1 }
  0xe9   :  { %v369_v29 = vmul.f32 -1.442695, %v170_v19  ;;  %v377_v30 = vmul.f32 -1.442695, %v202_v20  ;;  %v173_v31 = vadd.f32 %v572_v12, %v172_v27  ;;  %v205_v32 = vadd.f32 %v572_v12, %v204_v28 }
  0xea   :  { %441 = vpow2.f32 %v371_v23  ;;  %v372_v33 = vmul.f32 -1.442695, %v181_v25  ;;  %v380_v34 = vmul.f32 -1.442695, %v213_v26 }
  0xeb   :  { %443 = vpow2.f32 %v379_v24  ;;  %v370_v35 = vmul.f32 -1.442695, %v173_v31  ;;  %v378_v36 = vmul.f32 -1.442695, %v205_v32 }
  0xec   :  { %445 = vpow2.f32 %v369_v29 }
  0xed   :  { %447 = vpow2.f32 %v377_v30  ;;  %v411_v37 = vpop.f32.mrb[4].mxu0  ;;  %v419_v38 = vpop.f32.mrb[4].mxu1 }
  0xee   :  { %449 = vpow2.f32 %v372_v33  ;;  %v194_v39 = vadd.f32 %v411_v37, %v572_v12  ;;  %v226_v40 = vadd.f32 %v419_v38, %v572_v12  ;;  %v185_v41 = vpop.f32.mrb[5].mxu0  ;;  %v217_v42 = vpop.f32.mrb[5].mxu1 }
  0xef   :  { %451 = vpow2.f32 %v380_v34  ;;  %v186_v43 = vadd.f32 %v572_v12, %v185_v41  ;;  %v218_v44 = vadd.f32 %v572_v12, %v217_v42  ;;  %v412_v45 = vpop.f32.mrb[6].mxu0  ;;  %v420_v46 = vpop.f32.mrb[6].mxu1 }
  0xf0   :  { %453 = vpow2.f32 %v370_v35  ;;  %v375_v47 = vmul.f32 -1.442695, %v194_v39  ;;  %v383_v48 = vmul.f32 -1.442695, %v226_v40  ;;  %v197_v49 = vadd.f32 %v412_v45, %v572_v12  ;;  %v188_v50 = vpop.f32.mrb[7].mxu0  ;;  %v220_v51 = vpop.f32.mrb[7].mxu1 }
  0xf1   :  { %455 = vpow2.f32 %v378_v36  ;;  %v373_v52 = vmul.f32 -1.442695, %v186_v43  ;;  %v381_v53 = vmul.f32 -1.442695, %v218_v44  ;;  %v229_v8 = vadd.f32 %v420_v46, %v572_v12 }
  0xf2   :  { %457 = vpow2.f32 %v375_v47  ;;  %v376_v54 = vmul.f32 -1.442695, %v197_v49  ;;  %v189_v11 = vadd.f32 %v572_v12, %v188_v50  ;;  %v221_v15 = vadd.f32 %v572_v12, %v220_v51 }
  0xf3   :  { %459 = vpow2.f32 %v383_v48  ;;  %v384_v20 = vmul.f32 -1.442695, %v229_v8 }
  0xf4   :  { %v442_v55 = vpop.eup %441  ;;  %461 = vpow2.f32 %v373_v52  ;;  %v374_v23 = vmul.f32 -1.442695, %v189_v11  ;;  %v382_v25 = vmul.f32 -1.442695, %v221_v15 }
  0xf5   :  { %v444_v56 = vpop.eup %443  ;;  %v282_v57 = vadd.f32 1.0, %v442_v55  ;;  %463 = vpow2.f32 %v381_v53 }
  0xf6   :  { %v446_v58 = vpop.eup %445  ;;  %v290_v59 = vadd.f32 1.0, %v444_v56  ;;  %465 = vpow2.f32 %v376_v54 }
  0xf7   :  { %v448_v60 = vpop.eup %447  ;;  %467 = vrcp.f32 %v282_v57  ;;  %v280_v61 = vadd.f32 1.0, %v446_v58 }
  0xf8   :  { %v450_v62 = vpop.eup %449  ;;  %469 = vrcp.f32 %v290_v59  ;;  %v288_v63 = vadd.f32 1.0, %v448_v60 }
  0xf9   :  { %v452_v0 = vpop.eup %451  ;;  %471 = vrcp.f32 %v280_v61  ;;  %v283_v1 = vadd.f32 1.0, %v450_v62 }
  0xfa   :  { %v454_v2 = vpop.eup %453  ;;  %473 = vrcp.f32 %v288_v63  ;;  %v291_v3 = vadd.f32 1.0, %v452_v0 }
  0xfb   :  { %v456_v4 = vpop.eup %455  ;;  %475 = vrcp.f32 %v283_v1  ;;  %v281_v5 = vadd.f32 1.0, %v454_v2 }
  0xfc   :  { %v458_v6 = vpop.eup %457  ;;  %477 = vrcp.f32 %v291_v3  ;;  %v289_v7 = vadd.f32 1.0, %v456_v4 }
  0xfd   :  { %v460_v9 = vpop.eup %459  ;;  %479 = vrcp.f32 %v281_v5  ;;  %v286_v10 = vadd.f32 1.0, %v458_v6 }
  0xfe   :  { %v462_v13 = vpop.eup %461  ;;  %481 = vrcp.f32 %v289_v7  ;;  %v294_v14 = vadd.f32 1.0, %v460_v9 }
  0xff   :  { %v464_v16 = vpop.eup %463  ;;  %483 = vrcp.f32 %v286_v10  ;;  %v284_v17 = vadd.f32 1.0, %v462_v13 }
 0x100   :  { %v466_v18 = vpop.eup %465  ;;  %485 = vrcp.f32 %v294_v14  ;;  %v292_v19 = vadd.f32 1.0, %v464_v16 }
 0x101   :  { %v468_v21 = vpop.eup %467  ;;  %487 = vrcp.f32 %v284_v17  ;;  %v287_v22 = vadd.f32 1.0, %v466_v18 }
 0x102   :  { %v470_v24 = vpop.eup %469  ;;  %330 = vst.msk [vmem:[%s657_s3 + $0x10] sm:$0xff] %vm110_vm0, %v468_v21  ;;  %489 = vrcp.f32 %v292_v19 }
 0x103   :  { %v472_v12 = vpop.eup %471  ;;  %338 = vst.msk [vmem:[%s657_s3 + $0x50] sm:$0xff] %vm110_vm0, %v470_v24  ;;  %491 = vrcp.f32 %v287_v22 }
 0x104   :  { %v474_v26 = vpop.eup %473  ;;  %328 = vst.msk [vmem:[%s657_s3] sm:$0xff] %vm110_vm0, %v472_v12  ;;  %493 = vpow2.f32 %v384_v20 }
 0x105   :  { %v476_v27 = vpop.eup %475  ;;  %336 = vst.msk [vmem:[%s657_s3 + $0x40] sm:$0xff] %vm110_vm0, %v474_v26  ;;  %495 = vpow2.f32 %v374_v23 }
 0x106   :  { %v478_v28 = vpop.eup %477  ;;  %331 = vst.msk [vmem:[%s657_s3 + $0x18] sm:$0xff] %vm110_vm0, %v476_v27  ;;  %497 = vpow2.f32 %v382_v25 }
 0x107   :  { %v480_v29 = vpop.eup %479  ;;  %339 = vst.msk [vmem:[%s657_s3 + $0x58] sm:$0xff] %vm110_vm0, %v478_v28 }
 0x108   :  { %v482_v30 = vpop.eup %481  ;;  %329 = vst.msk [vmem:[%s657_s3 + $0x8] sm:$0xff] %vm110_vm0, %v480_v29 }
 0x109   :  { %v484_v31 = vpop.eup %483  ;;  %337 = vst.msk [vmem:[%s657_s3 + $0x48] sm:$0xff] %vm110_vm0, %v482_v30 }
 0x10a   :  { %v486_v32 = vpop.eup %485  ;;  %334 = vst.msk [vmem:[%s657_s3 + $0x30] sm:$0xff] %vm110_vm0, %v484_v31 }
 0x10b   :  { %v488_v33 = vpop.eup %487  ;;  %342 = vst.msk [vmem:[%s657_s3 + $0x70] sm:$0xff] %vm110_vm0, %v486_v32 }
 0x10c   :  { %v490_v34 = vpop.eup %489  ;;  %332 = vst.msk [vmem:[%s657_s3 + $0x20] sm:$0xff] %vm110_vm0, %v488_v33 }
 0x10d   :  { %v492_v35 = vpop.eup %491  ;;  %340 = vst.msk [vmem:[%s657_s3 + $0x60] sm:$0xff] %vm110_vm0, %v490_v34 }
 0x10e   :  { %v494_v36 = vpop.eup %493  ;;  %335 = vst.msk [vmem:[%s657_s3 + $0x38] sm:$0xff] %vm110_vm0, %v492_v35 }
 0x10f   :  { %v496_v37 = vpop.eup %495  ;;  %v295_v38 = vadd.f32 1.0, %v494_v36 }
 0x110   :  { %v498_v39 = vpop.eup %497  ;;  %v285_v40 = vadd.f32 1.0, %v496_v37 }
 0x111   :  { %499 = vrcp.f32 %v295_v38  ;;  %v293_v41 = vadd.f32 1.0, %v498_v39 }
 0x112   :  { %501 = vrcp.f32 %v285_v40 }
 0x113   :  { %503 = vrcp.f32 %v293_v41 }
 0x11b   :  { %v500_v42 = vpop.eup %499 }
 0x11c   :  { %v502_v43 = vpop.eup %501  ;;  %343 = vst.msk [vmem:[%s657_s3 + $0x78] sm:$0xff] %vm110_vm0, %v500_v42 }
 0x11d   :  { %v504_v44 = vpop.eup %503  ;;  %333 = vst.msk [vmem:[%s657_s3 + $0x28] sm:$0xff] %vm110_vm0, %v502_v43 }
 0x11e   :  { %341 = vst.msk [vmem:[%s657_s3 + $0x68] sm:$0xff] %vm110_vm0, %v504_v44 }

</bundles_post_ra>
